<compile_context>
chip_gen: v7x
topology: tpu7x:2x2x1
jax: 0.10.0
libtpu: 0.0.40
codegen_flags: <defaults>
</compile_context>

<pallas_src>
import jax
import jax.numpy as jnp
from jax import lax
from jax.experimental import pallas as pl
from jax.experimental.pallas import tpu as pltpu

# ---------------- config (consistent with the module) ----------------
B = 2            # batch
L = 32           # pad_size == total_length == sequence length
E = 16           # embed_size
H = 32           # hidden_size
F = 5            # other_feature
NC = 4           # num_classes
V = 50           # n_vocab   (padding_idx = V - 1)
EPS = 1e-5

ROWS = 2 * B     # fwd + bwd rows stacked on the sublane axis
G4 = 4 * H       # 128: gates of one direction
G8 = 8 * H       # 256: gates of both directions
KAUG = 2 * E + 2 # 34: [fwd emb | bwd emb | fwd bias ind | bwd bias ind]
KPAD = 40        # KAUG padded up to a multiple of 8
C1 = E + 2 * H + 1  # 81: fc weight row (emb | fwd h | bwd h | bias)

# Weight-slab row layout (slab shape [WROWS, G8]; i/f/o gate columns pre-scaled by 0.5)
ROW_WHH = 0                  # rows  0:32  cols 0:256  whh = [whh_f | whh_b]
ROW_WIH = H                  # rows 32:72  cols 0:128  wih_aug = [wih_f; wih_b; b_f; b_b] (row-padded)
ROW_FC = ROW_WIH + KPAD      # row  72     cols 0:81   fc weight row + bias
ROW_FC2 = 80                 # rows 80:87  cols 0:4    fc2 weight rows (5 feat + 1 fc_out) + bias
WROWS = 88

AROWS = L * ROWS + 8         # 136: x_aug rows + one 8-row block holding the other-features m


# ------------------------------- kernel -------------------------------------
def model_kernel(a_ref, w_ref, out_ref, gx_ref):
    # a_ref : [136, 40] activation slab.
    #   rows 0:128   x_aug, time-major; per step the 4 rows are
    #                [fwd b0, fwd b1, bwd b0, bwd b1].  fwd rows carry their embedding
    #                in cols 0:E, bwd rows (time-reversed tokens) in cols E:2E, and
    #                cols 2E / 2E+1 are one-hot direction indicators (bias selectors).
    #   rows 128:130 other-features m in cols 0:F.
    # w_ref : [88, 256] weight slab (ROW_* layout above); i/f/o gate columns of
    #         wih/whh/bias are pre-scaled by 0.5 so sigmoid(x) == 0.5*tanh(x/2) + 0.5.
    # gx_ref: [128, 128] VMEM scratch for the hoisted x->gate projections.
    x_aug = a_ref[0:L * ROWS, :]                            # [128, 40]

    # ---- preamble: one matmul = direction-selected gates + bias for all steps ----
    wiha = w_ref[ROW_WIH:ROW_WIH + KPAD, 0:G4]              # [40, 128]
    gx_ref[...] = jnp.dot(x_aug, wiha, preferred_element_type=jnp.float32)   # [128, 128]

    # ---- relu + max-over-time pooling of the embeddings (fwd rows; bwd rows are 0) ----
    rxe = jnp.maximum(x_aug[:, 0:E], 0.0)                   # [128, 16], >= 0
    pos = lax.broadcasted_iota(jnp.int32, (L * ROWS, E), 0) % ROWS
    pooled_e = jnp.concatenate(
        [jnp.max(jnp.where(pos == b, rxe, 0.0), axis=0, keepdims=True)
         for b in range(B)], axis=0)                        # [B, E]

    # ---- fused bidirectional recurrence, fully unrolled ----
    whh = w_ref[ROW_WHH:ROW_WHH + H, :]                     # [32, 256] = [whh_f | whh_b]
    is_fwd = lax.broadcasted_iota(jnp.int32, (ROWS, G4), 0) < B
    h = jnp.zeros((ROWS, H), jnp.float32)
    c = jnp.zeros((ROWS, H), jnp.float32)
    pool_h = jnp.zeros((ROWS, H), jnp.float32)              # relu+maxpool accumulator (>= 0)

    for t2 in range(L // 2):                                # 2 steps per 8-row aligned block
        blk = gx_ref[2 * ROWS * t2: 2 * ROWS * (t2 + 1), :]  # [8, 128] static aligned slice
        for half in range(2):
            gx = blk[half * ROWS:(half + 1) * ROWS]         # [2B, 4H]
            hh = jnp.dot(h, whh, preferred_element_type=jnp.float32)   # [2B, 8H]
            gates = gx + jnp.where(is_fwd, hh[:, 0:G4], hh[:, G4:G8])  # [2B, 4H]
            tg = jnp.tanh(gates)                            # single EUP push for all gates
            sg = 0.5 * tg + 0.5                             # sigmoid of the pre-scaled i/f/o lanes
            c = sg[:, H:2 * H] * c + sg[:, 0:H] * tg[:, 2 * H:3 * H]
            h = sg[:, 3 * H:4 * H] * jnp.tanh(c)
            pool_h = jnp.maximum(pool_h, h)                 # == max(pool, relu(h)) since pool >= 0

    pooled_f = pool_h[0:B]                                  # [B, H] forward direction
    pooled_b = pool_h[B:ROWS]                               # [B, H] backward direction

    # ---- fc: Linear(E + 2H -> 1) via a lane-dense weight row + reduce ----
    wfc_row = w_ref[ROW_FC:ROW_FC + 8, 0:G4][0:1, 0:C1]     # [1, 81]
    pooled_cat = jnp.concatenate(
        [pooled_e, pooled_f, pooled_b, jnp.ones((B, 1), jnp.float32)], axis=1)   # [B, 81]
    fc_out = jnp.sum(pooled_cat * wfc_row, axis=1, keepdims=True)                # [B, 1]

    # ---- BatchNorm1d(other_feature, affine=False), training-mode batch stats ----
    m = a_ref[L * ROWS:L * ROWS + 8, :][0:B, 0:F]           # [B, F]
    mu = jnp.mean(m, axis=0, keepdims=True)
    var = jnp.mean(jnp.square(m - mu), axis=0, keepdims=True)
    m_bn = (m - mu) * lax.rsqrt(var + EPS)

    # ---- relu -> fc2 (bias folded as extra input column) -> softmax ----
    z = jnp.concatenate(
        [jnp.maximum(m_bn, 0.0), jnp.maximum(fc_out, 0.0),
         jnp.ones((B, 1), jnp.float32)], axis=1)            # [B, F+2]
    wfc2 = w_ref[ROW_FC2:ROW_FC2 + 8, 0:G4][0:F + 2, 0:NC]  # [F+2, NC]
    logits = jnp.dot(z, wfc2, preferred_element_type=jnp.float32)   # [B, NC]
    logits = logits - jnp.max(logits, axis=1, keepdims=True)
    ez = jnp.exp(logits)
    out_ref[...] = ez / jnp.sum(ez, axis=1, keepdims=True)  # exact divide


# ------------------------------ wrapper --------------------------------------
def model_forward(x, params):
    """x: int32 [B, F + L]  ->  probs float32 [B, NC]."""
    m = x[:, :F].astype(jnp.float32)                        # other features [B, F]
    ids = x[:, F:].astype(jnp.int32)                        # token ids [B, L]

    # Build the augmented time-major activation slab.  Per step the 2B rows are
    # [fwd b0, fwd b1, bwd b0, bwd b1]; fwd rows carry their embedding in cols 0:E,
    # bwd rows (time-reversed tokens) in cols E:2E; the two one-hot indicator cols
    # select the per-direction gate bias inside the kernel's preamble matmul.
    ids_t = ids.T                                           # [L, B]
    emb_f = jnp.take(params["emb"], ids_t, axis=0)          # [L, B, E]
    emb_b = emb_f[::-1]                                     # time-reversed
    zeros_e = jnp.zeros((L, B, E), jnp.float32)
    one = jnp.ones((L, B, 1), jnp.float32)
    zero1 = jnp.zeros((L, B, 1), jnp.float32)
    pad = jnp.zeros((L, B, KPAD - KAUG), jnp.float32)
    fwd_rows = jnp.concatenate([emb_f, zeros_e, one, zero1, pad], axis=2)   # [L, B, KPAD]
    bwd_rows = jnp.concatenate([zeros_e, emb_b, zero1, one, pad], axis=2)   # [L, B, KPAD]
    x_aug = jnp.concatenate([fwd_rows, bwd_rows], axis=1).reshape(L * ROWS, KPAD)
    m_rows = jnp.zeros((8, KPAD), jnp.float32).at[0:B, 0:F].set(m)
    aslab = jnp.concatenate([x_aug, m_rows], axis=0)        # [136, 40]

    vmem = pl.BlockSpec(memory_space=pltpu.MemorySpace.VMEM)
    return pl.pallas_call(
        model_kernel,
        out_shape=jax.ShapeDtypeStruct((B, NC), jnp.float32),
        in_specs=[vmem, vmem],
        out_specs=vmem,
        scratch_shapes=[pltpu.VMEM((L * ROWS, G4), jnp.float32)],
    )(aslab, params["wslab"])


# --------------------------- deterministic init -------------------------------
def init_params(key):
    """Raw parameters with torch-default-style initializations (deterministic)."""
    ks = jax.random.split(key, 12)
    kH = 1.0 / (H ** 0.5)
    C = 2 * H + E

    emb = jax.random.normal(ks[0], (V, E), jnp.float32)
    emb = emb.at[V - 1].set(0.0)                            # padding_idx row = 0

    def u(k, shape, bound):
        return jax.random.uniform(k, shape, jnp.float32, -bound, bound)

    raw = {
        "emb": emb,
        "wih_f": u(ks[1], (E, 4 * H), kH),
        "whh_f": u(ks[2], (H, 4 * H), kH),
        "b_f": u(ks[3], (1, 4 * H), kH),      # combined b_ih + b_hh (forward)
        "wih_b": u(ks[4], (E, 4 * H), kH),
        "whh_b": u(ks[5], (H, 4 * H), kH),
        "b_b": u(ks[6], (1, 4 * H), kH),      # combined b_ih + b_hh (backward)
    }
    kC = 1.0 / (C ** 0.5)
    raw["wfc"] = u(ks[7], (C, 1), kC)         # rows: [emb | fwd h | bwd h]
    raw["bfc"] = u(ks[8], (1, 1), kC)
    std = (2.0 / (F + 1)) ** 0.5              # kaiming_normal_ (fan_in = F + 1)
    raw["wfc2"] = jax.random.normal(ks[9], (F + 1, NC), jnp.float32) * std
    raw["bfc2"] = jnp.zeros((1, NC), jnp.float32)
    return raw


def pack_params(raw):
    """Pack everything except the embedding table into one lane-dense weight slab.

    The i/f/o gate columns of wih/whh/bias are pre-scaled by 0.5 so the kernel
    recovers their sigmoid from a single tanh: sigmoid(x) = 0.5*tanh(x/2) + 0.5;
    the g gate columns stay unscaled (tanh used directly).
    """
    gate_scale = jnp.concatenate(
        [jnp.full((1, H), 0.5, jnp.float32), jnp.full((1, H), 0.5, jnp.float32),
         jnp.ones((1, H), jnp.float32), jnp.full((1, H), 0.5, jnp.float32)], axis=1)

    def s(w):
        return w * gate_scale

    wih_aug = jnp.concatenate([s(raw["wih_f"]), s(raw["wih_b"]),
                               s(raw["b_f"]), s(raw["b_b"])], axis=0)   # [2E+2, 4H]
    wih_aug = jnp.pad(wih_aug, ((0, KPAD - KAUG), (0, 0)))              # [KPAD, 4H]
    whh = jnp.concatenate([s(raw["whh_f"]), s(raw["whh_b"])], axis=1)   # [H, 8H]

    fc_row = jnp.concatenate([raw["wfc"][:, 0], raw["bfc"][:, 0]], axis=0)   # [81]
    wfc2_aug = jnp.concatenate([raw["wfc2"], raw["bfc2"]], axis=0)           # [F+2, NC]

    wslab = jnp.zeros((WROWS, G8), jnp.float32)
    wslab = wslab.at[ROW_WHH:ROW_WHH + H, :].set(whh)
    wslab = wslab.at[ROW_WIH:ROW_WIH + KPAD, 0:G4].set(wih_aug)
    wslab = wslab.at[ROW_FC, 0:C1].set(fc_row)
    wslab = wslab.at[ROW_FC2:ROW_FC2 + F + 2, 0:NC].set(wfc2_aug)
    return {"emb": raw["emb"], "wslab": wslab}


# TODO(synk): pack_padded_sequence with a real variable `len_list` (masked/ragged
# LSTM steps and masked max-pool) is not modeled; all sequences are assumed full
# length (pad_size == 32), matching the module as written (len_list never set).

if __name__ == "__main__":
    key = jax.random.PRNGKey(0)
    k_params, k_feat, k_ids = jax.random.split(key, 3)

    params = pack_params(init_params(k_params))

    feats = jax.random.randint(k_feat, (B, F), 0, 10, jnp.int32)
    ids = jax.random.randint(k_ids, (B, L), 0, V - 1, jnp.int32)
    x = jnp.concatenate([feats, ids], axis=1)               # [B, F + L] int32

    fwd = jax.jit(model_forward)
    out = jax.block_until_ready(fwd(x, params))
    assert out.shape == (B, NC)
    assert bool(jnp.all(jnp.isfinite(out)))
    print("KERNEL_OK")
</pallas_src>

<mosaic_0001>
module attributes {stable_mosaic.version = 11 : i64} {
  func.func @model_kernel(%arg0: memref<136x40xf32, #tpu.memory_space<vmem>>, %arg1: memref<88x256xf32, #tpu.memory_space<vmem>>, %arg2: memref<2x4xf32, #tpu.memory_space<vmem>>, %arg3: memref<128x128xf32, #tpu.memory_space<vmem>>) attributes {dimension_semantics = [], scalar_prefetch = 0 : i64, scratch_operands = 1 : i64, tpu.core_type = #tpu.core_type<tc>} {
    %c0 = arith.constant 0 : index
    %c0_0 = arith.constant 0 : index
    %0 = vector.load %arg0[%c0, %c0_0] : memref<136x40xf32, #tpu.memory_space<vmem>>, vector<128x40xf32>
    %c32 = arith.constant 32 : index
    %c0_1 = arith.constant 0 : index
    %1 = vector.load %arg1[%c32, %c0_1] : memref<88x256xf32, #tpu.memory_space<vmem>>, vector<40x128xf32>
    %cst = arith.constant dense<0.000000e+00> : vector<128x128xf32>
    %2 = tpu.matmul %0, %1, %cst {dimension_numbers = #tpu.dot_dimension_numbers<[1], [0], [0], [1], [0, 0, 1, 1], [], []>} : vector<128x40xf32>, vector<40x128xf32>, vector<128x128xf32> -> vector<128x128xf32>
    %c0_2 = arith.constant 0 : index
    %c0_3 = arith.constant 0 : index
    %3 = vector.load %arg3[%c0_2, %c0_3] : memref<128x128xf32, #tpu.memory_space<vmem>>, vector<128x128xf32>
    tpu.vector_store %arg3[%c0_2, %c0_3], %2 {strides = array<i32>} : memref<128x128xf32, #tpu.memory_space<vmem>>, vector<128x128xf32>,
    %4 = vector.extract_strided_slice %0 {offsets = [0, 0], sizes = [128, 16], strides = [1, 1]} : vector<128x40xf32> to vector<128x16xf32>
    %cst_4 = arith.constant 0.000000e+00 : f32
    %5 = vector.broadcast %cst_4 : f32 to vector<128x16xf32>
    %6 = arith.maximumf %4, %5 : vector<128x16xf32>
    %7 = tpu.iota {dimensions = array<i32: 0>} : vector<128x16xi32>
    %c4_i32 = arith.constant 4 : i32
    %c0_i32 = arith.constant 0 : i32
    %8 = arith.cmpi eq, %c4_i32, %c0_i32 : i32
    %c1_i32 = arith.constant 1 : i32
    %9 = arith.select %8, %c1_i32, %c4_i32 : i32
    %10 = vector.broadcast %9 : i32 to vector<128x16xi32>
    %11 = arith.remsi %7, %10 : vector<128x16xi32>
    %c0_i32_5 = arith.constant 0 : i32
    %12 = vector.broadcast %c0_i32_5 : i32 to vector<128x16xi32>
    %13 = arith.cmpi ne, %11, %12 : vector<128x16xi32>
    %c0_i32_6 = arith.constant 0 : i32
    %14 = vector.broadcast %c0_i32_6 : i32 to vector<128x16xi32>
    %15 = arith.cmpi slt, %11, %14 : vector<128x16xi32>
    %c0_i32_7 = arith.constant 0 : i32
    %16 = arith.cmpi slt, %9, %c0_i32_7 : i32
    %17 = vector.broadcast %16 : i1 to vector<128x16xi1>
    %18 = vector.broadcast %17 : vector<128x16xi1> to vector<128x16xi1>
    %19 = arith.xori %15, %18 : vector<128x16xi1>
    %20 = arith.andi %19, %13 : vector<128x16xi1>
    %21 = vector.broadcast %9 : i32 to vector<128x16xi32>
    %22 = arith.addi %11, %21 : vector<128x16xi32>
    %23 = arith.select %20, %22, %11 : vector<128x16xi1>, vector<128x16xi32>
    %c0_i32_8 = arith.constant 0 : i32
    %24 = vector.broadcast %c0_i32_8 : i32 to vector<128x16xi32>
    %25 = arith.cmpi eq, %23, %24 : vector<128x16xi32>
    %cst_9 = arith.constant 0.000000e+00 : f32
    %26 = vector.broadcast %cst_9 : f32 to vector<128x16xf32>
    %27 = arith.select %25, %6, %26 : vector<128x16xi1>, vector<128x16xf32>
    %cst_10 = arith.constant dense<0xFF800000> : vector<16xf32>
    %28 = vector.multi_reduction <maximumf>, %27, %cst_10 [0] : vector<128x16xf32> to vector<16xf32>
    %29 = vector.shape_cast %28 : vector<16xf32> to vector<1x16xf32>
    %c1_i32_11 = arith.constant 1 : i32
    %30 = vector.broadcast %c1_i32_11 : i32 to vector<128x16xi32>
    %31 = arith.cmpi eq, %23, %30 : vector<128x16xi32>
    %cst_12 = arith.constant 0.000000e+00 : f32
    %32 = vector.broadcast %cst_12 : f32 to vector<128x16xf32>
    %33 = arith.select %31, %6, %32 : vector<128x16xi1>, vector<128x16xf32>
    %cst_13 = arith.constant dense<0xFF800000> : vector<16xf32>
    %34 = vector.multi_reduction <maximumf>, %33, %cst_13 [0] : vector<128x16xf32> to vector<16xf32>
    %35 = vector.shape_cast %34 : vector<16xf32> to vector<1x16xf32>
    %36 = tpu.concatenate %29, %35 in 0 : vector<1x16xf32>, vector<1x16xf32> -> vector<2x16xf32>
    %c0_14 = arith.constant 0 : index
    %c0_15 = arith.constant 0 : index
    %37 = vector.load %arg1[%c0_14, %c0_15] : memref<88x256xf32, #tpu.memory_space<vmem>>, vector<32x256xf32>
    %38 = tpu.iota {dimensions = array<i32: 0>} : vector<4x128xi32>
    %c2_i32 = arith.constant 2 : i32
    %39 = vector.broadcast %c2_i32 : i32 to vector<4x128xi32>
    %40 = arith.cmpi slt, %38, %39 : vector<4x128xi32>
    %cst_16 = arith.constant 0.000000e+00 : f32
    %41 = vector.broadcast %cst_16 : f32 to vector<4x32xf32>
    %cst_17 = arith.constant 0.000000e+00 : f32
    %42 = vector.broadcast %cst_17 : f32 to vector<4x32xf32>
    %cst_18 = arith.constant 0.000000e+00 : f32
    %43 = vector.broadcast %cst_18 : f32 to vector<4x32xf32>
    %c0_19 = arith.constant 0 : index
    %c0_20 = arith.constant 0 : index
    %44 = vector.load %arg3[%c0_19, %c0_20] : memref<128x128xf32, #tpu.memory_space<vmem>>, vector<8x128xf32>
    %45 = vector.extract_strided_slice %44 {offsets = [0, 0], sizes = [4, 128], strides = [1, 1]} : vector<8x128xf32> to vector<4x128xf32>
    %cst_21 = arith.constant dense<0.000000e+00> : vector<4x256xf32>
    %46 = tpu.matmul %41, %37, %cst_21 {dimension_numbers = #tpu.dot_dimension_numbers<[1], [0], [0], [1], [0, 0, 1, 1], [], []>} : vector<4x32xf32>, vector<32x256xf32>, vector<4x256xf32> -> vector<4x256xf32>
    %47 = vector.extract_strided_slice %46 {offsets = [0, 0], sizes = [4, 128], strides = [1, 1]} : vector<4x256xf32> to vector<4x128xf32>
    %48 = vector.extract_strided_slice %46 {offsets = [0, 128], sizes = [4, 128], strides = [1, 1]} : vector<4x256xf32> to vector<4x128xf32>
    %49 = arith.select %40, %47, %48 : vector<4x128xi1>, vector<4x128xf32>
    %50 = arith.addf %45, %49 : vector<4x128xf32>
    %51 = math.tanh %50 : vector<4x128xf32>
    %cst_22 = arith.constant 5.000000e-01 : f32
    %52 = vector.broadcast %cst_22 : f32 to vector<4x128xf32>
    %53 = arith.mulf %52, %51 : vector<4x128xf32>
    %cst_23 = arith.constant 5.000000e-01 : f32
    %54 = vector.broadcast %cst_23 : f32 to vector<4x128xf32>
    %55 = arith.addf %53, %54 : vector<4x128xf32>
    %56 = vector.extract_strided_slice %55 {offsets = [0, 32], sizes = [4, 32], strides = [1, 1]} : vector<4x128xf32> to vector<4x32xf32>
    %57 = arith.mulf %56, %42 : vector<4x32xf32>
    %58 = vector.extract_strided_slice %55 {offsets = [0, 0], sizes = [4, 32], strides = [1, 1]} : vector<4x128xf32> to vector<4x32xf32>
    %59 = vector.extract_strided_slice %51 {offsets = [0, 64], sizes = [4, 32], strides = [1, 1]} : vector<4x128xf32> to vector<4x32xf32>
    %60 = arith.mulf %58, %59 : vector<4x32xf32>
    %61 = arith.addf %57, %60 : vector<4x32xf32>
    %62 = vector.extract_strided_slice %55 {offsets = [0, 96], sizes = [4, 32], strides = [1, 1]} : vector<4x128xf32> to vector<4x32xf32>
    %63 = math.tanh %61 : vector<4x32xf32>
    %64 = arith.mulf %62, %63 : vector<4x32xf32>
    %65 = arith.maximumf %43, %64 : vector<4x32xf32>
    %66 = vector.extract_strided_slice %44 {offsets = [4, 0], sizes = [4, 128], strides = [1, 1]} : vector<8x128xf32> to vector<4x128xf32>
    %cst_24 = arith.constant dense<0.000000e+00> : vector<4x256xf32>
    %67 = tpu.matmul %64, %37, %cst_24 {dimension_numbers = #tpu.dot_dimension_numbers<[1], [0], [0], [1], [0, 0, 1, 1], [], []>} : vector<4x32xf32>, vector<32x256xf32>, vector<4x256xf32> -> vector<4x256xf32>
    %68 = vector.extract_strided_slice %67 {offsets = [0, 0], sizes = [4, 128], strides = [1, 1]} : vector<4x256xf32> to vector<4x128xf32>
    %69 = vector.extract_strided_slice %67 {offsets = [0, 128], sizes = [4, 128], strides = [1, 1]} : vector<4x256xf32> to vector<4x128xf32>
    %70 = arith.select %40, %68, %69 : vector<4x128xi1>, vector<4x128xf32>
    %71 = arith.addf %66, %70 : vector<4x128xf32>
    %72 = math.tanh %71 : vector<4x128xf32>
    %cst_25 = arith.constant 5.000000e-01 : f32
    %73 = vector.broadcast %cst_25 : f32 to vector<4x128xf32>
    %74 = arith.mulf %73, %72 : vector<4x128xf32>
    %cst_26 = arith.constant 5.000000e-01 : f32
    %75 = vector.broadcast %cst_26 : f32 to vector<4x128xf32>
    %76 = arith.addf %74, %75 : vector<4x128xf32>
    %77 = vector.extract_strided_slice %76 {offsets = [0, 32], sizes = [4, 32], strides = [1, 1]} : vector<4x128xf32> to vector<4x32xf32>
    %78 = arith.mulf %77, %61 : vector<4x32xf32>
    %79 = vector.extract_strided_slice %76 {offsets = [0, 0], sizes = [4, 32], strides = [1, 1]} : vector<4x128xf32> to vector<4x32xf32>
    %80 = vector.extract_strided_slice %72 {offsets = [0, 64], sizes = [4, 32], strides = [1, 1]} : vector<4x128xf32> to vector<4x32xf32>
    %81 = arith.mulf %79, %80 : vector<4x32xf32>
    %82 = arith.addf %78, %81 : vector<4x32xf32>
    %83 = vector.extract_strided_slice %76 {offsets = [0, 96], sizes = [4, 32], strides = [1, 1]} : vector<4x128xf32> to vector<4x32xf32>
    %84 = math.tanh %82 : vector<4x32xf32>
    %85 = arith.mulf %83, %84 : vector<4x32xf32>
    %86 = arith.maximumf %65, %85 : vector<4x32xf32>
    %c8 = arith.constant 8 : index
    %c0_27 = arith.constant 0 : index
    %87 = vector.load %arg3[%c8, %c0_27] : memref<128x128xf32, #tpu.memory_space<vmem>>, vector<8x128xf32>
    %88 = vector.extract_strided_slice %87 {offsets = [0, 0], sizes = [4, 128], strides = [1, 1]} : vector<8x128xf32> to vector<4x128xf32>
    %cst_28 = arith.constant dense<0.000000e+00> : vector<4x256xf32>
    %89 = tpu.matmul %85, %37, %cst_28 {dimension_numbers = #tpu.dot_dimension_numbers<[1], [0], [0], [1], [0, 0, 1, 1], [], []>} : vector<4x32xf32>, vector<32x256xf32>, vector<4x256xf32> -> vector<4x256xf32>
    %90 = vector.extract_strided_slice %89 {offsets = [0, 0], sizes = [4, 128], strides = [1, 1]} : vector<4x256xf32> to vector<4x128xf32>
    %91 = vector.extract_strided_slice %89 {offsets = [0, 128], sizes = [4, 128], strides = [1, 1]} : vector<4x256xf32> to vector<4x128xf32>
    %92 = arith.select %40, %90, %91 : vector<4x128xi1>, vector<4x128xf32>
    %93 = arith.addf %88, %92 : vector<4x128xf32>
    %94 = math.tanh %93 : vector<4x128xf32>
    %cst_29 = arith.constant 5.000000e-01 : f32
    %95 = vector.broadcast %cst_29 : f32 to vector<4x128xf32>
    %96 = arith.mulf %95, %94 : vector<4x128xf32>
    %cst_30 = arith.constant 5.000000e-01 : f32
    %97 = vector.broadcast %cst_30 : f32 to vector<4x128xf32>
    %98 = arith.addf %96, %97 : vector<4x128xf32>
    %99 = vector.extract_strided_slice %98 {offsets = [0, 32], sizes = [4, 32], strides = [1, 1]} : vector<4x128xf32> to vector<4x32xf32>
    %100 = arith.mulf %99, %82 : vector<4x32xf32>
    %101 = vector.extract_strided_slice %98 {offsets = [0, 0], sizes = [4, 32], strides = [1, 1]} : vector<4x128xf32> to vector<4x32xf32>
    %102 = vector.extract_strided_slice %94 {offsets = [0, 64], sizes = [4, 32], strides = [1, 1]} : vector<4x128xf32> to vector<4x32xf32>
    %103 = arith.mulf %101, %102 : vector<4x32xf32>
    %104 = arith.addf %100, %103 : vector<4x32xf32>
    %105 = vector.extract_strided_slice %98 {offsets = [0, 96], sizes = [4, 32], strides = [1, 1]} : vector<4x128xf32> to vector<4x32xf32>
    %106 = math.tanh %104 : vector<4x32xf32>
    %107 = arith.mulf %105, %106 : vector<4x32xf32>
    %108 = arith.maximumf %86, %107 : vector<4x32xf32>
    %109 = vector.extract_strided_slice %87 {offsets = [4, 0], sizes = [4, 128], strides = [1, 1]} : vector<8x128xf32> to vector<4x128xf32>
    %cst_31 = arith.constant dense<0.000000e+00> : vector<4x256xf32>
    %110 = tpu.matmul %107, %37, %cst_31 {dimension_numbers = #tpu.dot_dimension_numbers<[1], [0], [0], [1], [0, 0, 1, 1], [], []>} : vector<4x32xf32>, vector<32x256xf32>, vector<4x256xf32> -> vector<4x256xf32>
    %111 = vector.extract_strided_slice %110 {offsets = [0, 0], sizes = [4, 128], strides = [1, 1]} : vector<4x256xf32> to vector<4x128xf32>
    %112 = vector.extract_strided_slice %110 {offsets = [0, 128], sizes = [4, 128], strides = [1, 1]} : vector<4x256xf32> to vector<4x128xf32>
    %113 = arith.select %40, %111, %112 : vector<4x128xi1>, vector<4x128xf32>
    %114 = arith.addf %109, %113 : vector<4x128xf32>
    %115 = math.tanh %114 : vector<4x128xf32>
    %cst_32 = arith.constant 5.000000e-01 : f32
    %116 = vector.broadcast %cst_32 : f32 to vector<4x128xf32>
    %117 = arith.mulf %116, %115 : vector<4x128xf32>
    %cst_33 = arith.constant 5.000000e-01 : f32
    %118 = vector.broadcast %cst_33 : f32 to vector<4x128xf32>
    %119 = arith.addf %117, %118 : vector<4x128xf32>
    %120 = vector.extract_strided_slice %119 {offsets = [0, 32], sizes = [4, 32], strides = [1, 1]} : vector<4x128xf32> to vector<4x32xf32>
    %121 = arith.mulf %120, %104 : vector<4x32xf32>
    %122 = vector.extract_strided_slice %119 {offsets = [0, 0], sizes = [4, 32], strides = [1, 1]} : vector<4x128xf32> to vector<4x32xf32>
    %123 = vector.extract_strided_slice %115 {offsets = [0, 64], sizes = [4, 32], strides = [1, 1]} : vector<4x128xf32> to vector<4x32xf32>
    %124 = arith.mulf %122, %123 : vector<4x32xf32>
    %125 = arith.addf %121, %124 : vector<4x32xf32>
    %126 = vector.extract_strided_slice %119 {offsets = [0, 96], sizes = [4, 32], strides = [1, 1]} : vector<4x128xf32> to vector<4x32xf32>
    %127 = math.tanh %125 : vector<4x32xf32>
    %128 = arith.mulf %126, %127 : vector<4x32xf32>
    %129 = arith.maximumf %108, %128 : vector<4x32xf32>
    %c16 = arith.constant 16 : index
    %c0_34 = arith.constant 0 : index
    %130 = vector.load %arg3[%c16, %c0_34] : memref<128x128xf32, #tpu.memory_space<vmem>>, vector<8x128xf32>
    %131 = vector.extract_strided_slice %130 {offsets = [0, 0], sizes = [4, 128], strides = [1, 1]} : vector<8x128xf32> to vector<4x128xf32>
    %cst_35 = arith.constant dense<0.000000e+00> : vector<4x256xf32>
    %132 = tpu.matmul %128, %37, %cst_35 {dimension_numbers = #tpu.dot_dimension_numbers<[1], [0], [0], [1], [0, 0, 1, 1], [], []>} : vector<4x32xf32>, vector<32x256xf32>, vector<4x256xf32> -> vector<4x256xf32>
    %133 = vector.extract_strided_slice %132 {offsets = [0, 0], sizes = [4, 128], strides = [1, 1]} : vector<4x256xf32> to vector<4x128xf32>
    %134 = vector.extract_strided_slice %132 {offsets = [0, 128], sizes = [4, 128], strides = [1, 1]} : vector<4x256xf32> to vector<4x128xf32>
    %135 = arith.select %40, %133, %134 : vector<4x128xi1>, vector<4x128xf32>
    %136 = arith.addf %131, %135 : vector<4x128xf32>
    %137 = math.tanh %136 : vector<4x128xf32>
    %cst_36 = arith.constant 5.000000e-01 : f32
    %138 = vector.broadcast %cst_36 : f32 to vector<4x128xf32>
    %139 = arith.mulf %138, %137 : vector<4x128xf32>
    %cst_37 = arith.constant 5.000000e-01 : f32
    %140 = vector.broadcast %cst_37 : f32 to vector<4x128xf32>
    %141 = arith.addf %139, %140 : vector<4x128xf32>
    %142 = vector.extract_strided_slice %141 {offsets = [0, 32], sizes = [4, 32], strides = [1, 1]} : vector<4x128xf32> to vector<4x32xf32>
    %143 = arith.mulf %142, %125 : vector<4x32xf32>
    %144 = vector.extract_strided_slice %141 {offsets = [0, 0], sizes = [4, 32], strides = [1, 1]} : vector<4x128xf32> to vector<4x32xf32>
    %145 = vector.extract_strided_slice %137 {offsets = [0, 64], sizes = [4, 32], strides = [1, 1]} : vector<4x128xf32> to vector<4x32xf32>
    %146 = arith.mulf %144, %145 : vector<4x32xf32>
    %147 = arith.addf %143, %146 : vector<4x32xf32>
    %148 = vector.extract_strided_slice %141 {offsets = [0, 96], sizes = [4, 32], strides = [1, 1]} : vector<4x128xf32> to vector<4x32xf32>
    %149 = math.tanh %147 : vector<4x32xf32>
    %150 = arith.mulf %148, %149 : vector<4x32xf32>
    %151 = arith.maximumf %129, %150 : vector<4x32xf32>
    %152 = vector.extract_strided_slice %130 {offsets = [4, 0], sizes = [4, 128], strides = [1, 1]} : vector<8x128xf32> to vector<4x128xf32>
    %cst_38 = arith.constant dense<0.000000e+00> : vector<4x256xf32>
    %153 = tpu.matmul %150, %37, %cst_38 {dimension_numbers = #tpu.dot_dimension_numbers<[1], [0], [0], [1], [0, 0, 1, 1], [], []>} : vector<4x32xf32>, vector<32x256xf32>, vector<4x256xf32> -> vector<4x256xf32>
    %154 = vector.extract_strided_slice %153 {offsets = [0, 0], sizes = [4, 128], strides = [1, 1]} : vector<4x256xf32> to vector<4x128xf32>
    %155 = vector.extract_strided_slice %153 {offsets = [0, 128], sizes = [4, 128], strides = [1, 1]} : vector<4x256xf32> to vector<4x128xf32>
    %156 = arith.select %40, %154, %155 : vector<4x128xi1>, vector<4x128xf32>
    %157 = arith.addf %152, %156 : vector<4x128xf32>
    %158 = math.tanh %157 : vector<4x128xf32>
    %cst_39 = arith.constant 5.000000e-01 : f32
    %159 = vector.broadcast %cst_39 : f32 to vector<4x128xf32>
    %160 = arith.mulf %159, %158 : vector<4x128xf32>
    %cst_40 = arith.constant 5.000000e-01 : f32
    %161 = vector.broadcast %cst_40 : f32 to vector<4x128xf32>
    %162 = arith.addf %160, %161 : vector<4x128xf32>
    %163 = vector.extract_strided_slice %162 {offsets = [0, 32], sizes = [4, 32], strides = [1, 1]} : vector<4x128xf32> to vector<4x32xf32>
    %164 = arith.mulf %163, %147 : vector<4x32xf32>
    %165 = vector.extract_strided_slice %162 {offsets = [0, 0], sizes = [4, 32], strides = [1, 1]} : vector<4x128xf32> to vector<4x32xf32>
    %166 = vector.extract_strided_slice %158 {offsets = [0, 64], sizes = [4, 32], strides = [1, 1]} : vector<4x128xf32> to vector<4x32xf32>
    %167 = arith.mulf %165, %166 : vector<4x32xf32>
    %168 = arith.addf %164, %167 : vector<4x32xf32>
    %169 = vector.extract_strided_slice %162 {offsets = [0, 96], sizes = [4, 32], strides = [1, 1]} : vector<4x128xf32> to vector<4x32xf32>
    %170 = math.tanh %168 : vector<4x32xf32>
    %171 = arith.mulf %169, %170 : vector<4x32xf32>
    %172 = arith.maximumf %151, %171 : vector<4x32xf32>
    %c24 = arith.constant 24 : index
    %c0_41 = arith.constant 0 : index
    %173 = vector.load %arg3[%c24, %c0_41] : memref<128x128xf32, #tpu.memory_space<vmem>>, vector<8x128xf32>
    %174 = vector.extract_strided_slice %173 {offsets = [0, 0], sizes = [4, 128], strides = [1, 1]} : vector<8x128xf32> to vector<4x128xf32>
    %cst_42 = arith.constant dense<0.000000e+00> : vector<4x256xf32>
    %175 = tpu.matmul %171, %37, %cst_42 {dimension_numbers = #tpu.dot_dimension_numbers<[1], [0], [0], [1], [0, 0, 1, 1], [], []>} : vector<4x32xf32>, vector<32x256xf32>, vector<4x256xf32> -> vector<4x256xf32>
    %176 = vector.extract_strided_slice %175 {offsets = [0, 0], sizes = [4, 128], strides = [1, 1]} : vector<4x256xf32> to vector<4x128xf32>
    %177 = vector.extract_strided_slice %175 {offsets = [0, 128], sizes = [4, 128], strides = [1, 1]} : vector<4x256xf32> to vector<4x128xf32>
    %178 = arith.select %40, %176, %177 : vector<4x128xi1>, vector<4x128xf32>
    %179 = arith.addf %174, %178 : vector<4x128xf32>
    %180 = math.tanh %179 : vector<4x128xf32>
    %cst_43 = arith.constant 5.000000e-01 : f32
    %181 = vector.broadcast %cst_43 : f32 to vector<4x128xf32>
    %182 = arith.mulf %181, %180 : vector<4x128xf32>
    %cst_44 = arith.constant 5.000000e-01 : f32
    %183 = vector.broadcast %cst_44 : f32 to vector<4x128xf32>
    %184 = arith.addf %182, %183 : vector<4x128xf32>
    %185 = vector.extract_strided_slice %184 {offsets = [0, 32], sizes = [4, 32], strides = [1, 1]} : vector<4x128xf32> to vector<4x32xf32>
    %186 = arith.mulf %185, %168 : vector<4x32xf32>
    %187 = vector.extract_strided_slice %184 {offsets = [0, 0], sizes = [4, 32], strides = [1, 1]} : vector<4x128xf32> to vector<4x32xf32>
    %188 = vector.extract_strided_slice %180 {offsets = [0, 64], sizes = [4, 32], strides = [1, 1]} : vector<4x128xf32> to vector<4x32xf32>
    %189 = arith.mulf %187, %188 : vector<4x32xf32>
    %190 = arith.addf %186, %189 : vector<4x32xf32>
    %191 = vector.extract_strided_slice %184 {offsets = [0, 96], sizes = [4, 32], strides = [1, 1]} : vector<4x128xf32> to vector<4x32xf32>
    %192 = math.tanh %190 : vector<4x32xf32>
    %193 = arith.mulf %191, %192 : vector<4x32xf32>
    %194 = arith.maximumf %172, %193 : vector<4x32xf32>
    %195 = vector.extract_strided_slice %173 {offsets = [4, 0], sizes = [4, 128], strides = [1, 1]} : vector<8x128xf32> to vector<4x128xf32>
    %cst_45 = arith.constant dense<0.000000e+00> : vector<4x256xf32>
    %196 = tpu.matmul %193, %37, %cst_45 {dimension_numbers = #tpu.dot_dimension_numbers<[1], [0], [0], [1], [0, 0, 1, 1], [], []>} : vector<4x32xf32>, vector<32x256xf32>, vector<4x256xf32> -> vector<4x256xf32>
    %197 = vector.extract_strided_slice %196 {offsets = [0, 0], sizes = [4, 128], strides = [1, 1]} : vector<4x256xf32> to vector<4x128xf32>
    %198 = vector.extract_strided_slice %196 {offsets = [0, 128], sizes = [4, 128], strides = [1, 1]} : vector<4x256xf32> to vector<4x128xf32>
    %199 = arith.select %40, %197, %198 : vector<4x128xi1>, vector<4x128xf32>
    %200 = arith.addf %195, %199 : vector<4x128xf32>
    %201 = math.tanh %200 : vector<4x128xf32>
    %cst_46 = arith.constant 5.000000e-01 : f32
    %202 = vector.broadcast %cst_46 : f32 to vector<4x128xf32>
    %203 = arith.mulf %202, %201 : vector<4x128xf32>
    %cst_47 = arith.constant 5.000000e-01 : f32
    %204 = vector.broadcast %cst_47 : f32 to vector<4x128xf32>
    %205 = arith.addf %203, %204 : vector<4x128xf32>
    %206 = vector.extract_strided_slice %205 {offsets = [0, 32], sizes = [4, 32], strides = [1, 1]} : vector<4x128xf32> to vector<4x32xf32>
    %207 = arith.mulf %206, %190 : vector<4x32xf32>
    %208 = vector.extract_strided_slice %205 {offsets = [0, 0], sizes = [4, 32], strides = [1, 1]} : vector<4x128xf32> to vector<4x32xf32>
    %209 = vector.extract_strided_slice %201 {offsets = [0, 64], sizes = [4, 32], strides = [1, 1]} : vector<4x128xf32> to vector<4x32xf32>
    %210 = arith.mulf %208, %209 : vector<4x32xf32>
    %211 = arith.addf %207, %210 : vector<4x32xf32>
    %212 = vector.extract_strided_slice %205 {offsets = [0, 96], sizes = [4, 32], strides = [1, 1]} : vector<4x128xf32> to vector<4x32xf32>
    %213 = math.tanh %211 : vector<4x32xf32>
    %214 = arith.mulf %212, %213 : vector<4x32xf32>
    %215 = arith.maximumf %194, %214 : vector<4x32xf32>
    %c32_48 = arith.constant 32 : index
    %c0_49 = arith.constant 0 : index
    %216 = vector.load %arg3[%c32_48, %c0_49] : memref<128x128xf32, #tpu.memory_space<vmem>>, vector<8x128xf32>
    %217 = vector.extract_strided_slice %216 {offsets = [0, 0], sizes = [4, 128], strides = [1, 1]} : vector<8x128xf32> to vector<4x128xf32>
    %cst_50 = arith.constant dense<0.000000e+00> : vector<4x256xf32>
    %218 = tpu.matmul %214, %37, %cst_50 {dimension_numbers = #tpu.dot_dimension_numbers<[1], [0], [0], [1], [0, 0, 1, 1], [], []>} : vector<4x32xf32>, vector<32x256xf32>, vector<4x256xf32> -> vector<4x256xf32>
    %219 = vector.extract_strided_slice %218 {offsets = [0, 0], sizes = [4, 128], strides = [1, 1]} : vector<4x256xf32> to vector<4x128xf32>
    %220 = vector.extract_strided_slice %218 {offsets = [0, 128], sizes = [4, 128], strides = [1, 1]} : vector<4x256xf32> to vector<4x128xf32>
    %221 = arith.select %40, %219, %220 : vector<4x128xi1>, vector<4x128xf32>
    %222 = arith.addf %217, %221 : vector<4x128xf32>
    %223 = math.tanh %222 : vector<4x128xf32>
    %cst_51 = arith.constant 5.000000e-01 : f32
    %224 = vector.broadcast %cst_51 : f32 to vector<4x128xf32>
    %225 = arith.mulf %224, %223 : vector<4x128xf32>
    %cst_52 = arith.constant 5.000000e-01 : f32
    %226 = vector.broadcast %cst_52 : f32 to vector<4x128xf32>
    %227 = arith.addf %225, %226 : vector<4x128xf32>
    %228 = vector.extract_strided_slice %227 {offsets = [0, 32], sizes = [4, 32], strides = [1, 1]} : vector<4x128xf32> to vector<4x32xf32>
    %229 = arith.mulf %228, %211 : vector<4x32xf32>
    %230 = vector.extract_strided_slice %227 {offsets = [0, 0], sizes = [4, 32], strides = [1, 1]} : vector<4x128xf32> to vector<4x32xf32>
    %231 = vector.extract_strided_slice %223 {offsets = [0, 64], sizes = [4, 32], strides = [1, 1]} : vector<4x128xf32> to vector<4x32xf32>
    %232 = arith.mulf %230, %231 : vector<4x32xf32>
    %233 = arith.addf %229, %232 : vector<4x32xf32>
    %234 = vector.extract_strided_slice %227 {offsets = [0, 96], sizes = [4, 32], strides = [1, 1]} : vector<4x128xf32> to vector<4x32xf32>
    %235 = math.tanh %233 : vector<4x32xf32>
    %236 = arith.mulf %234, %235 : vector<4x32xf32>
    %237 = arith.maximumf %215, %236 : vector<4x32xf32>
    %238 = vector.extract_strided_slice %216 {offsets = [4, 0], sizes = [4, 128], strides = [1, 1]} : vector<8x128xf32> to vector<4x128xf32>
    %cst_53 = arith.constant dense<0.000000e+00> : vector<4x256xf32>
    %239 = tpu.matmul %236, %37, %cst_53 {dimension_numbers = #tpu.dot_dimension_numbers<[1], [0], [0], [1], [0, 0, 1, 1], [], []>} : vector<4x32xf32>, vector<32x256xf32>, vector<4x256xf32> -> vector<4x256xf32>
    %240 = vector.extract_strided_slice %239 {offsets = [0, 0], sizes = [4, 128], strides = [1, 1]} : vector<4x256xf32> to vector<4x128xf32>
    %241 = vector.extract_strided_slice %239 {offsets = [0, 128], sizes = [4, 128], strides = [1, 1]} : vector<4x256xf32> to vector<4x128xf32>
    %242 = arith.select %40, %240, %241 : vector<4x128xi1>, vector<4x128xf32>
    %243 = arith.addf %238, %242 : vector<4x128xf32>
    %244 = math.tanh %243 : vector<4x128xf32>
    %cst_54 = arith.constant 5.000000e-01 : f32
    %245 = vector.broadcast %cst_54 : f32 to vector<4x128xf32>
    %246 = arith.mulf %245, %244 : vector<4x128xf32>
    %cst_55 = arith.constant 5.000000e-01 : f32
    %247 = vector.broadcast %cst_55 : f32 to vector<4x128xf32>
    %248 = arith.addf %246, %247 : vector<4x128xf32>
    %249 = vector.extract_strided_slice %248 {offsets = [0, 32], sizes = [4, 32], strides = [1, 1]} : vector<4x128xf32> to vector<4x32xf32>
    %250 = arith.mulf %249, %233 : vector<4x32xf32>
    %251 = vector.extract_strided_slice %248 {offsets = [0, 0], sizes = [4, 32], strides = [1, 1]} : vector<4x128xf32> to vector<4x32xf32>
    %252 = vector.extract_strided_slice %244 {offsets = [0, 64], sizes = [4, 32], strides = [1, 1]} : vector<4x128xf32> to vector<4x32xf32>
    %253 = arith.mulf %251, %252 : vector<4x32xf32>
    %254 = arith.addf %250, %253 : vector<4x32xf32>
    %255 = vector.extract_strided_slice %248 {offsets = [0, 96], sizes = [4, 32], strides = [1, 1]} : vector<4x128xf32> to vector<4x32xf32>
    %256 = math.tanh %254 : vector<4x32xf32>
    %257 = arith.mulf %255, %256 : vector<4x32xf32>
    %258 = arith.maximumf %237, %257 : vector<4x32xf32>
    %c40 = arith.constant 40 : index
    %c0_56 = arith.constant 0 : index
    %259 = vector.load %arg3[%c40, %c0_56] : memref<128x128xf32, #tpu.memory_space<vmem>>, vector<8x128xf32>
    %260 = vector.extract_strided_slice %259 {offsets = [0, 0], sizes = [4, 128], strides = [1, 1]} : vector<8x128xf32> to vector<4x128xf32>
    %cst_57 = arith.constant dense<0.000000e+00> : vector<4x256xf32>
    %261 = tpu.matmul %257, %37, %cst_57 {dimension_numbers = #tpu.dot_dimension_numbers<[1], [0], [0], [1], [0, 0, 1, 1], [], []>} : vector<4x32xf32>, vector<32x256xf32>, vector<4x256xf32> -> vector<4x256xf32>
    %262 = vector.extract_strided_slice %261 {offsets = [0, 0], sizes = [4, 128], strides = [1, 1]} : vector<4x256xf32> to vector<4x128xf32>
    %263 = vector.extract_strided_slice %261 {offsets = [0, 128], sizes = [4, 128], strides = [1, 1]} : vector<4x256xf32> to vector<4x128xf32>
    %264 = arith.select %40, %262, %263 : vector<4x128xi1>, vector<4x128xf32>
    %265 = arith.addf %260, %264 : vector<4x128xf32>
    %266 = math.tanh %265 : vector<4x128xf32>
    %cst_58 = arith.constant 5.000000e-01 : f32
    %267 = vector.broadcast %cst_58 : f32 to vector<4x128xf32>
    %268 = arith.mulf %267, %266 : vector<4x128xf32>
    %cst_59 = arith.constant 5.000000e-01 : f32
    %269 = vector.broadcast %cst_59 : f32 to vector<4x128xf32>
    %270 = arith.addf %268, %269 : vector<4x128xf32>
    %271 = vector.extract_strided_slice %270 {offsets = [0, 32], sizes = [4, 32], strides = [1, 1]} : vector<4x128xf32> to vector<4x32xf32>
    %272 = arith.mulf %271, %254 : vector<4x32xf32>
    %273 = vector.extract_strided_slice %270 {offsets = [0, 0], sizes = [4, 32], strides = [1, 1]} : vector<4x128xf32> to vector<4x32xf32>
    %274 = vector.extract_strided_slice %266 {offsets = [0, 64], sizes = [4, 32], strides = [1, 1]} : vector<4x128xf32> to vector<4x32xf32>
    %275 = arith.mulf %273, %274 : vector<4x32xf32>
    %276 = arith.addf %272, %275 : vector<4x32xf32>
    %277 = vector.extract_strided_slice %270 {offsets = [0, 96], sizes = [4, 32], strides = [1, 1]} : vector<4x128xf32> to vector<4x32xf32>
    %278 = math.tanh %276 : vector<4x32xf32>
    %279 = arith.mulf %277, %278 : vector<4x32xf32>
    %280 = arith.maximumf %258, %279 : vector<4x32xf32>
    %281 = vector.extract_strided_slice %259 {offsets = [4, 0], sizes = [4, 128], strides = [1, 1]} : vector<8x128xf32> to vector<4x128xf32>
    %cst_60 = arith.constant dense<0.000000e+00> : vector<4x256xf32>
    %282 = tpu.matmul %279, %37, %cst_60 {dimension_numbers = #tpu.dot_dimension_numbers<[1], [0], [0], [1], [0, 0, 1, 1], [], []>} : vector<4x32xf32>, vector<32x256xf32>, vector<4x256xf32> -> vector<4x256xf32>
    %283 = vector.extract_strided_slice %282 {offsets = [0, 0], sizes = [4, 128], strides = [1, 1]} : vector<4x256xf32> to vector<4x128xf32>
    %284 = vector.extract_strided_slice %282 {offsets = [0, 128], sizes = [4, 128], strides = [1, 1]} : vector<4x256xf32> to vector<4x128xf32>
    %285 = arith.select %40, %283, %284 : vector<4x128xi1>, vector<4x128xf32>
    %286 = arith.addf %281, %285 : vector<4x128xf32>
    %287 = math.tanh %286 : vector<4x128xf32>
    %cst_61 = arith.constant 5.000000e-01 : f32
    %288 = vector.broadcast %cst_61 : f32 to vector<4x128xf32>
    %289 = arith.mulf %288, %287 : vector<4x128xf32>
    %cst_62 = arith.constant 5.000000e-01 : f32
    %290 = vector.broadcast %cst_62 : f32 to vector<4x128xf32>
    %291 = arith.addf %289, %290 : vector<4x128xf32>
    %292 = vector.extract_strided_slice %291 {offsets = [0, 32], sizes = [4, 32], strides = [1, 1]} : vector<4x128xf32> to vector<4x32xf32>
    %293 = arith.mulf %292, %276 : vector<4x32xf32>
    %294 = vector.extract_strided_slice %291 {offsets = [0, 0], sizes = [4, 32], strides = [1, 1]} : vector<4x128xf32> to vector<4x32xf32>
    %295 = vector.extract_strided_slice %287 {offsets = [0, 64], sizes = [4, 32], strides = [1, 1]} : vector<4x128xf32> to vector<4x32xf32>
    %296 = arith.mulf %294, %295 : vector<4x32xf32>
    %297 = arith.addf %293, %296 : vector<4x32xf32>
    %298 = vector.extract_strided_slice %291 {offsets = [0, 96], sizes = [4, 32], strides = [1, 1]} : vector<4x128xf32> to vector<4x32xf32>
    %299 = math.tanh %297 : vector<4x32xf32>
    %300 = arith.mulf %298, %299 : vector<4x32xf32>
    %301 = arith.maximumf %280, %300 : vector<4x32xf32>
    %c48 = arith.constant 48 : index
    %c0_63 = arith.constant 0 : index
    %302 = vector.load %arg3[%c48, %c0_63] : memref<128x128xf32, #tpu.memory_space<vmem>>, vector<8x128xf32>
    %303 = vector.extract_strided_slice %302 {offsets = [0, 0], sizes = [4, 128], strides = [1, 1]} : vector<8x128xf32> to vector<4x128xf32>
    %cst_64 = arith.constant dense<0.000000e+00> : vector<4x256xf32>
    %304 = tpu.matmul %300, %37, %cst_64 {dimension_numbers = #tpu.dot_dimension_numbers<[1], [0], [0], [1], [0, 0, 1, 1], [], []>} : vector<4x32xf32>, vector<32x256xf32>, vector<4x256xf32> -> vector<4x256xf32>
    %305 = vector.extract_strided_slice %304 {offsets = [0, 0], sizes = [4, 128], strides = [1, 1]} : vector<4x256xf32> to vector<4x128xf32>
    %306 = vector.extract_strided_slice %304 {offsets = [0, 128], sizes = [4, 128], strides = [1, 1]} : vector<4x256xf32> to vector<4x128xf32>
    %307 = arith.select %40, %305, %306 : vector<4x128xi1>, vector<4x128xf32>
    %308 = arith.addf %303, %307 : vector<4x128xf32>
    %309 = math.tanh %308 : vector<4x128xf32>
    %cst_65 = arith.constant 5.000000e-01 : f32
    %310 = vector.broadcast %cst_65 : f32 to vector<4x128xf32>
    %311 = arith.mulf %310, %309 : vector<4x128xf32>
    %cst_66 = arith.constant 5.000000e-01 : f32
    %312 = vector.broadcast %cst_66 : f32 to vector<4x128xf32>
    %313 = arith.addf %311, %312 : vector<4x128xf32>
    %314 = vector.extract_strided_slice %313 {offsets = [0, 32], sizes = [4, 32], strides = [1, 1]} : vector<4x128xf32> to vector<4x32xf32>
    %315 = arith.mulf %314, %297 : vector<4x32xf32>
    %316 = vector.extract_strided_slice %313 {offsets = [0, 0], sizes = [4, 32], strides = [1, 1]} : vector<4x128xf32> to vector<4x32xf32>
    %317 = vector.extract_strided_slice %309 {offsets = [0, 64], sizes = [4, 32], strides = [1, 1]} : vector<4x128xf32> to vector<4x32xf32>
    %318 = arith.mulf %316, %317 : vector<4x32xf32>
    %319 = arith.addf %315, %318 : vector<4x32xf32>
    %320 = vector.extract_strided_slice %313 {offsets = [0, 96], sizes = [4, 32], strides = [1, 1]} : vector<4x128xf32> to vector<4x32xf32>
    %321 = math.tanh %319 : vector<4x32xf32>
    %322 = arith.mulf %320, %321 : vector<4x32xf32>
    %323 = arith.maximumf %301, %322 : vector<4x32xf32>
    %324 = vector.extract_strided_slice %302 {offsets = [4, 0], sizes = [4, 128], strides = [1, 1]} : vector<8x128xf32> to vector<4x128xf32>
    %cst_67 = arith.constant dense<0.000000e+00> : vector<4x256xf32>
    %325 = tpu.matmul %322, %37, %cst_67 {dimension_numbers = #tpu.dot_dimension_numbers<[1], [0], [0], [1], [0, 0, 1, 1], [], []>} : vector<4x32xf32>, vector<32x256xf32>, vector<4x256xf32> -> vector<4x256xf32>
    %326 = vector.extract_strided_slice %325 {offsets = [0, 0], sizes = [4, 128], strides = [1, 1]} : vector<4x256xf32> to vector<4x128xf32>
    %327 = vector.extract_strided_slice %325 {offsets = [0, 128], sizes = [4, 128], strides = [1, 1]} : vector<4x256xf32> to vector<4x128xf32>
    %328 = arith.select %40, %326, %327 : vector<4x128xi1>, vector<4x128xf32>
    %329 = arith.addf %324, %328 : vector<4x128xf32>
    %330 = math.tanh %329 : vector<4x128xf32>
    %cst_68 = arith.constant 5.000000e-01 : f32
    %331 = vector.broadcast %cst_68 : f32 to vector<4x128xf32>
    %332 = arith.mulf %331, %330 : vector<4x128xf32>
    %cst_69 = arith.constant 5.000000e-01 : f32
    %333 = vector.broadcast %cst_69 : f32 to vector<4x128xf32>
    %334 = arith.addf %332, %333 : vector<4x128xf32>
    %335 = vector.extract_strided_slice %334 {offsets = [0, 32], sizes = [4, 32], strides = [1, 1]} : vector<4x128xf32> to vector<4x32xf32>
    %336 = arith.mulf %335, %319 : vector<4x32xf32>
    %337 = vector.extract_strided_slice %334 {offsets = [0, 0], sizes = [4, 32], strides = [1, 1]} : vector<4x128xf32> to vector<4x32xf32>
    %338 = vector.extract_strided_slice %330 {offsets = [0, 64], sizes = [4, 32], strides = [1, 1]} : vector<4x128xf32> to vector<4x32xf32>
    %339 = arith.mulf %337, %338 : vector<4x32xf32>
    %340 = arith.addf %336, %339 : vector<4x32xf32>
    %341 = vector.extract_strided_slice %334 {offsets = [0, 96], sizes = [4, 32], strides = [1, 1]} : vector<4x128xf32> to vector<4x32xf32>
    %342 = math.tanh %340 : vector<4x32xf32>
    %343 = arith.mulf %341, %342 : vector<4x32xf32>
    %344 = arith.maximumf %323, %343 : vector<4x32xf32>
    %c56 = arith.constant 56 : index
    %c0_70 = arith.constant 0 : index
    %345 = vector.load %arg3[%c56, %c0_70] : memref<128x128xf32, #tpu.memory_space<vmem>>, vector<8x128xf32>
    %346 = vector.extract_strided_slice %345 {offsets = [0, 0], sizes = [4, 128], strides = [1, 1]} : vector<8x128xf32> to vector<4x128xf32>
    %cst_71 = arith.constant dense<0.000000e+00> : vector<4x256xf32>
    %347 = tpu.matmul %343, %37, %cst_71 {dimension_numbers = #tpu.dot_dimension_numbers<[1], [0], [0], [1], [0, 0, 1, 1], [], []>} : vector<4x32xf32>, vector<32x256xf32>, vector<4x256xf32> -> vector<4x256xf32>
    %348 = vector.extract_strided_slice %347 {offsets = [0, 0], sizes = [4, 128], strides = [1, 1]} : vector<4x256xf32> to vector<4x128xf32>
    %349 = vector.extract_strided_slice %347 {offsets = [0, 128], sizes = [4, 128], strides = [1, 1]} : vector<4x256xf32> to vector<4x128xf32>
    %350 = arith.select %40, %348, %349 : vector<4x128xi1>, vector<4x128xf32>
    %351 = arith.addf %346, %350 : vector<4x128xf32>
    %352 = math.tanh %351 : vector<4x128xf32>
    %cst_72 = arith.constant 5.000000e-01 : f32
    %353 = vector.broadcast %cst_72 : f32 to vector<4x128xf32>
    %354 = arith.mulf %353, %352 : vector<4x128xf32>
    %cst_73 = arith.constant 5.000000e-01 : f32
    %355 = vector.broadcast %cst_73 : f32 to vector<4x128xf32>
    %356 = arith.addf %354, %355 : vector<4x128xf32>
    %357 = vector.extract_strided_slice %356 {offsets = [0, 32], sizes = [4, 32], strides = [1, 1]} : vector<4x128xf32> to vector<4x32xf32>
    %358 = arith.mulf %357, %340 : vector<4x32xf32>
    %359 = vector.extract_strided_slice %356 {offsets = [0, 0], sizes = [4, 32], strides = [1, 1]} : vector<4x128xf32> to vector<4x32xf32>
    %360 = vector.extract_strided_slice %352 {offsets = [0, 64], sizes = [4, 32], strides = [1, 1]} : vector<4x128xf32> to vector<4x32xf32>
    %361 = arith.mulf %359, %360 : vector<4x32xf32>
    %362 = arith.addf %358, %361 : vector<4x32xf32>
    %363 = vector.extract_strided_slice %356 {offsets = [0, 96], sizes = [4, 32], strides = [1, 1]} : vector<4x128xf32> to vector<4x32xf32>
    %364 = math.tanh %362 : vector<4x32xf32>
    %365 = arith.mulf %363, %364 : vector<4x32xf32>
    %366 = arith.maximumf %344, %365 : vector<4x32xf32>
    %367 = vector.extract_strided_slice %345 {offsets = [4, 0], sizes = [4, 128], strides = [1, 1]} : vector<8x128xf32> to vector<4x128xf32>
    %cst_74 = arith.constant dense<0.000000e+00> : vector<4x256xf32>
    %368 = tpu.matmul %365, %37, %cst_74 {dimension_numbers = #tpu.dot_dimension_numbers<[1], [0], [0], [1], [0, 0, 1, 1], [], []>} : vector<4x32xf32>, vector<32x256xf32>, vector<4x256xf32> -> vector<4x256xf32>
    %369 = vector.extract_strided_slice %368 {offsets = [0, 0], sizes = [4, 128], strides = [1, 1]} : vector<4x256xf32> to vector<4x128xf32>
    %370 = vector.extract_strided_slice %368 {offsets = [0, 128], sizes = [4, 128], strides = [1, 1]} : vector<4x256xf32> to vector<4x128xf32>
    %371 = arith.select %40, %369, %370 : vector<4x128xi1>, vector<4x128xf32>
    %372 = arith.addf %367, %371 : vector<4x128xf32>
    %373 = math.tanh %372 : vector<4x128xf32>
    %cst_75 = arith.constant 5.000000e-01 : f32
    %374 = vector.broadcast %cst_75 : f32 to vector<4x128xf32>
    %375 = arith.mulf %374, %373 : vector<4x128xf32>
    %cst_76 = arith.constant 5.000000e-01 : f32
    %376 = vector.broadcast %cst_76 : f32 to vector<4x128xf32>
    %377 = arith.addf %375, %376 : vector<4x128xf32>
    %378 = vector.extract_strided_slice %377 {offsets = [0, 32], sizes = [4, 32], strides = [1, 1]} : vector<4x128xf32> to vector<4x32xf32>
    %379 = arith.mulf %378, %362 : vector<4x32xf32>
    %380 = vector.extract_strided_slice %377 {offsets = [0, 0], sizes = [4, 32], strides = [1, 1]} : vector<4x128xf32> to vector<4x32xf32>
    %381 = vector.extract_strided_slice %373 {offsets = [0, 64], sizes = [4, 32], strides = [1, 1]} : vector<4x128xf32> to vector<4x32xf32>
    %382 = arith.mulf %380, %381 : vector<4x32xf32>
    %383 = arith.addf %379, %382 : vector<4x32xf32>
    %384 = vector.extract_strided_slice %377 {offsets = [0, 96], sizes = [4, 32], strides = [1, 1]} : vector<4x128xf32> to vector<4x32xf32>
    %385 = math.tanh %383 : vector<4x32xf32>
    %386 = arith.mulf %384, %385 : vector<4x32xf32>
    %387 = arith.maximumf %366, %386 : vector<4x32xf32>
    %c64 = arith.constant 64 : index
    %c0_77 = arith.constant 0 : index
    %388 = vector.load %arg3[%c64, %c0_77] : memref<128x128xf32, #tpu.memory_space<vmem>>, vector<8x128xf32>
    %389 = vector.extract_strided_slice %388 {offsets = [0, 0], sizes = [4, 128], strides = [1, 1]} : vector<8x128xf32> to vector<4x128xf32>
    %cst_78 = arith.constant dense<0.000000e+00> : vector<4x256xf32>
    %390 = tpu.matmul %386, %37, %cst_78 {dimension_numbers = #tpu.dot_dimension_numbers<[1], [0], [0], [1], [0, 0, 1, 1], [], []>} : vector<4x32xf32>, vector<32x256xf32>, vector<4x256xf32> -> vector<4x256xf32>
    %391 = vector.extract_strided_slice %390 {offsets = [0, 0], sizes = [4, 128], strides = [1, 1]} : vector<4x256xf32> to vector<4x128xf32>
    %392 = vector.extract_strided_slice %390 {offsets = [0, 128], sizes = [4, 128], strides = [1, 1]} : vector<4x256xf32> to vector<4x128xf32>
    %393 = arith.select %40, %391, %392 : vector<4x128xi1>, vector<4x128xf32>
    %394 = arith.addf %389, %393 : vector<4x128xf32>
    %395 = math.tanh %394 : vector<4x128xf32>
    %cst_79 = arith.constant 5.000000e-01 : f32
    %396 = vector.broadcast %cst_79 : f32 to vector<4x128xf32>
    %397 = arith.mulf %396, %395 : vector<4x128xf32>
    %cst_80 = arith.constant 5.000000e-01 : f32
    %398 = vector.broadcast %cst_80 : f32 to vector<4x128xf32>
    %399 = arith.addf %397, %398 : vector<4x128xf32>
    %400 = vector.extract_strided_slice %399 {offsets = [0, 32], sizes = [4, 32], strides = [1, 1]} : vector<4x128xf32> to vector<4x32xf32>
    %401 = arith.mulf %400, %383 : vector<4x32xf32>
    %402 = vector.extract_strided_slice %399 {offsets = [0, 0], sizes = [4, 32], strides = [1, 1]} : vector<4x128xf32> to vector<4x32xf32>
    %403 = vector.extract_strided_slice %395 {offsets = [0, 64], sizes = [4, 32], strides = [1, 1]} : vector<4x128xf32> to vector<4x32xf32>
    %404 = arith.mulf %402, %403 : vector<4x32xf32>
    %405 = arith.addf %401, %404 : vector<4x32xf32>
    %406 = vector.extract_strided_slice %399 {offsets = [0, 96], sizes = [4, 32], strides = [1, 1]} : vector<4x128xf32> to vector<4x32xf32>
    %407 = math.tanh %405 : vector<4x32xf32>
    %408 = arith.mulf %406, %407 : vector<4x32xf32>
    %409 = arith.maximumf %387, %408 : vector<4x32xf32>
    %410 = vector.extract_strided_slice %388 {offsets = [4, 0], sizes = [4, 128], strides = [1, 1]} : vector<8x128xf32> to vector<4x128xf32>
    %cst_81 = arith.constant dense<0.000000e+00> : vector<4x256xf32>
    %411 = tpu.matmul %408, %37, %cst_81 {dimension_numbers = #tpu.dot_dimension_numbers<[1], [0], [0], [1], [0, 0, 1, 1], [], []>} : vector<4x32xf32>, vector<32x256xf32>, vector<4x256xf32> -> vector<4x256xf32>
    %412 = vector.extract_strided_slice %411 {offsets = [0, 0], sizes = [4, 128], strides = [1, 1]} : vector<4x256xf32> to vector<4x128xf32>
    %413 = vector.extract_strided_slice %411 {offsets = [0, 128], sizes = [4, 128], strides = [1, 1]} : vector<4x256xf32> to vector<4x128xf32>
    %414 = arith.select %40, %412, %413 : vector<4x128xi1>, vector<4x128xf32>
    %415 = arith.addf %410, %414 : vector<4x128xf32>
    %416 = math.tanh %415 : vector<4x128xf32>
    %cst_82 = arith.constant 5.000000e-01 : f32
    %417 = vector.broadcast %cst_82 : f32 to vector<4x128xf32>
    %418 = arith.mulf %417, %416 : vector<4x128xf32>
    %cst_83 = arith.constant 5.000000e-01 : f32
    %419 = vector.broadcast %cst_83 : f32 to vector<4x128xf32>
    %420 = arith.addf %418, %419 : vector<4x128xf32>
    %421 = vector.extract_strided_slice %420 {offsets = [0, 32], sizes = [4, 32], strides = [1, 1]} : vector<4x128xf32> to vector<4x32xf32>
    %422 = arith.mulf %421, %405 : vector<4x32xf32>
    %423 = vector.extract_strided_slice %420 {offsets = [0, 0], sizes = [4, 32], strides = [1, 1]} : vector<4x128xf32> to vector<4x32xf32>
    %424 = vector.extract_strided_slice %416 {offsets = [0, 64], sizes = [4, 32], strides = [1, 1]} : vector<4x128xf32> to vector<4x32xf32>
    %425 = arith.mulf %423, %424 : vector<4x32xf32>
    %426 = arith.addf %422, %425 : vector<4x32xf32>
    %427 = vector.extract_strided_slice %420 {offsets = [0, 96], sizes = [4, 32], strides = [1, 1]} : vector<4x128xf32> to vector<4x32xf32>
    %428 = math.tanh %426 : vector<4x32xf32>
    %429 = arith.mulf %427, %428 : vector<4x32xf32>
    %430 = arith.maximumf %409, %429 : vector<4x32xf32>
    %c72 = arith.constant 72 : index
    %c0_84 = arith.constant 0 : index
    %431 = vector.load %arg3[%c72, %c0_84] : memref<128x128xf32, #tpu.memory_space<vmem>>, vector<8x128xf32>
    %432 = vector.extract_strided_slice %431 {offsets = [0, 0], sizes = [4, 128], strides = [1, 1]} : vector<8x128xf32> to vector<4x128xf32>
    %cst_85 = arith.constant dense<0.000000e+00> : vector<4x256xf32>
    %433 = tpu.matmul %429, %37, %cst_85 {dimension_numbers = #tpu.dot_dimension_numbers<[1], [0], [0], [1], [0, 0, 1, 1], [], []>} : vector<4x32xf32>, vector<32x256xf32>, vector<4x256xf32> -> vector<4x256xf32>
    %434 = vector.extract_strided_slice %433 {offsets = [0, 0], sizes = [4, 128], strides = [1, 1]} : vector<4x256xf32> to vector<4x128xf32>
    %435 = vector.extract_strided_slice %433 {offsets = [0, 128], sizes = [4, 128], strides = [1, 1]} : vector<4x256xf32> to vector<4x128xf32>
    %436 = arith.select %40, %434, %435 : vector<4x128xi1>, vector<4x128xf32>
    %437 = arith.addf %432, %436 : vector<4x128xf32>
    %438 = math.tanh %437 : vector<4x128xf32>
    %cst_86 = arith.constant 5.000000e-01 : f32
    %439 = vector.broadcast %cst_86 : f32 to vector<4x128xf32>
    %440 = arith.mulf %439, %438 : vector<4x128xf32>
    %cst_87 = arith.constant 5.000000e-01 : f32
    %441 = vector.broadcast %cst_87 : f32 to vector<4x128xf32>
    %442 = arith.addf %440, %441 : vector<4x128xf32>
    %443 = vector.extract_strided_slice %442 {offsets = [0, 32], sizes = [4, 32], strides = [1, 1]} : vector<4x128xf32> to vector<4x32xf32>
    %444 = arith.mulf %443, %426 : vector<4x32xf32>
    %445 = vector.extract_strided_slice %442 {offsets = [0, 0], sizes = [4, 32], strides = [1, 1]} : vector<4x128xf32> to vector<4x32xf32>
    %446 = vector.extract_strided_slice %438 {offsets = [0, 64], sizes = [4, 32], strides = [1, 1]} : vector<4x128xf32> to vector<4x32xf32>
    %447 = arith.mulf %445, %446 : vector<4x32xf32>
    %448 = arith.addf %444, %447 : vector<4x32xf32>
    %449 = vector.extract_strided_slice %442 {offsets = [0, 96], sizes = [4, 32], strides = [1, 1]} : vector<4x128xf32> to vector<4x32xf32>
    %450 = math.tanh %448 : vector<4x32xf32>
    %451 = arith.mulf %449, %450 : vector<4x32xf32>
    %452 = arith.maximumf %430, %451 : vector<4x32xf32>
    %453 = vector.extract_strided_slice %431 {offsets = [4, 0], sizes = [4, 128], strides = [1, 1]} : vector<8x128xf32> to vector<4x128xf32>
    %cst_88 = arith.constant dense<0.000000e+00> : vector<4x256xf32>
    %454 = tpu.matmul %451, %37, %cst_88 {dimension_numbers = #tpu.dot_dimension_numbers<[1], [0], [0], [1], [0, 0, 1, 1], [], []>} : vector<4x32xf32>, vector<32x256xf32>, vector<4x256xf32> -> vector<4x256xf32>
    %455 = vector.extract_strided_slice %454 {offsets = [0, 0], sizes = [4, 128], strides = [1, 1]} : vector<4x256xf32> to vector<4x128xf32>
    %456 = vector.extract_strided_slice %454 {offsets = [0, 128], sizes = [4, 128], strides = [1, 1]} : vector<4x256xf32> to vector<4x128xf32>
    %457 = arith.select %40, %455, %456 : vector<4x128xi1>, vector<4x128xf32>
    %458 = arith.addf %453, %457 : vector<4x128xf32>
    %459 = math.tanh %458 : vector<4x128xf32>
    %cst_89 = arith.constant 5.000000e-01 : f32
    %460 = vector.broadcast %cst_89 : f32 to vector<4x128xf32>
    %461 = arith.mulf %460, %459 : vector<4x128xf32>
    %cst_90 = arith.constant 5.000000e-01 : f32
    %462 = vector.broadcast %cst_90 : f32 to vector<4x128xf32>
    %463 = arith.addf %461, %462 : vector<4x128xf32>
    %464 = vector.extract_strided_slice %463 {offsets = [0, 32], sizes = [4, 32], strides = [1, 1]} : vector<4x128xf32> to vector<4x32xf32>
    %465 = arith.mulf %464, %448 : vector<4x32xf32>
    %466 = vector.extract_strided_slice %463 {offsets = [0, 0], sizes = [4, 32], strides = [1, 1]} : vector<4x128xf32> to vector<4x32xf32>
    %467 = vector.extract_strided_slice %459 {offsets = [0, 64], sizes = [4, 32], strides = [1, 1]} : vector<4x128xf32> to vector<4x32xf32>
    %468 = arith.mulf %466, %467 : vector<4x32xf32>
    %469 = arith.addf %465, %468 : vector<4x32xf32>
    %470 = vector.extract_strided_slice %463 {offsets = [0, 96], sizes = [4, 32], strides = [1, 1]} : vector<4x128xf32> to vector<4x32xf32>
    %471 = math.tanh %469 : vector<4x32xf32>
    %472 = arith.mulf %470, %471 : vector<4x32xf32>
    %473 = arith.maximumf %452, %472 : vector<4x32xf32>
    %c80 = arith.constant 80 : index
    %c0_91 = arith.constant 0 : index
    %474 = vector.load %arg3[%c80, %c0_91] : memref<128x128xf32, #tpu.memory_space<vmem>>, vector<8x128xf32>
    %475 = vector.extract_strided_slice %474 {offsets = [0, 0], sizes = [4, 128], strides = [1, 1]} : vector<8x128xf32> to vector<4x128xf32>
    %cst_92 = arith.constant dense<0.000000e+00> : vector<4x256xf32>
    %476 = tpu.matmul %472, %37, %cst_92 {dimension_numbers = #tpu.dot_dimension_numbers<[1], [0], [0], [1], [0, 0, 1, 1], [], []>} : vector<4x32xf32>, vector<32x256xf32>, vector<4x256xf32> -> vector<4x256xf32>
    %477 = vector.extract_strided_slice %476 {offsets = [0, 0], sizes = [4, 128], strides = [1, 1]} : vector<4x256xf32> to vector<4x128xf32>
    %478 = vector.extract_strided_slice %476 {offsets = [0, 128], sizes = [4, 128], strides = [1, 1]} : vector<4x256xf32> to vector<4x128xf32>
    %479 = arith.select %40, %477, %478 : vector<4x128xi1>, vector<4x128xf32>
    %480 = arith.addf %475, %479 : vector<4x128xf32>
    %481 = math.tanh %480 : vector<4x128xf32>
    %cst_93 = arith.constant 5.000000e-01 : f32
    %482 = vector.broadcast %cst_93 : f32 to vector<4x128xf32>
    %483 = arith.mulf %482, %481 : vector<4x128xf32>
    %cst_94 = arith.constant 5.000000e-01 : f32
    %484 = vector.broadcast %cst_94 : f32 to vector<4x128xf32>
    %485 = arith.addf %483, %484 : vector<4x128xf32>
    %486 = vector.extract_strided_slice %485 {offsets = [0, 32], sizes = [4, 32], strides = [1, 1]} : vector<4x128xf32> to vector<4x32xf32>
    %487 = arith.mulf %486, %469 : vector<4x32xf32>
    %488 = vector.extract_strided_slice %485 {offsets = [0, 0], sizes = [4, 32], strides = [1, 1]} : vector<4x128xf32> to vector<4x32xf32>
    %489 = vector.extract_strided_slice %481 {offsets = [0, 64], sizes = [4, 32], strides = [1, 1]} : vector<4x128xf32> to vector<4x32xf32>
    %490 = arith.mulf %488, %489 : vector<4x32xf32>
    %491 = arith.addf %487, %490 : vector<4x32xf32>
    %492 = vector.extract_strided_slice %485 {offsets = [0, 96], sizes = [4, 32], strides = [1, 1]} : vector<4x128xf32> to vector<4x32xf32>
    %493 = math.tanh %491 : vector<4x32xf32>
    %494 = arith.mulf %492, %493 : vector<4x32xf32>
    %495 = arith.maximumf %473, %494 : vector<4x32xf32>
    %496 = vector.extract_strided_slice %474 {offsets = [4, 0], sizes = [4, 128], strides = [1, 1]} : vector<8x128xf32> to vector<4x128xf32>
    %cst_95 = arith.constant dense<0.000000e+00> : vector<4x256xf32>
    %497 = tpu.matmul %494, %37, %cst_95 {dimension_numbers = #tpu.dot_dimension_numbers<[1], [0], [0], [1], [0, 0, 1, 1], [], []>} : vector<4x32xf32>, vector<32x256xf32>, vector<4x256xf32> -> vector<4x256xf32>
    %498 = vector.extract_strided_slice %497 {offsets = [0, 0], sizes = [4, 128], strides = [1, 1]} : vector<4x256xf32> to vector<4x128xf32>
    %499 = vector.extract_strided_slice %497 {offsets = [0, 128], sizes = [4, 128], strides = [1, 1]} : vector<4x256xf32> to vector<4x128xf32>
    %500 = arith.select %40, %498, %499 : vector<4x128xi1>, vector<4x128xf32>
    %501 = arith.addf %496, %500 : vector<4x128xf32>
    %502 = math.tanh %501 : vector<4x128xf32>
    %cst_96 = arith.constant 5.000000e-01 : f32
    %503 = vector.broadcast %cst_96 : f32 to vector<4x128xf32>
    %504 = arith.mulf %503, %502 : vector<4x128xf32>
    %cst_97 = arith.constant 5.000000e-01 : f32
    %505 = vector.broadcast %cst_97 : f32 to vector<4x128xf32>
    %506 = arith.addf %504, %505 : vector<4x128xf32>
    %507 = vector.extract_strided_slice %506 {offsets = [0, 32], sizes = [4, 32], strides = [1, 1]} : vector<4x128xf32> to vector<4x32xf32>
    %508 = arith.mulf %507, %491 : vector<4x32xf32>
    %509 = vector.extract_strided_slice %506 {offsets = [0, 0], sizes = [4, 32], strides = [1, 1]} : vector<4x128xf32> to vector<4x32xf32>
    %510 = vector.extract_strided_slice %502 {offsets = [0, 64], sizes = [4, 32], strides = [1, 1]} : vector<4x128xf32> to vector<4x32xf32>
    %511 = arith.mulf %509, %510 : vector<4x32xf32>
    %512 = arith.addf %508, %511 : vector<4x32xf32>
    %513 = vector.extract_strided_slice %506 {offsets = [0, 96], sizes = [4, 32], strides = [1, 1]} : vector<4x128xf32> to vector<4x32xf32>
    %514 = math.tanh %512 : vector<4x32xf32>
    %515 = arith.mulf %513, %514 : vector<4x32xf32>
    %516 = arith.maximumf %495, %515 : vector<4x32xf32>
    %c88 = arith.constant 88 : index
    %c0_98 = arith.constant 0 : index
    %517 = vector.load %arg3[%c88, %c0_98] : memref<128x128xf32, #tpu.memory_space<vmem>>, vector<8x128xf32>
    %518 = vector.extract_strided_slice %517 {offsets = [0, 0], sizes = [4, 128], strides = [1, 1]} : vector<8x128xf32> to vector<4x128xf32>
    %cst_99 = arith.constant dense<0.000000e+00> : vector<4x256xf32>
    %519 = tpu.matmul %515, %37, %cst_99 {dimension_numbers = #tpu.dot_dimension_numbers<[1], [0], [0], [1], [0, 0, 1, 1], [], []>} : vector<4x32xf32>, vector<32x256xf32>, vector<4x256xf32> -> vector<4x256xf32>
    %520 = vector.extract_strided_slice %519 {offsets = [0, 0], sizes = [4, 128], strides = [1, 1]} : vector<4x256xf32> to vector<4x128xf32>
    %521 = vector.extract_strided_slice %519 {offsets = [0, 128], sizes = [4, 128], strides = [1, 1]} : vector<4x256xf32> to vector<4x128xf32>
    %522 = arith.select %40, %520, %521 : vector<4x128xi1>, vector<4x128xf32>
    %523 = arith.addf %518, %522 : vector<4x128xf32>
    %524 = math.tanh %523 : vector<4x128xf32>
    %cst_100 = arith.constant 5.000000e-01 : f32
    %525 = vector.broadcast %cst_100 : f32 to vector<4x128xf32>
    %526 = arith.mulf %525, %524 : vector<4x128xf32>
    %cst_101 = arith.constant 5.000000e-01 : f32
    %527 = vector.broadcast %cst_101 : f32 to vector<4x128xf32>
    %528 = arith.addf %526, %527 : vector<4x128xf32>
    %529 = vector.extract_strided_slice %528 {offsets = [0, 32], sizes = [4, 32], strides = [1, 1]} : vector<4x128xf32> to vector<4x32xf32>
    %530 = arith.mulf %529, %512 : vector<4x32xf32>
    %531 = vector.extract_strided_slice %528 {offsets = [0, 0], sizes = [4, 32], strides = [1, 1]} : vector<4x128xf32> to vector<4x32xf32>
    %532 = vector.extract_strided_slice %524 {offsets = [0, 64], sizes = [4, 32], strides = [1, 1]} : vector<4x128xf32> to vector<4x32xf32>
    %533 = arith.mulf %531, %532 : vector<4x32xf32>
    %534 = arith.addf %530, %533 : vector<4x32xf32>
    %535 = vector.extract_strided_slice %528 {offsets = [0, 96], sizes = [4, 32], strides = [1, 1]} : vector<4x128xf32> to vector<4x32xf32>
    %536 = math.tanh %534 : vector<4x32xf32>
    %537 = arith.mulf %535, %536 : vector<4x32xf32>
    %538 = arith.maximumf %516, %537 : vector<4x32xf32>
    %539 = vector.extract_strided_slice %517 {offsets = [4, 0], sizes = [4, 128], strides = [1, 1]} : vector<8x128xf32> to vector<4x128xf32>
    %cst_102 = arith.constant dense<0.000000e+00> : vector<4x256xf32>
    %540 = tpu.matmul %537, %37, %cst_102 {dimension_numbers = #tpu.dot_dimension_numbers<[1], [0], [0], [1], [0, 0, 1, 1], [], []>} : vector<4x32xf32>, vector<32x256xf32>, vector<4x256xf32> -> vector<4x256xf32>
    %541 = vector.extract_strided_slice %540 {offsets = [0, 0], sizes = [4, 128], strides = [1, 1]} : vector<4x256xf32> to vector<4x128xf32>
    %542 = vector.extract_strided_slice %540 {offsets = [0, 128], sizes = [4, 128], strides = [1, 1]} : vector<4x256xf32> to vector<4x128xf32>
    %543 = arith.select %40, %541, %542 : vector<4x128xi1>, vector<4x128xf32>
    %544 = arith.addf %539, %543 : vector<4x128xf32>
    %545 = math.tanh %544 : vector<4x128xf32>
    %cst_103 = arith.constant 5.000000e-01 : f32
    %546 = vector.broadcast %cst_103 : f32 to vector<4x128xf32>
    %547 = arith.mulf %546, %545 : vector<4x128xf32>
    %cst_104 = arith.constant 5.000000e-01 : f32
    %548 = vector.broadcast %cst_104 : f32 to vector<4x128xf32>
    %549 = arith.addf %547, %548 : vector<4x128xf32>
    %550 = vector.extract_strided_slice %549 {offsets = [0, 32], sizes = [4, 32], strides = [1, 1]} : vector<4x128xf32> to vector<4x32xf32>
    %551 = arith.mulf %550, %534 : vector<4x32xf32>
    %552 = vector.extract_strided_slice %549 {offsets = [0, 0], sizes = [4, 32], strides = [1, 1]} : vector<4x128xf32> to vector<4x32xf32>
    %553 = vector.extract_strided_slice %545 {offsets = [0, 64], sizes = [4, 32], strides = [1, 1]} : vector<4x128xf32> to vector<4x32xf32>
    %554 = arith.mulf %552, %553 : vector<4x32xf32>
    %555 = arith.addf %551, %554 : vector<4x32xf32>
    %556 = vector.extract_strided_slice %549 {offsets = [0, 96], sizes = [4, 32], strides = [1, 1]} : vector<4x128xf32> to vector<4x32xf32>
    %557 = math.tanh %555 : vector<4x32xf32>
    %558 = arith.mulf %556, %557 : vector<4x32xf32>
    %559 = arith.maximumf %538, %558 : vector<4x32xf32>
    %c96 = arith.constant 96 : index
    %c0_105 = arith.constant 0 : index
    %560 = vector.load %arg3[%c96, %c0_105] : memref<128x128xf32, #tpu.memory_space<vmem>>, vector<8x128xf32>
    %561 = vector.extract_strided_slice %560 {offsets = [0, 0], sizes = [4, 128], strides = [1, 1]} : vector<8x128xf32> to vector<4x128xf32>
    %cst_106 = arith.constant dense<0.000000e+00> : vector<4x256xf32>
    %562 = tpu.matmul %558, %37, %cst_106 {dimension_numbers = #tpu.dot_dimension_numbers<[1], [0], [0], [1], [0, 0, 1, 1], [], []>} : vector<4x32xf32>, vector<32x256xf32>, vector<4x256xf32> -> vector<4x256xf32>
    %563 = vector.extract_strided_slice %562 {offsets = [0, 0], sizes = [4, 128], strides = [1, 1]} : vector<4x256xf32> to vector<4x128xf32>
    %564 = vector.extract_strided_slice %562 {offsets = [0, 128], sizes = [4, 128], strides = [1, 1]} : vector<4x256xf32> to vector<4x128xf32>
    %565 = arith.select %40, %563, %564 : vector<4x128xi1>, vector<4x128xf32>
    %566 = arith.addf %561, %565 : vector<4x128xf32>
    %567 = math.tanh %566 : vector<4x128xf32>
    %cst_107 = arith.constant 5.000000e-01 : f32
    %568 = vector.broadcast %cst_107 : f32 to vector<4x128xf32>
    %569 = arith.mulf %568, %567 : vector<4x128xf32>
    %cst_108 = arith.constant 5.000000e-01 : f32
    %570 = vector.broadcast %cst_108 : f32 to vector<4x128xf32>
    %571 = arith.addf %569, %570 : vector<4x128xf32>
    %572 = vector.extract_strided_slice %571 {offsets = [0, 32], sizes = [4, 32], strides = [1, 1]} : vector<4x128xf32> to vector<4x32xf32>
    %573 = arith.mulf %572, %555 : vector<4x32xf32>
    %574 = vector.extract_strided_slice %571 {offsets = [0, 0], sizes = [4, 32], strides = [1, 1]} : vector<4x128xf32> to vector<4x32xf32>
    %575 = vector.extract_strided_slice %567 {offsets = [0, 64], sizes = [4, 32], strides = [1, 1]} : vector<4x128xf32> to vector<4x32xf32>
    %576 = arith.mulf %574, %575 : vector<4x32xf32>
    %577 = arith.addf %573, %576 : vector<4x32xf32>
    %578 = vector.extract_strided_slice %571 {offsets = [0, 96], sizes = [4, 32], strides = [1, 1]} : vector<4x128xf32> to vector<4x32xf32>
    %579 = math.tanh %577 : vector<4x32xf32>
    %580 = arith.mulf %578, %579 : vector<4x32xf32>
    %581 = arith.maximumf %559, %580 : vector<4x32xf32>
    %582 = vector.extract_strided_slice %560 {offsets = [4, 0], sizes = [4, 128], strides = [1, 1]} : vector<8x128xf32> to vector<4x128xf32>
    %cst_109 = arith.constant dense<0.000000e+00> : vector<4x256xf32>
    %583 = tpu.matmul %580, %37, %cst_109 {dimension_numbers = #tpu.dot_dimension_numbers<[1], [0], [0], [1], [0, 0, 1, 1], [], []>} : vector<4x32xf32>, vector<32x256xf32>, vector<4x256xf32> -> vector<4x256xf32>
    %584 = vector.extract_strided_slice %583 {offsets = [0, 0], sizes = [4, 128], strides = [1, 1]} : vector<4x256xf32> to vector<4x128xf32>
    %585 = vector.extract_strided_slice %583 {offsets = [0, 128], sizes = [4, 128], strides = [1, 1]} : vector<4x256xf32> to vector<4x128xf32>
    %586 = arith.select %40, %584, %585 : vector<4x128xi1>, vector<4x128xf32>
    %587 = arith.addf %582, %586 : vector<4x128xf32>
    %588 = math.tanh %587 : vector<4x128xf32>
    %cst_110 = arith.constant 5.000000e-01 : f32
    %589 = vector.broadcast %cst_110 : f32 to vector<4x128xf32>
    %590 = arith.mulf %589, %588 : vector<4x128xf32>
    %cst_111 = arith.constant 5.000000e-01 : f32
    %591 = vector.broadcast %cst_111 : f32 to vector<4x128xf32>
    %592 = arith.addf %590, %591 : vector<4x128xf32>
    %593 = vector.extract_strided_slice %592 {offsets = [0, 32], sizes = [4, 32], strides = [1, 1]} : vector<4x128xf32> to vector<4x32xf32>
    %594 = arith.mulf %593, %577 : vector<4x32xf32>
    %595 = vector.extract_strided_slice %592 {offsets = [0, 0], sizes = [4, 32], strides = [1, 1]} : vector<4x128xf32> to vector<4x32xf32>
    %596 = vector.extract_strided_slice %588 {offsets = [0, 64], sizes = [4, 32], strides = [1, 1]} : vector<4x128xf32> to vector<4x32xf32>
    %597 = arith.mulf %595, %596 : vector<4x32xf32>
    %598 = arith.addf %594, %597 : vector<4x32xf32>
    %599 = vector.extract_strided_slice %592 {offsets = [0, 96], sizes = [4, 32], strides = [1, 1]} : vector<4x128xf32> to vector<4x32xf32>
    %600 = math.tanh %598 : vector<4x32xf32>
    %601 = arith.mulf %599, %600 : vector<4x32xf32>
    %602 = arith.maximumf %581, %601 : vector<4x32xf32>
    %c104 = arith.constant 104 : index
    %c0_112 = arith.constant 0 : index
    %603 = vector.load %arg3[%c104, %c0_112] : memref<128x128xf32, #tpu.memory_space<vmem>>, vector<8x128xf32>
    %604 = vector.extract_strided_slice %603 {offsets = [0, 0], sizes = [4, 128], strides = [1, 1]} : vector<8x128xf32> to vector<4x128xf32>
    %cst_113 = arith.constant dense<0.000000e+00> : vector<4x256xf32>
    %605 = tpu.matmul %601, %37, %cst_113 {dimension_numbers = #tpu.dot_dimension_numbers<[1], [0], [0], [1], [0, 0, 1, 1], [], []>} : vector<4x32xf32>, vector<32x256xf32>, vector<4x256xf32> -> vector<4x256xf32>
    %606 = vector.extract_strided_slice %605 {offsets = [0, 0], sizes = [4, 128], strides = [1, 1]} : vector<4x256xf32> to vector<4x128xf32>
    %607 = vector.extract_strided_slice %605 {offsets = [0, 128], sizes = [4, 128], strides = [1, 1]} : vector<4x256xf32> to vector<4x128xf32>
    %608 = arith.select %40, %606, %607 : vector<4x128xi1>, vector<4x128xf32>
    %609 = arith.addf %604, %608 : vector<4x128xf32>
    %610 = math.tanh %609 : vector<4x128xf32>
    %cst_114 = arith.constant 5.000000e-01 : f32
    %611 = vector.broadcast %cst_114 : f32 to vector<4x128xf32>
    %612 = arith.mulf %611, %610 : vector<4x128xf32>
    %cst_115 = arith.constant 5.000000e-01 : f32
    %613 = vector.broadcast %cst_115 : f32 to vector<4x128xf32>
    %614 = arith.addf %612, %613 : vector<4x128xf32>
    %615 = vector.extract_strided_slice %614 {offsets = [0, 32], sizes = [4, 32], strides = [1, 1]} : vector<4x128xf32> to vector<4x32xf32>
    %616 = arith.mulf %615, %598 : vector<4x32xf32>
    %617 = vector.extract_strided_slice %614 {offsets = [0, 0], sizes = [4, 32], strides = [1, 1]} : vector<4x128xf32> to vector<4x32xf32>
    %618 = vector.extract_strided_slice %610 {offsets = [0, 64], sizes = [4, 32], strides = [1, 1]} : vector<4x128xf32> to vector<4x32xf32>
    %619 = arith.mulf %617, %618 : vector<4x32xf32>
    %620 = arith.addf %616, %619 : vector<4x32xf32>
    %621 = vector.extract_strided_slice %614 {offsets = [0, 96], sizes = [4, 32], strides = [1, 1]} : vector<4x128xf32> to vector<4x32xf32>
    %622 = math.tanh %620 : vector<4x32xf32>
    %623 = arith.mulf %621, %622 : vector<4x32xf32>
    %624 = arith.maximumf %602, %623 : vector<4x32xf32>
    %625 = vector.extract_strided_slice %603 {offsets = [4, 0], sizes = [4, 128], strides = [1, 1]} : vector<8x128xf32> to vector<4x128xf32>
    %cst_116 = arith.constant dense<0.000000e+00> : vector<4x256xf32>
    %626 = tpu.matmul %623, %37, %cst_116 {dimension_numbers = #tpu.dot_dimension_numbers<[1], [0], [0], [1], [0, 0, 1, 1], [], []>} : vector<4x32xf32>, vector<32x256xf32>, vector<4x256xf32> -> vector<4x256xf32>
    %627 = vector.extract_strided_slice %626 {offsets = [0, 0], sizes = [4, 128], strides = [1, 1]} : vector<4x256xf32> to vector<4x128xf32>
    %628 = vector.extract_strided_slice %626 {offsets = [0, 128], sizes = [4, 128], strides = [1, 1]} : vector<4x256xf32> to vector<4x128xf32>
    %629 = arith.select %40, %627, %628 : vector<4x128xi1>, vector<4x128xf32>
    %630 = arith.addf %625, %629 : vector<4x128xf32>
    %631 = math.tanh %630 : vector<4x128xf32>
    %cst_117 = arith.constant 5.000000e-01 : f32
    %632 = vector.broadcast %cst_117 : f32 to vector<4x128xf32>
    %633 = arith.mulf %632, %631 : vector<4x128xf32>
    %cst_118 = arith.constant 5.000000e-01 : f32
    %634 = vector.broadcast %cst_118 : f32 to vector<4x128xf32>
    %635 = arith.addf %633, %634 : vector<4x128xf32>
    %636 = vector.extract_strided_slice %635 {offsets = [0, 32], sizes = [4, 32], strides = [1, 1]} : vector<4x128xf32> to vector<4x32xf32>
    %637 = arith.mulf %636, %620 : vector<4x32xf32>
    %638 = vector.extract_strided_slice %635 {offsets = [0, 0], sizes = [4, 32], strides = [1, 1]} : vector<4x128xf32> to vector<4x32xf32>
    %639 = vector.extract_strided_slice %631 {offsets = [0, 64], sizes = [4, 32], strides = [1, 1]} : vector<4x128xf32> to vector<4x32xf32>
    %640 = arith.mulf %638, %639 : vector<4x32xf32>
    %641 = arith.addf %637, %640 : vector<4x32xf32>
    %642 = vector.extract_strided_slice %635 {offsets = [0, 96], sizes = [4, 32], strides = [1, 1]} : vector<4x128xf32> to vector<4x32xf32>
    %643 = math.tanh %641 : vector<4x32xf32>
    %644 = arith.mulf %642, %643 : vector<4x32xf32>
    %645 = arith.maximumf %624, %644 : vector<4x32xf32>
    %c112 = arith.constant 112 : index
    %c0_119 = arith.constant 0 : index
    %646 = vector.load %arg3[%c112, %c0_119] : memref<128x128xf32, #tpu.memory_space<vmem>>, vector<8x128xf32>
    %647 = vector.extract_strided_slice %646 {offsets = [0, 0], sizes = [4, 128], strides = [1, 1]} : vector<8x128xf32> to vector<4x128xf32>
    %cst_120 = arith.constant dense<0.000000e+00> : vector<4x256xf32>
    %648 = tpu.matmul %644, %37, %cst_120 {dimension_numbers = #tpu.dot_dimension_numbers<[1], [0], [0], [1], [0, 0, 1, 1], [], []>} : vector<4x32xf32>, vector<32x256xf32>, vector<4x256xf32> -> vector<4x256xf32>
    %649 = vector.extract_strided_slice %648 {offsets = [0, 0], sizes = [4, 128], strides = [1, 1]} : vector<4x256xf32> to vector<4x128xf32>
    %650 = vector.extract_strided_slice %648 {offsets = [0, 128], sizes = [4, 128], strides = [1, 1]} : vector<4x256xf32> to vector<4x128xf32>
    %651 = arith.select %40, %649, %650 : vector<4x128xi1>, vector<4x128xf32>
    %652 = arith.addf %647, %651 : vector<4x128xf32>
    %653 = math.tanh %652 : vector<4x128xf32>
    %cst_121 = arith.constant 5.000000e-01 : f32
    %654 = vector.broadcast %cst_121 : f32 to vector<4x128xf32>
    %655 = arith.mulf %654, %653 : vector<4x128xf32>
    %cst_122 = arith.constant 5.000000e-01 : f32
    %656 = vector.broadcast %cst_122 : f32 to vector<4x128xf32>
    %657 = arith.addf %655, %656 : vector<4x128xf32>
    %658 = vector.extract_strided_slice %657 {offsets = [0, 32], sizes = [4, 32], strides = [1, 1]} : vector<4x128xf32> to vector<4x32xf32>
    %659 = arith.mulf %658, %641 : vector<4x32xf32>
    %660 = vector.extract_strided_slice %657 {offsets = [0, 0], sizes = [4, 32], strides = [1, 1]} : vector<4x128xf32> to vector<4x32xf32>
    %661 = vector.extract_strided_slice %653 {offsets = [0, 64], sizes = [4, 32], strides = [1, 1]} : vector<4x128xf32> to vector<4x32xf32>
    %662 = arith.mulf %660, %661 : vector<4x32xf32>
    %663 = arith.addf %659, %662 : vector<4x32xf32>
    %664 = vector.extract_strided_slice %657 {offsets = [0, 96], sizes = [4, 32], strides = [1, 1]} : vector<4x128xf32> to vector<4x32xf32>
    %665 = math.tanh %663 : vector<4x32xf32>
    %666 = arith.mulf %664, %665 : vector<4x32xf32>
    %667 = arith.maximumf %645, %666 : vector<4x32xf32>
    %668 = vector.extract_strided_slice %646 {offsets = [4, 0], sizes = [4, 128], strides = [1, 1]} : vector<8x128xf32> to vector<4x128xf32>
    %cst_123 = arith.constant dense<0.000000e+00> : vector<4x256xf32>
    %669 = tpu.matmul %666, %37, %cst_123 {dimension_numbers = #tpu.dot_dimension_numbers<[1], [0], [0], [1], [0, 0, 1, 1], [], []>} : vector<4x32xf32>, vector<32x256xf32>, vector<4x256xf32> -> vector<4x256xf32>
    %670 = vector.extract_strided_slice %669 {offsets = [0, 0], sizes = [4, 128], strides = [1, 1]} : vector<4x256xf32> to vector<4x128xf32>
    %671 = vector.extract_strided_slice %669 {offsets = [0, 128], sizes = [4, 128], strides = [1, 1]} : vector<4x256xf32> to vector<4x128xf32>
    %672 = arith.select %40, %670, %671 : vector<4x128xi1>, vector<4x128xf32>
    %673 = arith.addf %668, %672 : vector<4x128xf32>
    %674 = math.tanh %673 : vector<4x128xf32>
    %cst_124 = arith.constant 5.000000e-01 : f32
    %675 = vector.broadcast %cst_124 : f32 to vector<4x128xf32>
    %676 = arith.mulf %675, %674 : vector<4x128xf32>
    %cst_125 = arith.constant 5.000000e-01 : f32
    %677 = vector.broadcast %cst_125 : f32 to vector<4x128xf32>
    %678 = arith.addf %676, %677 : vector<4x128xf32>
    %679 = vector.extract_strided_slice %678 {offsets = [0, 32], sizes = [4, 32], strides = [1, 1]} : vector<4x128xf32> to vector<4x32xf32>
    %680 = arith.mulf %679, %663 : vector<4x32xf32>
    %681 = vector.extract_strided_slice %678 {offsets = [0, 0], sizes = [4, 32], strides = [1, 1]} : vector<4x128xf32> to vector<4x32xf32>
    %682 = vector.extract_strided_slice %674 {offsets = [0, 64], sizes = [4, 32], strides = [1, 1]} : vector<4x128xf32> to vector<4x32xf32>
    %683 = arith.mulf %681, %682 : vector<4x32xf32>
    %684 = arith.addf %680, %683 : vector<4x32xf32>
    %685 = vector.extract_strided_slice %678 {offsets = [0, 96], sizes = [4, 32], strides = [1, 1]} : vector<4x128xf32> to vector<4x32xf32>
    %686 = math.tanh %684 : vector<4x32xf32>
    %687 = arith.mulf %685, %686 : vector<4x32xf32>
    %688 = arith.maximumf %667, %687 : vector<4x32xf32>
    %c120 = arith.constant 120 : index
    %c0_126 = arith.constant 0 : index
    %689 = vector.load %arg3[%c120, %c0_126] : memref<128x128xf32, #tpu.memory_space<vmem>>, vector<8x128xf32>
    %690 = vector.extract_strided_slice %689 {offsets = [0, 0], sizes = [4, 128], strides = [1, 1]} : vector<8x128xf32> to vector<4x128xf32>
    %cst_127 = arith.constant dense<0.000000e+00> : vector<4x256xf32>
    %691 = tpu.matmul %687, %37, %cst_127 {dimension_numbers = #tpu.dot_dimension_numbers<[1], [0], [0], [1], [0, 0, 1, 1], [], []>} : vector<4x32xf32>, vector<32x256xf32>, vector<4x256xf32> -> vector<4x256xf32>
    %692 = vector.extract_strided_slice %691 {offsets = [0, 0], sizes = [4, 128], strides = [1, 1]} : vector<4x256xf32> to vector<4x128xf32>
    %693 = vector.extract_strided_slice %691 {offsets = [0, 128], sizes = [4, 128], strides = [1, 1]} : vector<4x256xf32> to vector<4x128xf32>
    %694 = arith.select %40, %692, %693 : vector<4x128xi1>, vector<4x128xf32>
    %695 = arith.addf %690, %694 : vector<4x128xf32>
    %696 = math.tanh %695 : vector<4x128xf32>
    %cst_128 = arith.constant 5.000000e-01 : f32
    %697 = vector.broadcast %cst_128 : f32 to vector<4x128xf32>
    %698 = arith.mulf %697, %696 : vector<4x128xf32>
    %cst_129 = arith.constant 5.000000e-01 : f32
    %699 = vector.broadcast %cst_129 : f32 to vector<4x128xf32>
    %700 = arith.addf %698, %699 : vector<4x128xf32>
    %701 = vector.extract_strided_slice %700 {offsets = [0, 32], sizes = [4, 32], strides = [1, 1]} : vector<4x128xf32> to vector<4x32xf32>
    %702 = arith.mulf %701, %684 : vector<4x32xf32>
    %703 = vector.extract_strided_slice %700 {offsets = [0, 0], sizes = [4, 32], strides = [1, 1]} : vector<4x128xf32> to vector<4x32xf32>
    %704 = vector.extract_strided_slice %696 {offsets = [0, 64], sizes = [4, 32], strides = [1, 1]} : vector<4x128xf32> to vector<4x32xf32>
    %705 = arith.mulf %703, %704 : vector<4x32xf32>
    %706 = arith.addf %702, %705 : vector<4x32xf32>
    %707 = vector.extract_strided_slice %700 {offsets = [0, 96], sizes = [4, 32], strides = [1, 1]} : vector<4x128xf32> to vector<4x32xf32>
    %708 = math.tanh %706 : vector<4x32xf32>
    %709 = arith.mulf %707, %708 : vector<4x32xf32>
    %710 = arith.maximumf %688, %709 : vector<4x32xf32>
    %711 = vector.extract_strided_slice %689 {offsets = [4, 0], sizes = [4, 128], strides = [1, 1]} : vector<8x128xf32> to vector<4x128xf32>
    %cst_130 = arith.constant dense<0.000000e+00> : vector<4x256xf32>
    %712 = tpu.matmul %709, %37, %cst_130 {dimension_numbers = #tpu.dot_dimension_numbers<[1], [0], [0], [1], [0, 0, 1, 1], [], []>} : vector<4x32xf32>, vector<32x256xf32>, vector<4x256xf32> -> vector<4x256xf32>
    %713 = vector.extract_strided_slice %712 {offsets = [0, 0], sizes = [4, 128], strides = [1, 1]} : vector<4x256xf32> to vector<4x128xf32>
    %714 = vector.extract_strided_slice %712 {offsets = [0, 128], sizes = [4, 128], strides = [1, 1]} : vector<4x256xf32> to vector<4x128xf32>
    %715 = arith.select %40, %713, %714 : vector<4x128xi1>, vector<4x128xf32>
    %716 = arith.addf %711, %715 : vector<4x128xf32>
    %717 = math.tanh %716 : vector<4x128xf32>
    %cst_131 = arith.constant 5.000000e-01 : f32
    %718 = vector.broadcast %cst_131 : f32 to vector<4x128xf32>
    %719 = arith.mulf %718, %717 : vector<4x128xf32>
    %cst_132 = arith.constant 5.000000e-01 : f32
    %720 = vector.broadcast %cst_132 : f32 to vector<4x128xf32>
    %721 = arith.addf %719, %720 : vector<4x128xf32>
    %722 = vector.extract_strided_slice %721 {offsets = [0, 32], sizes = [4, 32], strides = [1, 1]} : vector<4x128xf32> to vector<4x32xf32>
    %723 = arith.mulf %722, %706 : vector<4x32xf32>
    %724 = vector.extract_strided_slice %721 {offsets = [0, 0], sizes = [4, 32], strides = [1, 1]} : vector<4x128xf32> to vector<4x32xf32>
    %725 = vector.extract_strided_slice %717 {offsets = [0, 64], sizes = [4, 32], strides = [1, 1]} : vector<4x128xf32> to vector<4x32xf32>
    %726 = arith.mulf %724, %725 : vector<4x32xf32>
    %727 = arith.addf %723, %726 : vector<4x32xf32>
    %728 = vector.extract_strided_slice %721 {offsets = [0, 96], sizes = [4, 32], strides = [1, 1]} : vector<4x128xf32> to vector<4x32xf32>
    %729 = math.tanh %727 : vector<4x32xf32>
    %730 = arith.mulf %728, %729 : vector<4x32xf32>
    %731 = arith.maximumf %710, %730 : vector<4x32xf32>
    %732 = vector.extract_strided_slice %731 {offsets = [0, 0], sizes = [2, 32], strides = [1, 1]} : vector<4x32xf32> to vector<2x32xf32>
    %733 = vector.extract_strided_slice %731 {offsets = [2, 0], sizes = [2, 32], strides = [1, 1]} : vector<4x32xf32> to vector<2x32xf32>
    %c72_133 = arith.constant 72 : index
    %c0_134 = arith.constant 0 : index
    %734 = vector.load %arg1[%c72_133, %c0_134] : memref<88x256xf32, #tpu.memory_space<vmem>>, vector<8x128xf32>
    %735 = vector.extract_strided_slice %734 {offsets = [0, 0], sizes = [1, 81], strides = [1, 1]} : vector<8x128xf32> to vector<1x81xf32>
    %cst_135 = arith.constant 1.000000e+00 : f32
    %736 = vector.broadcast %cst_135 : f32 to vector<2x1xf32>
    %737 = tpu.concatenate %36, %732, %733, %736 in 1 : vector<2x16xf32>, vector<2x32xf32>, vector<2x32xf32>, vector<2x1xf32> -> vector<2x81xf32>
    %738 = vector.broadcast %735 : vector<1x81xf32> to vector<2x81xf32>
    %739 = arith.mulf %737, %738 : vector<2x81xf32>
    %cst_136 = arith.constant dense<0.000000e+00> : vector<2xf32>
    %740 = vector.multi_reduction <add>, %739, %cst_136 [1] : vector<2x81xf32> to vector<2xf32>
    %741 = vector.shape_cast %740 : vector<2xf32> to vector<2x1xf32>
    %c128 = arith.constant 128 : index
    %c0_137 = arith.constant 0 : index
    %742 = vector.load %arg0[%c128, %c0_137] : memref<136x40xf32, #tpu.memory_space<vmem>>, vector<8x40xf32>
    %743 = vector.extract_strided_slice %742 {offsets = [0, 0], sizes = [2, 5], strides = [1, 1]} : vector<8x40xf32> to vector<2x5xf32>
    %cst_138 = arith.constant dense<0.000000e+00> : vector<5xf32>
    %744 = vector.multi_reduction <add>, %743, %cst_138 [0] : vector<2x5xf32> to vector<5xf32>
    %745 = vector.shape_cast %744 : vector<5xf32> to vector<1x5xf32>
    %cst_139 = arith.constant 2.000000e+00 : f32
    %746 = vector.broadcast %cst_139 : f32 to vector<1x5xf32>
    %747 = arith.divf %745, %746 : vector<1x5xf32>
    %748 = vector.broadcast %747 : vector<1x5xf32> to vector<2x5xf32>
    %749 = arith.subf %743, %748 : vector<2x5xf32>
    %750 = arith.mulf %749, %749 : vector<2x5xf32>
    %cst_140 = arith.constant dense<0.000000e+00> : vector<5xf32>
    %751 = vector.multi_reduction <add>, %750, %cst_140 [0] : vector<2x5xf32> to vector<5xf32>
    %752 = vector.shape_cast %751 : vector<5xf32> to vector<1x5xf32>
    %cst_141 = arith.constant 2.000000e+00 : f32
    %753 = vector.broadcast %cst_141 : f32 to vector<1x5xf32>
    %754 = arith.divf %752, %753 : vector<1x5xf32>
    %755 = vector.broadcast %747 : vector<1x5xf32> to vector<2x5xf32>
    %756 = arith.subf %743, %755 : vector<2x5xf32>
    %cst_142 = arith.constant 9.99999974E-6 : f32
    %757 = vector.broadcast %cst_142 : f32 to vector<1x5xf32>
    %758 = arith.addf %754, %757 : vector<1x5xf32>
    %759 = math.rsqrt %758 : vector<1x5xf32>
    %760 = vector.broadcast %759 : vector<1x5xf32> to vector<2x5xf32>
    %761 = arith.mulf %756, %760 : vector<2x5xf32>
    %cst_143 = arith.constant 0.000000e+00 : f32
    %762 = vector.broadcast %cst_143 : f32 to vector<2x5xf32>
    %763 = arith.maximumf %761, %762 : vector<2x5xf32>
    %cst_144 = arith.constant 0.000000e+00 : f32
    %764 = vector.broadcast %cst_144 : f32 to vector<2x1xf32>
    %765 = arith.maximumf %741, %764 : vector<2x1xf32>
    %cst_145 = arith.constant 1.000000e+00 : f32
    %766 = vector.broadcast %cst_145 : f32 to vector<2x1xf32>
    %767 = tpu.concatenate %763, %765, %766 in 1 : vector<2x5xf32>, vector<2x1xf32>, vector<2x1xf32> -> vector<2x7xf32>
    %c80_146 = arith.constant 80 : index
    %c0_147 = arith.constant 0 : index
    %768 = vector.load %arg1[%c80_146, %c0_147] : memref<88x256xf32, #tpu.memory_space<vmem>>, vector<8x128xf32>
    %769 = vector.extract_strided_slice %768 {offsets = [0, 0], sizes = [7, 4], strides = [1, 1]} : vector<8x128xf32> to vector<7x4xf32>
    %cst_148 = arith.constant dense<0.000000e+00> : vector<2x4xf32>
    %770 = tpu.matmul %767, %769, %cst_148 {dimension_numbers = #tpu.dot_dimension_numbers<[1], [0], [0], [1], [0, 0, 1, 1], [], []>} : vector<2x7xf32>, vector<7x4xf32>, vector<2x4xf32> -> vector<2x4xf32>
    %cst_149 = arith.constant dense<0xFF800000> : vector<2xf32>
    %771 = vector.multi_reduction <maximumf>, %770, %cst_149 [1] : vector<2x4xf32> to vector<2xf32>
    %772 = vector.shape_cast %771 : vector<2xf32> to vector<2x1xf32>
    %773 = vector.broadcast %772 : vector<2x1xf32> to vector<2x4xf32>
    %774 = arith.subf %770, %773 : vector<2x4xf32>
    %775 = math.exp %774 : vector<2x4xf32>
    %cst_150 = arith.constant dense<0.000000e+00> : vector<2xf32>
    %776 = vector.multi_reduction <add>, %775, %cst_150 [1] : vector<2x4xf32> to vector<2xf32>
    %777 = vector.shape_cast %776 : vector<2xf32> to vector<2x1xf32>
    %778 = vector.broadcast %777 : vector<2x1xf32> to vector<2x4xf32>
    %779 = arith.divf %775, %778 : vector<2x4xf32>
    %c0_151 = arith.constant 0 : index
    %c0_152 = arith.constant 0 : index
    %780 = vector.load %arg2[%c0_151, %c0_152] : memref<2x4xf32, #tpu.memory_space<vmem>>, vector<2x4xf32>
    tpu.vector_store %arg2[%c0_151, %c0_152], %779 {strides = array<i32>} : memref<2x4xf32, #tpu.memory_space<vmem>>, vector<2x4xf32>,
    return
  }
}

</mosaic_0001>

<bundles_post_ra>
// kernel: model_forward.1
= control target key start
LH: loop header
LB: loop body
LE: loop exit
PB: predicated region body
PF: predicated region fallthrough
CT: control target
= control target key end

     0   :  { %v4674_v7 = vmov 0.0   ;;  %vm33_vm0 = vcmask 326656   ;;  %s5444_s0 = inlined_call_operand.vmem [shape: f32[136,40], index: 0, kind: input, shape index: {}]   ;;  %s5445_s1 = inlined_call_operand.vmem [shape: f32[88,256], index: 1, kind: input, shape index: {}]   ;;  %s5446_s2 = inlined_call_operand.hbm [shape: f32[2,4], index: 2, kind: output, shape index: {}]  }
   0x1   :  { %v28_v0 = vld [vmem:[%s5445_s1 + $0x40] sm:$0xff]  ;;  %v29_v1 = vld [vmem:[%s5445_s1 + $0x50] sm:$0xff]  ;;  %v610_v2 = vld [vmem:[%s5445_s1 + $0x8] sm:$0xff]  ;;  %687 = vmatprep.mubr.f32.mxu1 %v4674_v7 }
   0x2   :  { %v4245_v3 = vpack.c.bf16 %v29_v1, %v28_v0  ;;  %v612_v4 = vld [vmem:[%s5445_s1 + $0x18] sm:$0xff]  ;;  %v609_v5 = vld [vmem:[%s5445_s1] sm:$0xff]  ;;  %v611_v6 = vld [vmem:[%s5445_s1 + $0x10] sm:$0xff] }
   0x3   :  { %v4715_v8 = vpack.c.bf16 %v612_v4, %v610_v2  ;;  %v4717_v9 = vpack.c.bf16 %v611_v6, %v609_v5  ;;  %v30_v10 = vld [vmem:[%s5445_s1 + $0x60] sm:$0xff]  ;;  %v31_v11 = vld [vmem:[%s5445_s1 + $0x70] sm:$0xff]  ;;  %v614_v12 = vld [vmem:[%s5445_s1 + $0x28] sm:$0xff] }
   0x4   :  { %4246 = vmatprep.subr.bf16.mxu0 %v4245_v3  ;;  %v4249_v13 = vpack.c.bf16 %v31_v11, %v30_v10  ;;  %v616_v14 = vld [vmem:[%s5445_s1 + $0x38] sm:$0xff]  ;;  %v613_v15 = vld [vmem:[%s5445_s1 + $0x20] sm:$0xff]  ;;  %v615_v16 = vld [vmem:[%s5445_s1 + $0x30] sm:$0xff] }
   0x5   :  { %4254 = vmatprep.subr.bf16.mxu1 %v4715_v8  ;;  %4248 = vmatpush3.bf16.msra.mxu0 %v4245_v3  ;;  %v4738_v17 = vpack.c.bf16 %v616_v14, %v614_v12  ;;  %v4743_v18 = vld [vmem:[%s5444_s0] sm:$0xff]  ;;  %v4746_v19 = vpack.c.bf16 %v615_v16, %v613_v15 }
   0x6   :  { %4256 = vmatpush1.bf16.msra.mxu1 %v4717_v9  ;;  %4250 = vmatprep.subr.bf16.mxu0 %v4249_v13 }
   0x7   :  { %7 = vsyncpa [#allocation4], 0  ;;  %4258 = vmatprep.subr.bf16.mxu1 %v4738_v17  ;;  %v32_v20 = vld [vmem:[%s5445_s1 + $0x80] sm:$0xff]  ;;  %4216 = vmatprep.mubr.msk.f32.mxu0 %vm33_vm0, %v4743_v18  ;;  %v4758_v21 = vld [vmem:[%s5444_s0 + $0x8] sm:$0xff]  ;;  %v259_v22 = vlaneseq  ;;  %s4675_s11 = smov 64   ;;  %s4676_s12 = smov 32  }
   0x8   :  { %vm619_vm2 = vcmask 261120   ;;  %vm500_vm10 = vcmask 130048   ;;  %s4678_s15 = smov 80  }
   0x9   :  { %4252 = vmatpush3.bf16.msra.mxu0 %v4249_v13  ;;  %v4774_v23 = vshrl.u32 %v259_v22, 7 }
   0xa   :  { %4260 = vmatpush1.bf16.msra.mxu1 %v4746_v19  ;;  %4214 = vmatprep.subr.mxu0 %v32_v20 }
   0xb   :  { %4262 = vmatprep.subr.bf16.mxu1 %v4715_v8  ;;  %vm617_vm1 = vcmp.lt.s32.totalorder %v4774_v23, 2 }
   0xd   :  { %688 = vmatmul.mubr.f32.vlgmr.msra.gmra.mrb[0].mxu1 %v4674_v7  ;;  %4215 = vmatpush3.msra.mxu0 %v32_v20 }
   0xe   :  { %4217 = vmatmul.mubr.msk.f32.vlgmr.msra.gmra.mrb[0].mxu0 %vm33_vm0, %v4758_v21  ;;  %4264 = vmatpush1.bf16.msra.mxu1 %v4717_v9 }
   0xf   :  { %4266 = vmatprep.subr.bf16.mxu1 %v4738_v17  ;;  %786 = vmatprep.mubr.f32.mxu1 %v4674_v7 }
  0x10   :  { %4294 = vmatprep.subr.bf16.mxu0 %v4715_v8 }
  0x11   :  { %4296 = vmatpush1.bf16.msra.mxu0 %v4717_v9 }
  0x12   :  { %4268 = vmatpush1.bf16.msra.mxu1 %v4746_v19  ;;  %4298 = vmatprep.subr.bf16.mxu0 %v4738_v17 }
  0x13   :  { %4270 = vmatprep.subr.bf16.mxu1 %v4715_v8 }
  0x15   :  { %4300 = vmatpush1.bf16.msra.mxu0 %v4746_v19 }
  0x16   :  { %4310 = vmatprep.subr.bf16.mxu0 %v4715_v8 }
  0xe0   :  { %v689_v24 = vpop.f32.mrb[0].mxu1 }
  0xe1   :  { %v691_v25 = vpop.f32.mrb[1].mxu1  ;;  %v4777_v26 = vpop.f32.mrb[0].mxu0 }
  0xe2   :  { %v694_v27 = vsel %vm617_vm1, %v689_v24, %v691_v25  ;;  %v148_v28 = vpop.f32.mrb[1].mxu0 }
  0xe3   :  { %v695_v29 = vadd.f32 %v694_v27, %v148_v28 }
  0xe5   :  { %4516 = vtanh.f32 %v695_v29 }
  0xef   :  { %v4517_v30 = vpop.eup %4516 }
  0xf0   :  { %701 = vrot.lane.b32.xlu0 %v4517_v30, %s4675_s11  ;;  %v697_v31 = vmul.f32 0.5, %v4517_v30 }
  0xf2   :  { %v698_v32 = vadd.f32 0.5, %v697_v31 }
  0xf4   :  { %v699_v35 = vmul.f32 0.0, %v698_v32 }
 0x162   :  { %v702_v33 = vpop.permute.xlu0 %701 }
 0x163   :  { %v704_v34 = vmul.f32 %v702_v33, %v698_v32 }
 0x165   :  { %706 = vrot.lane.b32.xlu0 %v704_v34, %s4676_s12 }
 0x1d7   :  { %v707_v36 = vpop.permute.xlu0 %706 }
 0x1d8   :  { %v709_v37 = vadd.f32 %v707_v36, %v699_v35 }
 0x1da   :  { %4518 = vtanh.f32 %v709_v37  ;;  %v802_v52 = vrot.slane %v709_v37, 4 }
 0x1e4   :  { %v4519_v38 = vpop.eup %4518 }
 0x1e5   :  { %712 = vrot.lane.b32.xlu1 %v4519_v38, %s4675_s11 }
 0x257   :  { %v713_v39 = vpop.permute.xlu1 %712 }
 0x258   :  { %v715_v40 = vmul.f32 %v713_v39, %v698_v32 }
 0x25a   :  { %718 = vrot.lane.b32.xlu1 %v715_v40, %s4676_s12  ;;  %v716_v59 = vmax.f32 %v715_v40, 0.0 }
 0x2cc   :  { %v719_v41 = vpop.permute.xlu1 %718 }
 0x2cd   :  { %4150 = vmatmul.mubr.msk.f32.vlgmr.msra.gmra.mrb[2].mxu1 %vm619_vm2, %v719_v41  ;;  %v15_v41 = vld [vmem:[%s5444_s0 + $0x18] sm:$0xff] }
 0x2ce   :  { %4272 = vmatpush1.bf16.msra.mxu1 %v4717_v9  ;;  %894 = vmatprep.mubr.f32.mxu1 %v4674_v7 }
 0x2cf   :  { %4274 = vmatprep.subr.bf16.mxu1 %v4738_v17 }
 0x2d2   :  { %4276 = vmatpush1.bf16.msra.mxu1 %v4746_v19 }
 0x2d3   :  { %4278 = vmatprep.subr.bf16.mxu1 %v4715_v8 }
 0x3a0   :  { %v788_v42 = vpop.f32.mrb[2].mxu1 }
 0x3a1   :  { %v790_v43 = vpop.f32.mrb[3].mxu1 }
 0x3a2   :  { %v793_v44 = vsel %vm617_vm1, %v788_v42, %v790_v43 }
 0x3a3   :  { %v795_v45 = vrot.slane %v793_v44, 4 }
 0x3a5   :  { %v797_v46 = vadd.f32 %v795_v45, %v148_v28 }
 0x3a7   :  { %4520 = vtanh.f32 %v797_v46 }
 0x3b1   :  { %v4521_v47 = vpop.eup %4520 }
 0x3b2   :  { %806 = vrot.lane.b32.xlu0 %v4521_v47, %s4675_s11  ;;  %v799_v48 = vmul.f32 0.5, %v4521_v47 }
 0x3b4   :  { %v800_v49 = vadd.f32 0.5, %v799_v48 }
 0x3b6   :  { %v804_v53 = vmul.f32 %v802_v52, %v800_v49 }
 0x424   :  { %v807_v50 = vpop.permute.xlu0 %806 }
 0x425   :  { %v809_v51 = vmul.f32 %v807_v50, %v800_v49 }
 0x427   :  { %811 = vrot.lane.b32.xlu1 %v809_v51, %s4676_s12 }
 0x499   :  { %v812_v54 = vpop.permute.xlu1 %811 }
 0x49a   :  { %v814_v55 = vadd.f32 %v812_v54, %v804_v53 }
 0x49c   :  { %4522 = vtanh.f32 %v814_v55  ;;  %v907_v11 = vrot.slane %v814_v55, 4 }
 0x4a6   :  { %v4523_v56 = vpop.eup %4522 }
 0x4a7   :  { %817 = vrot.lane.b32.xlu0 %v4523_v56, %s4675_s11 }
 0x519   :  { %v818_v57 = vpop.permute.xlu0 %817 }
 0x51a   :  { %v820_v58 = vmul.f32 %v818_v57, %v800_v49 }
 0x51c   :  { %v822_v60 = vrot.slane %v820_v58, 4  ;;  %v261_v58 = vadd.s32 8, %v4774_v23 }
 0x51e   :  { %v4796_v61 = vmax.f32 %v716_v59, %v822_v60  ;;  %826 = vrot.lane.b32.xlu1 %v822_v60, %s4676_s12  ;;  %v262_v59 = vadd.s32 16, %v4774_v23  ;;  %v263_v60 = vadd.s32 24, %v4774_v23 }
 0x590   :  { %v827_v62 = vpop.permute.xlu1 %826 }
 0x591   :  { %4151 = vmatmul.mubr.msk.f32.vlgmr.msra.gmra.mrb[4].mxu1 %vm619_vm2, %v827_v62  ;;  %v287_v62 = vand.u32 3, %v261_v58 }
 0x592   :  { %4280 = vmatpush1.bf16.msra.mxu1 %v4717_v9  ;;  %996 = vmatprep.mubr.f32.mxu1 %v4674_v7 }
 0x593   :  { %4282 = vmatprep.subr.bf16.mxu1 %v4738_v17  ;;  %vm469_vm5 = vcmp.eq.s32.totalorder %v287_v62, 0  ;;  %vm539_vm6 = vcmp.eq.s32.totalorder %v287_v62, 1 }
 0x596   :  { %4284 = vmatpush1.bf16.msra.mxu1 %v4746_v19 }
 0x597   :  { %4286 = vmatprep.subr.bf16.mxu1 %v4715_v8 }
 0x664   :  { %v896_v63 = vpop.f32.mrb[4].mxu1 }
 0x665   :  { %v898_v0 = vpop.f32.mrb[5].mxu1 }
 0x666   :  { %v901_v1 = vsel %vm617_vm1, %v896_v63, %v898_v0  ;;  %v294_v63 = vand.u32 3, %v262_v59  ;;  %v301_v0 = vand.u32 3, %v263_v60 }
 0x667   :  { %v902_v2 = vadd.f32 %v4777_v26, %v901_v1  ;;  %v243_v1 = vmax.f32 %v4743_v18, 0.0 }
 0x668   :  { %vm470_vm7 = vcmp.eq.s32.totalorder %v294_v63, 0  ;;  %vm540_vm8 = vcmp.eq.s32.totalorder %v294_v63, 1  ;;  %vm471_vm9 = vcmp.eq.s32.totalorder %v301_v0, 0  ;;  %vm541_vm11 = vcmp.eq.s32.totalorder %v301_v0, 1 }
 0x669   :  { %4524 = vtanh.f32 %v902_v2  ;;  %v244_v2 = vmax.f32 %v4758_v21, 0.0 }
 0x673   :  { %v4525_v3 = vpop.eup %4524 }
 0x674   :  { %911 = vrot.lane.b32.xlu0 %v4525_v3, %s4675_s11  ;;  %v904_v4 = vmul.f32 0.5, %v4525_v3 }
 0x676   :  { %v905_v5 = vadd.f32 0.5, %v904_v4  ;;  %v246_v4 = vmax.f32 %v15_v41, 0.0 }
 0x678   :  { %v909_v12 = vmul.f32 %v907_v11, %v905_v5  ;;  %v485_v11 = vsel %vm469_vm5, %v244_v2, 0.0 }
 0x6e6   :  { %v912_v6 = vpop.permute.xlu0 %911 }
 0x6e7   :  { %v914_v10 = vmul.f32 %v912_v6, %v905_v5 }
 0x6e9   :  { %916 = vrot.lane.b32.xlu1 %v914_v10, %s4676_s12 }
 0x75b   :  { %v917_v13 = vpop.permute.xlu1 %916 }
 0x75c   :  { %v919_v14 = vadd.f32 %v917_v13, %v909_v12  ;;  %v555_v12 = vsel %vm539_vm6, %v244_v2, 0.0 }
 0x75e   :  { %4526 = vtanh.f32 %v919_v14  ;;  %v1012_v36 = vrot.slane %v919_v14, 4  ;;  %v487_v14 = vsel %vm471_vm9, %v246_v4, 0.0 }
 0x768   :  { %v4527_v15 = vpop.eup %4526 }
 0x769   :  { %922 = vrot.lane.b32.xlu0 %v4527_v15, %s4675_s11  ;;  %v557_v15 = vsel %vm541_vm11, %v246_v4, 0.0 }
 0x7db   :  { %v923_v16 = vpop.permute.xlu0 %922 }
 0x7dc   :  { %v925_v20 = vmul.f32 %v923_v16, %v905_v5 }
 0x7de   :  { %v926_v22 = vmax.f32 %v4796_v61, %v925_v20  ;;  %928 = vrot.lane.b32.xlu1 %v925_v20, %s4676_s12  ;;  %v280_v61 = vand.u32 3, %v4774_v23 }
 0x7e0   :  { %vm468_vm3 = vcmp.eq.s32.totalorder %v280_v61, 0  ;;  %vm538_vm4 = vcmp.eq.s32.totalorder %v280_v61, 1 }
 0x7e1   :  { %v484_v6 = vsel %vm468_vm3, %v243_v1, 0.0  ;;  %v554_v10 = vsel %vm538_vm4, %v243_v1, 0.0 }
 0x7e2   :  { %v4866_v20 = vsel %vm500_vm10, %v484_v6, -inf }
 0x850   :  { %v929_v24 = vpop.permute.xlu1 %928 }
 0x851   :  { %4152 = vmatmul.mubr.msk.f32.vlgmr.msra.gmra.mrb[6].mxu1 %vm619_vm2, %v929_v24  ;;  %v4872_v24 = vsel %vm500_vm10, %v485_v11, -inf  ;;  %v269_v11 = vadd.s32 72, %v4774_v23 }
 0x852   :  { %4288 = vmatpush1.bf16.msra.mxu1 %v4717_v9  ;;  %1104 = vmatprep.mubr.f32.mxu1 %v4674_v7 }
 0x853   :  { %4290 = vmatprep.subr.bf16.mxu1 %v4738_v17 }
 0x856   :  { %4292 = vmatpush1.bf16.msra.mxu1 %v4746_v19 }
 0x857   :  { %4302 = vmatprep.subr.bf16.mxu1 %v4715_v8 }
 0x924   :  { %v998_v25 = vpop.f32.mrb[6].mxu1 }
 0x925   :  { %v1000_v27 = vpop.f32.mrb[7].mxu1 }
 0x926   :  { %v1003_v28 = vsel %vm617_vm1, %v998_v25, %v1000_v27  ;;  %v4877_v27 = vsel %vm500_vm10, %v555_v12, -inf }
 0x927   :  { %v1005_v29 = vrot.slane %v1003_v28, 4 }
 0x929   :  { %v1007_v30 = vadd.f32 %v4777_v26, %v1005_v29  ;;  %v14_v26 = vld [vmem:[%s5444_s0 + $0x10] sm:$0xff] }
 0x92a   :  { %4219 = vmatprep.mubr.msk.f32.mxu0 %vm33_vm0, %v14_v26  ;;  %v245_v3 = vmax.f32 %v14_v26, 0.0  ;;  %v266_v26 = vadd.s32 48, %v4774_v23 }
 0x92b   :  { %4528 = vtanh.f32 %v1007_v30  ;;  %4220 = vmatmul.mubr.msk.f32.gmra.mrb[2].mxu0 %vm33_vm0, %v15_v41  ;;  %v4886_v30 = vsel %vm500_vm10, %v487_v14, -inf }
 0x92c   :  { %v486_v18 = vsel %vm470_vm7, %v245_v3, 0.0  ;;  %v556_v13 = vsel %vm540_vm8, %v245_v3, 0.0 }
 0x92d   :  { %v4880_v28 = vsel %vm500_vm10, %v486_v18, -inf  ;;  %v4883_v29 = vsel %vm500_vm10, %v556_v13, -inf }
 0x935   :  { %v4529_v31 = vpop.eup %4528 }
 0x936   :  { %1016 = vrot.lane.b32.xlu0 %v4529_v31, %s4675_s11  ;;  %v1009_v32 = vmul.f32 0.5, %v4529_v31  ;;  %v4889_v31 = vsel %vm500_vm10, %v557_v15, -inf }
 0x938   :  { %v1010_v33 = vadd.f32 0.5, %v1009_v32  ;;  %v16_v32 = vld [vmem:[%s5444_s0 + $0x20] sm:$0xff] }
 0x939   :  { %4222 = vmatprep.mubr.msk.f32.mxu0 %vm33_vm0, %v16_v32 }
 0x93a   :  { %v1014_v37 = vmul.f32 %v1012_v36, %v1010_v33  ;;  %v18_v36 = vld [vmem:[%s5444_s0 + $0x30] sm:$0xff] }
 0x9a8   :  { %v1017_v34 = vpop.permute.xlu0 %1016 }
 0x9a9   :  { %v1019_v35 = vmul.f32 %v1017_v34, %v1010_v33  ;;  %v17_v34 = vld [vmem:[%s5444_s0 + $0x28] sm:$0xff] }
 0x9aa   :  { %4223 = vmatmul.mubr.msk.f32.gmra.mrb[4].mxu0 %vm33_vm0, %v17_v34 }
 0x9ab   :  { %1021 = vrot.lane.b32.xlu1 %v1019_v35, %s4676_s12  ;;  %v265_v35 = vadd.s32 40, %v4774_v23  ;;  %4225 = vmatprep.mubr.msk.f32.mxu0 %vm33_vm0, %v18_v36 }
 0x9fe   :  { %v4845_v47 = vpop.f32.mrb[2].mxu0 }
 0x9ff   :  { %v4847_v48 = vpop.f32.mrb[3].mxu0 }
 0xa1d   :  { %v1022_v38 = vpop.permute.xlu1 %1021 }
 0xa1e   :  { %v4824_v39 = vadd.f32 %v1022_v38, %v1014_v37  ;;  %v247_v37 = vmax.f32 %v16_v32, 0.0  ;;  %v248_v38 = vmax.f32 %v17_v34, 0.0 }
 0xa20   :  { %4530 = vtanh.f32 %v4824_v39  ;;  %v1117_v5 = vrot.slane %v4824_v39, 4  ;;  %v249_v39 = vmax.f32 %v18_v36, 0.0 }
 0xa2a   :  { %v4531_v40 = vpop.eup %4530 }
 0xa2b   :  { %1027 = vrot.lane.b32.xlu0 %v4531_v40, %s4675_s11  ;;  %v19_v40 = vld [vmem:[%s5444_s0 + $0x38] sm:$0xff] }
 0xa2c   :  { %4226 = vmatmul.mubr.msk.f32.gmra.mrb[6].mxu0 %vm33_vm0, %v19_v40 }
 0xa9d   :  { %v1028_v42 = vpop.permute.xlu0 %1027 }
 0xa9e   :  { %v1030_v43 = vmul.f32 %v1028_v42, %v1010_v33  ;;  %v264_v33 = vadd.s32 32, %v4774_v23  ;;  %v315_v42 = vand.u32 3, %v265_v35 }
 0xaa0   :  { %v1032_v44 = vrot.slane %v1030_v43, 4  ;;  %v308_v41 = vand.u32 3, %v264_v33  ;;  %v250_v43 = vmax.f32 %v19_v40, 0.0  ;;  %vm473_vm14 = vcmp.eq.s32.totalorder %v315_v42, 0 }
 0xaa1   :  { %vm543_vm15 = vcmp.eq.s32.totalorder %v315_v42, 1 }
 0xaa2   :  { %v4836_v45 = vmax.f32 %v926_v22, %v1032_v44  ;;  %1036 = vrot.lane.b32.xlu1 %v1032_v44, %s4676_s12  ;;  %v4869_v22 = vsel %vm500_vm10, %v554_v10, -inf  ;;  %v267_v44 = vadd.s32 56, %v4774_v23  ;;  %vm472_vm12 = vcmp.eq.s32.totalorder %v308_v41, 0 }
 0xaa3   :  { %vm542_vm13 = vcmp.eq.s32.totalorder %v308_v41, 1  ;;  %v559_v58 = vsel %vm543_vm15, %v248_v38, 0.0 }
 0xaa4   :  { %v4927_v62 = vsel %vm500_vm10, %v559_v58, -inf  ;;  %v329_v3 = vand.u32 3, %v267_v44 }
 0xaa5   :  { %v577_v2 = vmax.f32 %v4877_v27, %v4927_v62 }
 0xaa6   :  { %vm475_vm5 = vcmp.eq.s32.totalorder %v329_v3, 0  ;;  %vm545_vm6 = vcmp.eq.s32.totalorder %v329_v3, 1 }
 0xb14   :  { %v1037_v46 = vpop.permute.xlu1 %1036 }
 0xb15   :  { %4153 = vmatmul.mubr.msk.f32.vlgmr.msra.gmra.mrb[8].mxu1 %vm619_vm2, %v1037_v46  ;;  %v20_v46 = vld [vmem:[%s5444_s0 + $0x40] sm:$0xff] }
 0xb16   :  { %4304 = vmatpush1.bf16.msra.mxu1 %v4717_v9  ;;  %1314 = vmatprep.mubr.f32.mxu1 %v4674_v7 }
 0xb17   :  { %4306 = vmatprep.subr.bf16.mxu1 %v4738_v17  ;;  %4228 = vmatprep.mubr.msk.f32.mxu0 %vm33_vm0, %v20_v46 }
 0xb1a   :  { %4308 = vmatpush1.bf16.msra.mxu1 %v4746_v19 }
 0xb1b   :  { %4318 = vmatprep.subr.bf16.mxu1 %v4715_v8 }
 0xbe8   :  { %v1106_v49 = vpop.f32.mrb[8].mxu1 }
 0xbe9   :  { %v1108_v50 = vpop.f32.mrb[9].mxu1 }
 0xbea   :  { %v1111_v51 = vsel %vm617_vm1, %v1106_v49, %v1108_v50  ;;  %v4916_v49 = vld [vmem:[%s5444_s0 + $0x48] sm:$0xff]  ;;  %v322_v50 = vand.u32 3, %v266_v26 }
 0xbeb   :  { %v1112_v52 = vadd.f32 %v1111_v51, %v4847_v48  ;;  %v251_v51 = vmax.f32 %v20_v46, 0.0  ;;  %4229 = vmatmul.mubr.msk.f32.gmra.mrb[8].mxu0 %vm33_vm0, %v4916_v49 }
 0xbec   :  { %vm474_vm3 = vcmp.eq.s32.totalorder %v322_v50, 0  ;;  %vm544_vm4 = vcmp.eq.s32.totalorder %v322_v50, 1 }
 0xbed   :  { %4532 = vtanh.f32 %v1112_v52  ;;  %v268_v52 = vadd.s32 64, %v4774_v23  ;;  %v490_v6 = vsel %vm474_vm3, %v249_v39, 0.0  ;;  %v560_v10 = vsel %vm544_vm4, %v249_v39, 0.0 }
 0xbee   :  { %v509_v13 = vsel %vm500_vm10, %v490_v6, -inf  ;;  %v578_v14 = vsel %vm500_vm10, %v560_v10, -inf  ;;  %v273_v10 = vadd.s32 104, %v4774_v23 }
 0xbef   :  { %v336_v4 = vand.u32 3, %v268_v52  ;;  %v579_v15 = vmax.f32 %v4883_v29, %v578_v14 }
 0xbf0   :  { %v371_v14 = vand.u32 3, %v273_v10 }
 0xbf1   :  { %vm476_vm7 = vcmp.eq.s32.totalorder %v336_v4, 0  ;;  %vm546_vm8 = vcmp.eq.s32.totalorder %v336_v4, 1 }
 0xbf2   :  { %v492_v33 = vsel %vm476_vm7, %v251_v51, 0.0  ;;  %v562_v34 = vsel %vm546_vm8, %v251_v51, 0.0  ;;  %v272_v51 = vadd.s32 96, %v4774_v23 }
 0xbf3   :  { %v513_v35 = vsel %vm500_vm10, %v492_v33, -inf  ;;  %v582_v36 = vsel %vm500_vm10, %v562_v34, -inf }
 0xbf4   :  { %v364_v3 = vand.u32 3, %v272_v51 }
 0xbf6   :  { %vm480_vm3 = vcmp.eq.s32.totalorder %v364_v3, 0  ;;  %vm550_vm4 = vcmp.eq.s32.totalorder %v364_v3, 1 }
 0xbf7   :  { %v4533_v53 = vpop.eup %4532 }
 0xbf8   :  { %1121 = vrot.lane.b32.xlu0 %v4533_v53, %s4675_s11  ;;  %v1114_v54 = vmul.f32 0.5, %v4533_v53  ;;  %v252_v53 = vmax.f32 %v4916_v49, 0.0  ;;  %v27_v49 = vld [vmem:[%s5444_s0 + $0x78] sm:$0xff] }
 0xbfa   :  { %v4853_v55 = vadd.f32 0.5, %v1114_v54  ;;  %v488_v54 = vsel %vm472_vm12, %v247_v37, 0.0 }
 0xbfb   :  { %v505_v59 = vsel %vm500_vm10, %v488_v54, -inf }
 0xbfc   :  { %v1119_v21 = vmul.f32 %v1117_v5, %v4853_v55  ;;  %v506_v63 = vmax.f32 %v4866_v20, %v505_v59  ;;  %v22_v5 = vld [vmem:[%s5444_s0 + $0x50] sm:$0xff]  ;;  %v561_v20 = vsel %vm545_vm6, %v250_v43, 0.0 }
 0xbfd   :  { %v253_v12 = vmax.f32 %v22_v5, 0.0  ;;  %4231 = vmatprep.mubr.msk.f32.mxu0 %vm33_vm0, %v22_v5  ;;  %v580_v27 = vsel %vm500_vm10, %v561_v20, -inf }
 0xbfe   :  { %v581_v32 = vmax.f32 %v4889_v31, %v580_v27  ;;  %v4963_v39 = vmax.f32 %v506_v63, %v513_v35  ;;  %v25_v31 = vld [vmem:[%s5444_s0 + $0x68] sm:$0xff] }
 0xbff   :  { %v256_v6 = vmax.f32 %v25_v31, 0.0 }
 0xc6a   :  { %v1122_v56 = vpop.permute.xlu0 %1121 }
 0xc6b   :  { %v1124_v57 = vmul.f32 %v1122_v56, %v4853_v55  ;;  %v558_v56 = vsel %vm542_vm13, %v247_v37, 0.0  ;;  %v343_v37 = vand.u32 3, %v269_v11 }
 0xc6c   :  { %v574_v60 = vsel %vm500_vm10, %v558_v56, -inf }
 0xc6d   :  { %1126 = vrot.lane.b32.xlu1 %v1124_v57, %s4676_s12  ;;  %v489_v57 = vsel %vm473_vm14, %v248_v38, 0.0  ;;  %v575_v0 = vmax.f32 %v4869_v22, %v574_v60  ;;  %v23_v22 = vld [vmem:[%s5444_s0 + $0x58] sm:$0xff]  ;;  %v270_v38 = vadd.s32 80, %v4774_v23  ;;  %vm477_vm9 = vcmp.eq.s32.totalorder %v343_v37, 0 }
 0xc6e   :  { %v4924_v61 = vsel %vm500_vm10, %v489_v57, -inf  ;;  %4232 = vmatmul.mubr.msk.f32.gmra.mrb[10].mxu0 %vm33_vm0, %v23_v22  ;;  %v254_v40 = vmax.f32 %v23_v22, 0.0  ;;  %vm547_vm11 = vcmp.eq.s32.totalorder %v343_v37, 1  ;;  %v493_v44 = vsel %vm477_vm9, %v252_v53, 0.0 }
 0xc6f   :  { %v508_v1 = vmax.f32 %v4872_v24, %v4924_v61  ;;  %v4965_v26 = vmax.f32 %v575_v0, %v582_v36  ;;  %v350_v41 = vand.u32 3, %v270_v38  ;;  %v563_v46 = vsel %vm547_vm11, %v252_v53, 0.0 }
 0xc70   :  { %v515_v52 = vsel %vm500_vm10, %v493_v44, -inf  ;;  %v584_v54 = vsel %vm500_vm10, %v563_v46, -inf  ;;  %v275_v22 = vadd.s32 120, %v4774_v23  ;;  %vm3987_vm11 = vcmask 654336  }
 0xc71   :  { %vm478_vm12 = vcmp.eq.s32.totalorder %v350_v41, 0  ;;  %vm548_vm13 = vcmp.eq.s32.totalorder %v350_v41, 1  ;;  %v516_v56 = vmax.f32 %v508_v1, %v515_v52  ;;  %v585_v57 = vmax.f32 %v577_v2, %v584_v54 }
 0xc72   :  { %v494_v58 = vsel %vm478_vm12, %v253_v12, 0.0  ;;  %v564_v59 = vsel %vm548_vm13, %v253_v12, 0.0  ;;  %v274_v12 = vadd.s32 112, %v4774_v23  ;;  %vm3994_vm12 = vcmask 656384  }
 0xc73   :  { %v517_v53 = vsel %vm500_vm10, %v494_v58, -inf  ;;  %v586_v60 = vsel %vm500_vm10, %v564_v59, -inf  ;;  %vm4033_vm13 = vcmask 1046528  }
 0xc74   :  { %v587_v62 = vmax.f32 %v579_v15, %v586_v60  ;;  %v378_v20 = vand.u32 3, %v274_v12 }
 0xc76   :  { %vm482_vm6 = vcmp.eq.s32.totalorder %v378_v20, 0  ;;  %vm552_vm7 = vcmp.eq.s32.totalorder %v378_v20, 1 }
 0xcdf   :  { %v1127_v16 = vpop.permute.xlu1 %1126 }
 0xce0   :  { %v4874_v25 = vadd.f32 %v1127_v16, %v1119_v21  ;;  %v510_v21 = vmax.f32 %v4880_v28, %v509_v13  ;;  %v491_v16 = vsel %vm475_vm5, %v250_v43, 0.0  ;;  %v24_v28 = vld [vmem:[%s5444_s0 + $0x60] sm:$0xff]  ;;  %v26_v43 = vld [vmem:[%s5444_s0 + $0x70] sm:$0xff]  ;;  %vm551_vm5 = vcmp.eq.s32.totalorder %v371_v14, 1 }
 0xce1   :  { %v511_v24 = vsel %vm500_vm10, %v491_v16, -inf  ;;  %4234 = vmatprep.mubr.msk.f32.mxu0 %vm33_vm0, %v24_v28  ;;  %v255_v42 = vmax.f32 %v24_v28, 0.0  ;;  %v257_v11 = vmax.f32 %v26_v43, 0.0 }
 0xce2   :  { %4534 = vtanh.f32 %v4874_v25  ;;  %v512_v29 = vmax.f32 %v4886_v30, %v511_v24  ;;  %v271_v30 = vadd.s32 88, %v4774_v23  ;;  %4235 = vmatmul.mubr.msk.f32.gmra.mrb[12].mxu0 %vm33_vm0, %v25_v31  ;;  %v518_v61 = vmax.f32 %v510_v21, %v517_v53  ;;  %v5013_v53 = vpop.f32.mrb[4].mxu0 }
 0xce3   :  { %4237 = vmatprep.mubr.msk.f32.mxu0 %vm33_vm0, %v26_v43  ;;  %v566_v13 = vsel %vm550_vm4, %v255_v42, 0.0  ;;  %v258_v21 = vmax.f32 %v27_v49, 0.0  ;;  %v498_v34 = vsel %vm482_vm6, %v257_v11, 0.0  ;;  %v568_v35 = vsel %vm552_vm7, %v257_v11, 0.0  ;;  %v5015_v60 = vpop.f32.mrb[5].mxu0 }
 0xce4   :  { %v357_v50 = vand.u32 3, %v271_v30  ;;  %v590_v16 = vsel %vm500_vm10, %v566_v13, -inf  ;;  %v525_v38 = vsel %vm500_vm10, %v498_v34, -inf  ;;  %v385_v30 = vand.u32 3, %v275_v22 }
 0xce5   :  { %v591_v27 = vmax.f32 %v4965_v26, %v590_v16  ;;  %v1222_v20 = vrot.slane %v4874_v25, 4  ;;  %vm4029_vm4 = vcmask 56320  }
 0xce6   :  { %vm479_vm14 = vcmp.eq.s32.totalorder %v357_v50, 0  ;;  %vm549_vm15 = vcmp.eq.s32.totalorder %v357_v50, 1  ;;  %4238 = vmatmul.mubr.msk.f32.gmra.mrb[14].mxu0 %vm33_vm0, %v27_v49  ;;  %vm481_vm0 = vcmp.eq.s32.totalorder %v371_v14, 0  ;;  %vm483_vm8 = vcmp.eq.s32.totalorder %v385_v30, 0 }
 0xce7   :  { %v495_v63 = vsel %vm479_vm14, %v254_v40, 0.0  ;;  %v565_v0 = vsel %vm549_vm15, %v254_v40, 0.0  ;;  %1206 = vmatprep.mubr.f32.mxu0 %v4674_v7  ;;  %v497_v28 = vsel %vm481_vm0, %v256_v6, 0.0  ;;  %v526_v40 = vmax.f32 %v518_v61, %v525_v38  ;;  %v5017_v61 = vpop.f32.mrb[6].mxu0 }
 0xce8   :  { %v519_v1 = vsel %vm500_vm10, %v495_v63, -inf  ;;  %v588_v2 = vsel %vm500_vm10, %v565_v0, -inf  ;;  %vm553_vm9 = vcmp.eq.s32.totalorder %v385_v30, 1  ;;  %vm4679_vm14 = vmmov 0  }
 0xce9   :  { %v520_v4 = vmax.f32 %v512_v29, %v519_v1  ;;  %v589_v5 = vmax.f32 %v581_v32, %v588_v2  ;;  %v567_v29 = vsel %vm551_vm5, %v256_v6, 0.0  ;;  %v523_v32 = vsel %vm500_vm10, %v497_v28, -inf }
 0xcea   :  { %v592_v33 = vsel %vm500_vm10, %v567_v29, -inf  ;;  %v524_v36 = vmax.f32 %v516_v56, %v523_v32  ;;  %v569_v43 = vsel %vm553_vm9, %v258_v21, 0.0  ;;  %vm4024_vm15 = vcmask 39936  }
 0xceb   :  { %v593_v37 = vmax.f32 %v585_v57, %v592_v33  ;;  %v596_v46 = vsel %vm500_vm10, %v569_v43, -inf  ;;  %vm4107_vm0 = vcmask 25600  }
 0xcec   :  { %v4535_v18 = vpop.eup %4534  ;;  %v597_v51 = vmax.f32 %v589_v5, %v596_v46 }
 0xced   :  { %1132 = vrot.lane.b32.xlu0 %v4535_v18, %s4675_s11  ;;  %v496_v18 = vsel %vm480_vm3, %v255_v42, 0.0  ;;  %v598_v41 = vmax.f32 %v591_v27, %v593_v37  ;;  %v499_v42 = vsel %vm483_vm8, %v258_v21, 0.0  ;;  %vm4026_vm3 = vcmask 48128  }
 0xcee   :  { %v521_v15 = vsel %vm500_vm10, %v496_v18, -inf  ;;  %v527_v44 = vsel %vm500_vm10, %v499_v42, -inf }
 0xcef   :  { %v522_v24 = vmax.f32 %v4963_v39, %v521_v15  ;;  %v594_v39 = vsel %vm500_vm10, %v568_v35, -inf  ;;  %v528_v50 = vmax.f32 %v520_v4, %v527_v44 }
 0xcf0   :  { %v595_v26 = vmax.f32 %v587_v62, %v594_v39  ;;  %v5019_v62 = vpop.f32.mrb[7].mxu0 }
 0xcf1   :  { %v529_v31 = vmax.f32 %v522_v24, %v524_v36  ;;  %v530_v52 = vmax.f32 %v526_v40, %v528_v50  ;;  %v5021_v63 = vpop.f32.mrb[8].mxu0 }
 0xcf2   :  { %v599_v54 = vmax.f32 %v595_v26, %v597_v51  ;;  %v5023_v0 = vpop.f32.mrb[9].mxu0 }
 0xcf3   :  { %v5006_v56 = vmax.f32 %v529_v31, %v530_v52 }
 0xcf4   :  { %v5008_v57 = vmax.f32 %v598_v41, %v599_v54 }
 0xd41   :  { %v5025_v1 = vpop.f32.mrb[10].mxu0 }
 0xd42   :  { %v5027_v2 = vpop.f32.mrb[11].mxu0 }
 0xd5f   :  { %v1133_v58 = vpop.permute.xlu0 %1132 }
 0xd60   :  { %v1135_v59 = vmul.f32 %v1133_v58, %v4853_v55 }
 0xd62   :  { %v1136_v49 = vmax.f32 %v4836_v45, %v1135_v59  ;;  %1138 = vrot.lane.b32.xlu1 %v1135_v59, %s4676_s12 }
 0xdb5   :  { %v5029_v55 = vpop.f32.mrb[12].mxu0 }
 0xdb6   :  { %v5031_v45 = vpop.f32.mrb[13].mxu0 }
 0xdb9   :  { %v5033_v3 = vpop.f32.mrb[14].mxu0 }
 0xdba   :  { %v5035_v4 = vpop.f32.mrb[15].mxu0 }
 0xdd4   :  { %v1139_v5 = vpop.permute.xlu1 %1138 }
 0xdd5   :  { %4154 = vmatmul.mubr.msk.f32.vlgmr.msra.gmra.mrb[16].mxu0 %vm619_vm2, %v1139_v5 }
 0xdd6   :  { %4312 = vmatpush1.bf16.msra.mxu0 %v4717_v9  ;;  %1416 = vmatprep.mubr.f32.mxu0 %v4674_v7 }
 0xdd7   :  { %4314 = vmatprep.subr.bf16.mxu0 %v4738_v17 }
 0xdda   :  { %4316 = vmatpush1.bf16.msra.mxu0 %v4746_v19 }
 0xddb   :  { %4326 = vmatprep.subr.bf16.mxu0 %v4715_v8 }
 0xea8   :  { %v1208_v6 = vpop.f32.mrb[16].mxu0 }
 0xea9   :  { %v1210_v10 = vpop.f32.mrb[17].mxu0 }
 0xeaa   :  { %v1213_v11 = vsel %vm617_vm1, %v1208_v6, %v1210_v10 }
 0xeab   :  { %v1215_v12 = vrot.slane %v1213_v11, 4 }
 0xead   :  { %v1217_v18 = vadd.f32 %v1215_v12, %v4847_v48 }
 0xeaf   :  { %4536 = vtanh.f32 %v1217_v18 }
 0xeb9   :  { %v4537_v13 = vpop.eup %4536 }
 0xeba   :  { %1226 = vrot.lane.b32.xlu0 %v4537_v13, %s4675_s11  ;;  %v1219_v14 = vmul.f32 0.5, %v4537_v13 }
 0xebc   :  { %v1220_v21 = vadd.f32 0.5, %v1219_v14 }
 0xebe   :  { %v1224_v22 = vmul.f32 %v1222_v20, %v1220_v21 }
 0xf2c   :  { %v1227_v15 = vpop.permute.xlu0 %1226 }
 0xf2d   :  { %v1229_v16 = vmul.f32 %v1227_v15, %v1220_v21 }
 0xf2f   :  { %1231 = vrot.lane.b32.xlu1 %v1229_v16, %s4676_s12 }
 0xfa1   :  { %v1232_v24 = vpop.permute.xlu1 %1231 }
 0xfa2   :  { %v1234_v27 = vadd.f32 %v1232_v24, %v1224_v22 }
 0xfa4   :  { %4538 = vtanh.f32 %v1234_v27  ;;  %v1327_v31 = vrot.slane %v1234_v27, 4 }
 0xfae   :  { %v4539_v28 = vpop.eup %4538 }
 0xfaf   :  { %1237 = vrot.lane.b32.xlu0 %v4539_v28, %s4675_s11 }
0x1021   :  { %v1238_v48 = vpop.permute.xlu0 %1237 }
0x1022   :  { %v1240_v29 = vmul.f32 %v1238_v48, %v1220_v21 }
0x1024   :  { %v1242_v32 = vrot.slane %v1240_v29, 4 }
0x1026   :  { %v5050_v33 = vmax.f32 %v1136_v49, %v1242_v32  ;;  %1246 = vrot.lane.b32.xlu1 %v1242_v32, %s4676_s12 }
0x1098   :  { %v1247_v34 = vpop.permute.xlu1 %1246 }
0x1099   :  { %4155 = vmatmul.mubr.msk.f32.vlgmr.msra.gmra.mrb[10].mxu1 %vm619_vm2, %v1247_v34 }
0x109a   :  { %4320 = vmatpush1.bf16.msra.mxu1 %v4717_v9  ;;  %1524 = vmatprep.mubr.f32.mxu1 %v4674_v7 }
0x109b   :  { %4322 = vmatprep.subr.bf16.mxu1 %v4738_v17 }
0x109e   :  { %4324 = vmatpush1.bf16.msra.mxu1 %v4746_v19 }
0x109f   :  { %4334 = vmatprep.subr.bf16.mxu1 %v4715_v8 }
0x116c   :  { %v1316_v25 = vpop.f32.mrb[10].mxu1 }
0x116d   :  { %v1318_v35 = vpop.f32.mrb[11].mxu1 }
0x116e   :  { %v1321_v36 = vsel %vm617_vm1, %v1316_v25, %v1318_v35 }
0x116f   :  { %v1322_v37 = vadd.f32 %v4845_v47, %v1321_v36 }
0x1171   :  { %4540 = vtanh.f32 %v1322_v37 }
0x117b   :  { %v4541_v38 = vpop.eup %4540 }
0x117c   :  { %1331 = vrot.lane.b32.xlu0 %v4541_v38, %s4675_s11  ;;  %v1324_v39 = vmul.f32 0.5, %v4541_v38 }
0x117e   :  { %v1325_v40 = vadd.f32 0.5, %v1324_v39 }
0x1180   :  { %v1329_v41 = vmul.f32 %v1327_v31, %v1325_v40 }
0x11ee   :  { %v1332_v26 = vpop.permute.xlu0 %1331 }
0x11ef   :  { %v1334_v30 = vmul.f32 %v1332_v26, %v1325_v40 }
0x11f1   :  { %1336 = vrot.lane.b32.xlu1 %v1334_v30, %s4676_s12 }
0x1263   :  { %v1337_v42 = vpop.permute.xlu1 %1336 }
0x1264   :  { %v1339_v43 = vadd.f32 %v1337_v42, %v1329_v41 }
0x1266   :  { %4542 = vtanh.f32 %v1339_v43  ;;  %v1432_v13 = vrot.slane %v1339_v43, 4 }
0x1270   :  { %v4543_v44 = vpop.eup %4542 }
0x1271   :  { %1342 = vrot.lane.b32.xlu0 %v4543_v44, %s4675_s11 }
0x12e3   :  { %v1343_v46 = vpop.permute.xlu0 %1342 }
0x12e4   :  { %v1345_v50 = vmul.f32 %v1343_v46, %v1325_v40 }
0x12e6   :  { %v1346_v51 = vmax.f32 %v5050_v33, %v1345_v50  ;;  %1348 = vrot.lane.b32.xlu1 %v1345_v50, %s4676_s12 }
0x1358   :  { %v1349_v52 = vpop.permute.xlu1 %1348 }
0x1359   :  { %4156 = vmatmul.mubr.msk.f32.vlgmr.msra.gmra.mrb[18].mxu0 %vm619_vm2, %v1349_v52 }
0x135a   :  { %4328 = vmatpush1.bf16.msra.mxu0 %v4717_v9  ;;  %1626 = vmatprep.mubr.f32.mxu0 %v4674_v7 }
0x135b   :  { %4330 = vmatprep.subr.bf16.mxu0 %v4738_v17 }
0x135e   :  { %4332 = vmatpush1.bf16.msra.mxu0 %v4746_v19 }
0x135f   :  { %4342 = vmatprep.subr.bf16.mxu0 %v4715_v8 }
0x142c   :  { %v1418_v54 = vpop.f32.mrb[18].mxu0 }
0x142d   :  { %v1420_v58 = vpop.f32.mrb[19].mxu0 }
0x142e   :  { %v1423_v59 = vsel %vm617_vm1, %v1418_v54, %v1420_v58 }
0x142f   :  { %v1425_v49 = vrot.slane %v1423_v59, 4 }
0x1431   :  { %v1427_v5 = vadd.f32 %v4845_v47, %v1425_v49 }
0x1433   :  { %4544 = vtanh.f32 %v1427_v5 }
0x143d   :  { %v4545_v6 = vpop.eup %4544 }
0x143e   :  { %1436 = vrot.lane.b32.xlu0 %v4545_v6, %s4675_s11  ;;  %v1429_v10 = vmul.f32 0.5, %v4545_v6 }
0x1440   :  { %v1430_v11 = vadd.f32 0.5, %v1429_v10 }
0x1442   :  { %v1434_v14 = vmul.f32 %v1432_v13, %v1430_v11 }
0x14b0   :  { %v1437_v12 = vpop.permute.xlu0 %1436 }
0x14b1   :  { %v1439_v18 = vmul.f32 %v1437_v12, %v1430_v11 }
0x14b3   :  { %1441 = vrot.lane.b32.xlu1 %v1439_v18, %s4676_s12 }
0x1525   :  { %v1442_v21 = vpop.permute.xlu1 %1441 }
0x1526   :  { %v1444_v15 = vadd.f32 %v1442_v21, %v1434_v14 }
0x1528   :  { %4546 = vtanh.f32 %v1444_v15  ;;  %v1537_v37 = vrot.slane %v1444_v15, 4 }
0x1532   :  { %v4547_v16 = vpop.eup %4546 }
0x1533   :  { %1447 = vrot.lane.b32.xlu0 %v4547_v16, %s4675_s11 }
0x15a5   :  { %v1448_v20 = vpop.permute.xlu0 %1447 }
0x15a6   :  { %v1450_v47 = vmul.f32 %v1448_v20, %v1430_v11 }
0x15a8   :  { %v1452_v22 = vrot.slane %v1450_v47, 4 }
0x15aa   :  { %v5079_v24 = vmax.f32 %v1346_v51, %v1452_v22  ;;  %1456 = vrot.lane.b32.xlu1 %v1452_v22, %s4676_s12 }
0x161c   :  { %v1457_v27 = vpop.permute.xlu1 %1456 }
0x161d   :  { %4157 = vmatmul.mubr.msk.f32.vlgmr.msra.gmra.mrb[12].mxu1 %vm619_vm2, %v1457_v27 }
0x161e   :  { %4336 = vmatpush1.bf16.msra.mxu1 %v4717_v9  ;;  %1734 = vmatprep.mubr.f32.mxu1 %v4674_v7 }
0x161f   :  { %4338 = vmatprep.subr.bf16.mxu1 %v4738_v17 }
0x1622   :  { %4340 = vmatpush1.bf16.msra.mxu1 %v4746_v19 }
0x1623   :  { %4350 = vmatprep.subr.bf16.mxu1 %v4715_v8 }
0x16f0   :  { %v1526_v28 = vpop.f32.mrb[12].mxu1 }
0x16f1   :  { %v1528_v48 = vpop.f32.mrb[13].mxu1 }
0x16f2   :  { %v1531_v29 = vsel %vm617_vm1, %v1526_v28, %v1528_v48 }
0x16f3   :  { %v1532_v32 = vadd.f32 %v1531_v29, %v5015_v60 }
0x16f5   :  { %4548 = vtanh.f32 %v1532_v32 }
0x16ff   :  { %v4549_v33 = vpop.eup %4548 }
0x1700   :  { %1541 = vrot.lane.b32.xlu0 %v4549_v33, %s4675_s11  ;;  %v1534_v34 = vmul.f32 0.5, %v4549_v33 }
0x1702   :  { %v1535_v25 = vadd.f32 0.5, %v1534_v34 }
0x1704   :  { %v1539_v38 = vmul.f32 %v1537_v37, %v1535_v25 }
0x1772   :  { %v1542_v35 = vpop.permute.xlu0 %1541 }
0x1773   :  { %v1544_v36 = vmul.f32 %v1542_v35, %v1535_v25 }
0x1775   :  { %1546 = vrot.lane.b32.xlu1 %v1544_v36, %s4676_s12 }
0x17e7   :  { %v1547_v39 = vpop.permute.xlu1 %1546 }
0x17e8   :  { %v1549_v40 = vadd.f32 %v1547_v39, %v1539_v38 }
0x17ea   :  { %4550 = vtanh.f32 %v1549_v40  ;;  %v1642_v5 = vrot.slane %v1549_v40, 4 }
0x17f4   :  { %v4551_v26 = vpop.eup %4550 }
0x17f5   :  { %1552 = vrot.lane.b32.xlu0 %v4551_v26, %s4675_s11 }
0x1867   :  { %v1553_v30 = vpop.permute.xlu0 %1552 }
0x1868   :  { %v1555_v31 = vmul.f32 %v1553_v30, %v1535_v25 }
0x186a   :  { %v1556_v41 = vmax.f32 %v5079_v24, %v1555_v31  ;;  %1558 = vrot.lane.b32.xlu1 %v1555_v31, %s4676_s12 }
0x18dc   :  { %v1559_v42 = vpop.permute.xlu1 %1558 }
0x18dd   :  { %4158 = vmatmul.mubr.msk.f32.vlgmr.msra.gmra.mrb[20].mxu0 %vm619_vm2, %v1559_v42 }
0x18de   :  { %4344 = vmatpush1.bf16.msra.mxu0 %v4717_v9  ;;  %1836 = vmatprep.mubr.f32.mxu0 %v4674_v7 }
0x18df   :  { %4346 = vmatprep.subr.bf16.mxu0 %v4738_v17 }
0x18e2   :  { %4348 = vmatpush1.bf16.msra.mxu0 %v4746_v19 }
0x18e3   :  { %4358 = vmatprep.subr.bf16.mxu0 %v4715_v8 }
0x19b0   :  { %v1628_v43 = vpop.f32.mrb[20].mxu0 }
0x19b1   :  { %v1630_v44 = vpop.f32.mrb[21].mxu0 }
0x19b2   :  { %v1633_v46 = vsel %vm617_vm1, %v1628_v43, %v1630_v44 }
0x19b3   :  { %v1635_v50 = vrot.slane %v1633_v46, 4 }
0x19b5   :  { %v1637_v51 = vadd.f32 %v1635_v50, %v5015_v60 }
0x19b7   :  { %4552 = vtanh.f32 %v1637_v51 }
0x19c1   :  { %v4553_v52 = vpop.eup %4552 }
0x19c2   :  { %1646 = vrot.lane.b32.xlu0 %v4553_v52, %s4675_s11  ;;  %v1639_v54 = vmul.f32 0.5, %v4553_v52 }
0x19c4   :  { %v1640_v58 = vadd.f32 0.5, %v1639_v54 }
0x19c6   :  { %v1644_v6 = vmul.f32 %v1642_v5, %v1640_v58 }
0x1a34   :  { %v1647_v59 = vpop.permute.xlu0 %1646 }
0x1a35   :  { %v1649_v49 = vmul.f32 %v1647_v59, %v1640_v58 }
0x1a37   :  { %1651 = vrot.lane.b32.xlu1 %v1649_v49, %s4676_s12 }
0x1aa9   :  { %v1652_v10 = vpop.permute.xlu1 %1651 }
0x1aaa   :  { %v1654_v11 = vadd.f32 %v1652_v10, %v1644_v6 }
0x1aac   :  { %4554 = vtanh.f32 %v1654_v11  ;;  %v1747_v29 = vrot.slane %v1654_v11, 4 }
0x1ab6   :  { %v4555_v12 = vpop.eup %4554 }
0x1ab7   :  { %1657 = vrot.lane.b32.xlu0 %v4555_v12, %s4675_s11 }
0x1b29   :  { %v1658_v18 = vpop.permute.xlu0 %1657 }
0x1b2a   :  { %v1660_v60 = vmul.f32 %v1658_v18, %v1640_v58 }
0x1b2c   :  { %v1662_v13 = vrot.slane %v1660_v60, 4 }
0x1b2e   :  { %v5108_v14 = vmax.f32 %v1556_v41, %v1662_v13  ;;  %1666 = vrot.lane.b32.xlu1 %v1662_v13, %s4676_s12 }
0x1ba0   :  { %v1667_v21 = vpop.permute.xlu1 %1666 }
0x1ba1   :  { %4159 = vmatmul.mubr.msk.f32.vlgmr.msra.gmra.mrb[14].mxu1 %vm619_vm2, %v1667_v21 }
0x1ba2   :  { %4352 = vmatpush1.bf16.msra.mxu1 %v4717_v9  ;;  %1944 = vmatprep.mubr.f32.mxu1 %v4674_v7 }
0x1ba3   :  { %4354 = vmatprep.subr.bf16.mxu1 %v4738_v17 }
0x1ba6   :  { %4356 = vmatpush1.bf16.msra.mxu1 %v4746_v19 }
0x1ba7   :  { %4366 = vmatprep.subr.bf16.mxu1 %v4715_v8 }
0x1c74   :  { %v1736_v15 = vpop.f32.mrb[14].mxu1 }
0x1c75   :  { %v1738_v16 = vpop.f32.mrb[15].mxu1 }
0x1c76   :  { %v1741_v20 = vsel %vm617_vm1, %v1736_v15, %v1738_v16 }
0x1c77   :  { %v1742_v47 = vadd.f32 %v5013_v53, %v1741_v20 }
0x1c79   :  { %4556 = vtanh.f32 %v1742_v47 }
0x1c83   :  { %v4557_v22 = vpop.eup %4556 }
0x1c84   :  { %1751 = vrot.lane.b32.xlu0 %v4557_v22, %s4675_s11  ;;  %v1744_v24 = vmul.f32 0.5, %v4557_v22 }
0x1c86   :  { %v1745_v27 = vadd.f32 0.5, %v1744_v24 }
0x1c88   :  { %v1749_v32 = vmul.f32 %v1747_v29, %v1745_v27 }
0x1cf6   :  { %v1752_v28 = vpop.permute.xlu0 %1751 }
0x1cf7   :  { %v1754_v48 = vmul.f32 %v1752_v28, %v1745_v27 }
0x1cf9   :  { %1756 = vrot.lane.b32.xlu1 %v1754_v48, %s4676_s12 }
0x1d6b   :  { %v1757_v33 = vpop.permute.xlu1 %1756 }
0x1d6c   :  { %v1759_v34 = vadd.f32 %v1757_v33, %v1749_v32 }
0x1d6e   :  { %4558 = vtanh.f32 %v1759_v34  ;;  %v1852_v50 = vrot.slane %v1759_v34, 4 }
0x1d78   :  { %v4559_v25 = vpop.eup %4558 }
0x1d79   :  { %1762 = vrot.lane.b32.xlu0 %v4559_v25, %s4675_s11 }
0x1deb   :  { %v1763_v35 = vpop.permute.xlu0 %1762 }
0x1dec   :  { %v1765_v36 = vmul.f32 %v1763_v35, %v1745_v27 }
0x1dee   :  { %v1766_v37 = vmax.f32 %v5108_v14, %v1765_v36  ;;  %1768 = vrot.lane.b32.xlu1 %v1765_v36, %s4676_s12 }
0x1e60   :  { %v1769_v38 = vpop.permute.xlu1 %1768 }
0x1e61   :  { %4160 = vmatmul.mubr.msk.f32.vlgmr.msra.gmra.mrb[22].mxu0 %vm619_vm2, %v1769_v38 }
0x1e62   :  { %4360 = vmatpush1.bf16.msra.mxu0 %v4717_v9  ;;  %2046 = vmatprep.mubr.f32.mxu0 %v4674_v7 }
0x1e63   :  { %4362 = vmatprep.subr.bf16.mxu0 %v4738_v17 }
0x1e66   :  { %4364 = vmatpush1.bf16.msra.mxu0 %v4746_v19 }
0x1e67   :  { %4374 = vmatprep.subr.bf16.mxu0 %v4715_v8 }
0x1f34   :  { %v1838_v39 = vpop.f32.mrb[22].mxu0 }
0x1f35   :  { %v1840_v40 = vpop.f32.mrb[23].mxu0 }
0x1f36   :  { %v1843_v26 = vsel %vm617_vm1, %v1838_v39, %v1840_v40 }
0x1f37   :  { %v1845_v30 = vrot.slane %v1843_v26, 4 }
0x1f39   :  { %v1847_v31 = vadd.f32 %v5013_v53, %v1845_v30 }
0x1f3b   :  { %4560 = vtanh.f32 %v1847_v31 }
0x1f45   :  { %v4561_v41 = vpop.eup %4560 }
0x1f46   :  { %1856 = vrot.lane.b32.xlu0 %v4561_v41, %s4675_s11  ;;  %v1849_v42 = vmul.f32 0.5, %v4561_v41 }
0x1f48   :  { %v1850_v43 = vadd.f32 0.5, %v1849_v42 }
0x1f4a   :  { %v1854_v51 = vmul.f32 %v1852_v50, %v1850_v43 }
0x1fb8   :  { %v1857_v44 = vpop.permute.xlu0 %1856 }
0x1fb9   :  { %v1859_v46 = vmul.f32 %v1857_v44, %v1850_v43 }
0x1fbb   :  { %1861 = vrot.lane.b32.xlu1 %v1859_v46, %s4676_s12 }
0x202d   :  { %v1862_v52 = vpop.permute.xlu1 %1861 }
0x202e   :  { %v1864_v54 = vadd.f32 %v1862_v52, %v1854_v51 }
0x2030   :  { %4562 = vtanh.f32 %v1864_v54  ;;  %v1957_v16 = vrot.slane %v1864_v54, 4 }
0x203a   :  { %v4563_v58 = vpop.eup %4562 }
0x203b   :  { %1867 = vrot.lane.b32.xlu0 %v4563_v58, %s4675_s11 }
0x20ad   :  { %v1868_v59 = vpop.permute.xlu0 %1867 }
0x20ae   :  { %v1870_v53 = vmul.f32 %v1868_v59, %v1850_v43 }
0x20b0   :  { %v1872_v49 = vrot.slane %v1870_v53, 4 }
0x20b2   :  { %v5137_v5 = vmax.f32 %v1766_v37, %v1872_v49  ;;  %1876 = vrot.lane.b32.xlu1 %v1872_v49, %s4676_s12 }
0x2124   :  { %v1877_v6 = vpop.permute.xlu1 %1876 }
0x2125   :  { %4161 = vmatmul.mubr.msk.f32.vlgmr.msra.gmra.mrb[16].mxu1 %vm619_vm2, %v1877_v6 }
0x2126   :  { %4368 = vmatpush1.bf16.msra.mxu1 %v4717_v9  ;;  %2154 = vmatprep.mubr.f32.mxu1 %v4674_v7 }
0x2127   :  { %4370 = vmatprep.subr.bf16.mxu1 %v4738_v17 }
0x212a   :  { %4372 = vmatpush1.bf16.msra.mxu1 %v4746_v19 }
0x212b   :  { %4382 = vmatprep.subr.bf16.mxu1 %v4715_v8 }
0x21f8   :  { %v1946_v10 = vpop.f32.mrb[16].mxu1 }
0x21f9   :  { %v1948_v11 = vpop.f32.mrb[17].mxu1 }
0x21fa   :  { %v1951_v12 = vsel %vm617_vm1, %v1946_v10, %v1948_v11 }
0x21fb   :  { %v1952_v18 = vadd.f32 %v1951_v12, %v5019_v62 }
0x21fd   :  { %4564 = vtanh.f32 %v1952_v18 }
0x2207   :  { %v4565_v60 = vpop.eup %4564 }
0x2208   :  { %1961 = vrot.lane.b32.xlu0 %v4565_v60, %s4675_s11  ;;  %v1954_v13 = vmul.f32 0.5, %v4565_v60 }
0x220a   :  { %v1955_v14 = vadd.f32 0.5, %v1954_v13 }
0x220c   :  { %v1959_v20 = vmul.f32 %v1957_v16, %v1955_v14 }
0x227a   :  { %v1962_v21 = vpop.permute.xlu0 %1961 }
0x227b   :  { %v1964_v15 = vmul.f32 %v1962_v21, %v1955_v14 }
0x227d   :  { %1966 = vrot.lane.b32.xlu1 %v1964_v15, %s4676_s12 }
0x22ef   :  { %v1967_v47 = vpop.permute.xlu1 %1966 }
0x22f0   :  { %v1969_v22 = vadd.f32 %v1967_v47, %v1959_v20 }
0x22f2   :  { %4566 = vtanh.f32 %v1969_v22  ;;  %v2062_v26 = vrot.slane %v1969_v22, 4 }
0x22fc   :  { %v4567_v24 = vpop.eup %4566 }
0x22fd   :  { %1972 = vrot.lane.b32.xlu0 %v4567_v24, %s4675_s11 }
0x236f   :  { %v1973_v27 = vpop.permute.xlu0 %1972 }
0x2370   :  { %v1975_v28 = vmul.f32 %v1973_v27, %v1955_v14 }
0x2372   :  { %v1976_v48 = vmax.f32 %v5137_v5, %v1975_v28  ;;  %1978 = vrot.lane.b32.xlu1 %v1975_v28, %s4676_s12 }
0x23e4   :  { %v1979_v29 = vpop.permute.xlu1 %1978 }
0x23e5   :  { %4162 = vmatmul.mubr.msk.f32.vlgmr.msra.gmra.mrb[24].mxu0 %vm619_vm2, %v1979_v29 }
0x23e6   :  { %4376 = vmatpush1.bf16.msra.mxu0 %v4717_v9  ;;  %2256 = vmatprep.mubr.f32.mxu0 %v4674_v7 }
0x23e7   :  { %4378 = vmatprep.subr.bf16.mxu0 %v4738_v17 }
0x23ea   :  { %4380 = vmatpush1.bf16.msra.mxu0 %v4746_v19 }
0x23eb   :  { %4390 = vmatprep.subr.bf16.mxu0 %v4715_v8 }
0x24b8   :  { %v2048_v32 = vpop.f32.mrb[24].mxu0 }
0x24b9   :  { %v2050_v33 = vpop.f32.mrb[25].mxu0 }
0x24ba   :  { %v2053_v34 = vsel %vm617_vm1, %v2048_v32, %v2050_v33 }
0x24bb   :  { %v2055_v25 = vrot.slane %v2053_v34, 4 }
0x24bd   :  { %v2057_v35 = vadd.f32 %v2055_v25, %v5019_v62 }
0x24bf   :  { %4568 = vtanh.f32 %v2057_v35 }
0x24c9   :  { %v4569_v36 = vpop.eup %4568 }
0x24ca   :  { %2066 = vrot.lane.b32.xlu0 %v4569_v36, %s4675_s11  ;;  %v2059_v37 = vmul.f32 0.5, %v4569_v36 }
0x24cc   :  { %v2060_v38 = vadd.f32 0.5, %v2059_v37 }
0x24ce   :  { %v2064_v30 = vmul.f32 %v2062_v26, %v2060_v38 }
0x253c   :  { %v2067_v39 = vpop.permute.xlu0 %2066 }
0x253d   :  { %v2069_v40 = vmul.f32 %v2067_v39, %v2060_v38 }
0x253f   :  { %2071 = vrot.lane.b32.xlu1 %v2069_v40, %s4676_s12 }
0x25b1   :  { %v2072_v31 = vpop.permute.xlu1 %2071 }
0x25b2   :  { %v2074_v41 = vadd.f32 %v2072_v31, %v2064_v30 }
0x25b4   :  { %4570 = vtanh.f32 %v2074_v41  ;;  %v2167_v10 = vrot.slane %v2074_v41, 4 }
0x25be   :  { %v4571_v42 = vpop.eup %4570 }
0x25bf   :  { %2077 = vrot.lane.b32.xlu0 %v4571_v42, %s4675_s11 }
0x2631   :  { %v2078_v43 = vpop.permute.xlu0 %2077 }
0x2632   :  { %v2080_v62 = vmul.f32 %v2078_v43, %v2060_v38 }
0x2634   :  { %v2082_v44 = vrot.slane %v2080_v62, 4 }
0x2636   :  { %v5166_v46 = vmax.f32 %v1976_v48, %v2082_v44  ;;  %2086 = vrot.lane.b32.xlu1 %v2082_v44, %s4676_s12 }
0x26a8   :  { %v2087_v50 = vpop.permute.xlu1 %2086 }
0x26a9   :  { %4163 = vmatmul.mubr.msk.f32.vlgmr.msra.gmra.mrb[18].mxu1 %vm619_vm2, %v2087_v50 }
0x26aa   :  { %4384 = vmatpush1.bf16.msra.mxu1 %v4717_v9  ;;  %2364 = vmatprep.mubr.f32.mxu1 %v4674_v7 }
0x26ab   :  { %4386 = vmatprep.subr.bf16.mxu1 %v4738_v17 }
0x26ae   :  { %4388 = vmatpush1.bf16.msra.mxu1 %v4746_v19 }
0x26af   :  { %4398 = vmatprep.subr.bf16.mxu1 %v4715_v8 }
0x277c   :  { %v2156_v51 = vpop.f32.mrb[18].mxu1 }
0x277d   :  { %v2158_v52 = vpop.f32.mrb[19].mxu1 }
0x277e   :  { %v2161_v54 = vsel %vm617_vm1, %v2156_v51, %v2158_v52 }
0x277f   :  { %v2162_v58 = vadd.f32 %v5017_v61, %v2161_v54 }
0x2781   :  { %4572 = vtanh.f32 %v2162_v58 }
0x278b   :  { %v4573_v59 = vpop.eup %4572 }
0x278c   :  { %2171 = vrot.lane.b32.xlu0 %v4573_v59, %s4675_s11  ;;  %v2164_v53 = vmul.f32 0.5, %v4573_v59 }
0x278e   :  { %v2165_v49 = vadd.f32 0.5, %v2164_v53 }
0x2790   :  { %v2169_v11 = vmul.f32 %v2167_v10, %v2165_v49 }
0x27fe   :  { %v2172_v5 = vpop.permute.xlu0 %2171 }
0x27ff   :  { %v2174_v6 = vmul.f32 %v2172_v5, %v2165_v49 }
0x2801   :  { %2176 = vrot.lane.b32.xlu1 %v2174_v6, %s4676_s12 }
0x2873   :  { %v2177_v12 = vpop.permute.xlu1 %2176 }
0x2874   :  { %v2179_v18 = vadd.f32 %v2177_v12, %v2169_v11 }
0x2876   :  { %4574 = vtanh.f32 %v2179_v18  ;;  %v2272_v33 = vrot.slane %v2179_v18, 4 }
0x2880   :  { %v4575_v60 = vpop.eup %4574 }
0x2881   :  { %2182 = vrot.lane.b32.xlu0 %v4575_v60, %s4675_s11 }
0x28f3   :  { %v2183_v13 = vpop.permute.xlu0 %2182 }
0x28f4   :  { %v2185_v14 = vmul.f32 %v2183_v13, %v2165_v49 }
0x28f6   :  { %v2186_v21 = vmax.f32 %v5166_v46, %v2185_v14  ;;  %2188 = vrot.lane.b32.xlu1 %v2185_v14, %s4676_s12 }
0x2968   :  { %v2189_v15 = vpop.permute.xlu1 %2188 }
0x2969   :  { %4164 = vmatmul.mubr.msk.f32.vlgmr.msra.gmra.mrb[26].mxu0 %vm619_vm2, %v2189_v15 }
0x296a   :  { %4392 = vmatpush1.bf16.msra.mxu0 %v4717_v9  ;;  %2466 = vmatprep.mubr.f32.mxu0 %v4674_v7 }
0x296b   :  { %4394 = vmatprep.subr.bf16.mxu0 %v4738_v17 }
0x296e   :  { %4396 = vmatpush1.bf16.msra.mxu0 %v4746_v19 }
0x296f   :  { %4406 = vmatprep.subr.bf16.mxu0 %v4715_v8 }
0x2a3c   :  { %v2258_v16 = vpop.f32.mrb[26].mxu0 }
0x2a3d   :  { %v2260_v20 = vpop.f32.mrb[27].mxu0 }
0x2a3e   :  { %v2263_v47 = vsel %vm617_vm1, %v2258_v16, %v2260_v20 }
0x2a3f   :  { %v2265_v22 = vrot.slane %v2263_v47, 4 }
0x2a41   :  { %v2267_v24 = vadd.f32 %v5017_v61, %v2265_v22 }
0x2a43   :  { %4576 = vtanh.f32 %v2267_v24 }
0x2a4d   :  { %v4577_v27 = vpop.eup %4576 }
0x2a4e   :  { %2276 = vrot.lane.b32.xlu0 %v4577_v27, %s4675_s11  ;;  %v2269_v28 = vmul.f32 0.5, %v4577_v27 }
0x2a50   :  { %v2270_v48 = vadd.f32 0.5, %v2269_v28 }
0x2a52   :  { %v2274_v34 = vmul.f32 %v2272_v33, %v2270_v48 }
0x2ac0   :  { %v2277_v29 = vpop.permute.xlu0 %2276 }
0x2ac1   :  { %v2279_v32 = vmul.f32 %v2277_v29, %v2270_v48 }
0x2ac3   :  { %2281 = vrot.lane.b32.xlu1 %v2279_v32, %s4676_s12 }
0x2b35   :  { %v2282_v25 = vpop.permute.xlu1 %2281 }
0x2b36   :  { %v2284_v35 = vadd.f32 %v2282_v25, %v2274_v34 }
0x2b38   :  { %4578 = vtanh.f32 %v2284_v35  ;;  %v2377_v50 = vrot.slane %v2284_v35, 4 }
0x2b42   :  { %v4579_v36 = vpop.eup %4578 }
0x2b43   :  { %2287 = vrot.lane.b32.xlu0 %v4579_v36, %s4675_s11 }
0x2bb5   :  { %v2288_v37 = vpop.permute.xlu0 %2287 }
0x2bb6   :  { %v2290_v61 = vmul.f32 %v2288_v37, %v2270_v48 }
0x2bb8   :  { %v2292_v38 = vrot.slane %v2290_v61, 4 }
0x2bba   :  { %v5195_v39 = vmax.f32 %v2186_v21, %v2292_v38  ;;  %2296 = vrot.lane.b32.xlu1 %v2292_v38, %s4676_s12 }
0x2c2c   :  { %v2297_v40 = vpop.permute.xlu1 %2296 }
0x2c2d   :  { %4165 = vmatmul.mubr.msk.f32.vlgmr.msra.gmra.mrb[20].mxu1 %vm619_vm2, %v2297_v40 }
0x2c2e   :  { %4400 = vmatpush1.bf16.msra.mxu1 %v4717_v9  ;;  %2574 = vmatprep.mubr.f32.mxu1 %v4674_v7 }
0x2c2f   :  { %4402 = vmatprep.subr.bf16.mxu1 %v4738_v17 }
0x2c32   :  { %4404 = vmatpush1.bf16.msra.mxu1 %v4746_v19 }
0x2c33   :  { %4414 = vmatprep.subr.bf16.mxu1 %v4715_v8 }
0x2d00   :  { %v2366_v26 = vpop.f32.mrb[20].mxu1 }
0x2d01   :  { %v2368_v30 = vpop.f32.mrb[21].mxu1 }
0x2d02   :  { %v2371_v31 = vsel %vm617_vm1, %v2366_v26, %v2368_v30 }
0x2d03   :  { %v2372_v41 = vadd.f32 %v2371_v31, %v5023_v0 }
0x2d05   :  { %4580 = vtanh.f32 %v2372_v41 }
0x2d0f   :  { %v4581_v42 = vpop.eup %4580 }
0x2d10   :  { %2381 = vrot.lane.b32.xlu0 %v4581_v42, %s4675_s11  ;;  %v2374_v43 = vmul.f32 0.5, %v4581_v42 }
0x2d12   :  { %v2375_v62 = vadd.f32 0.5, %v2374_v43 }
0x2d14   :  { %v2379_v51 = vmul.f32 %v2377_v50, %v2375_v62 }
0x2d82   :  { %v2382_v44 = vpop.permute.xlu0 %2381 }
0x2d83   :  { %v2384_v46 = vmul.f32 %v2382_v44, %v2375_v62 }
0x2d85   :  { %2386 = vrot.lane.b32.xlu1 %v2384_v46, %s4676_s12 }
0x2df7   :  { %v2387_v52 = vpop.permute.xlu1 %2386 }
0x2df8   :  { %v2389_v54 = vadd.f32 %v2387_v52, %v2379_v51 }
0x2dfa   :  { %4582 = vtanh.f32 %v2389_v54  ;;  %v2482_v16 = vrot.slane %v2389_v54, 4 }
0x2e04   :  { %v4583_v58 = vpop.eup %4582 }
0x2e05   :  { %2392 = vrot.lane.b32.xlu0 %v4583_v58, %s4675_s11 }
0x2e77   :  { %v2393_v59 = vpop.permute.xlu0 %2392 }
0x2e78   :  { %v2395_v53 = vmul.f32 %v2393_v59, %v2375_v62 }
0x2e7a   :  { %v2396_v49 = vmax.f32 %v5195_v39, %v2395_v53  ;;  %2398 = vrot.lane.b32.xlu1 %v2395_v53, %s4676_s12 }
0x2eec   :  { %v2399_v5 = vpop.permute.xlu1 %2398 }
0x2eed   :  { %4166 = vmatmul.mubr.msk.f32.vlgmr.msra.gmra.mrb[28].mxu0 %vm619_vm2, %v2399_v5 }
0x2eee   :  { %4408 = vmatpush1.bf16.msra.mxu0 %v4717_v9  ;;  %2676 = vmatprep.mubr.f32.mxu0 %v4674_v7 }
0x2eef   :  { %4410 = vmatprep.subr.bf16.mxu0 %v4738_v17 }
0x2ef2   :  { %4412 = vmatpush1.bf16.msra.mxu0 %v4746_v19 }
0x2ef3   :  { %4422 = vmatprep.subr.bf16.mxu0 %v4715_v8 }
0x2fc0   :  { %v2468_v6 = vpop.f32.mrb[28].mxu0 }
0x2fc1   :  { %v2470_v10 = vpop.f32.mrb[29].mxu0 }
0x2fc2   :  { %v2473_v11 = vsel %vm617_vm1, %v2468_v6, %v2470_v10 }
0x2fc3   :  { %v2475_v12 = vrot.slane %v2473_v11, 4 }
0x2fc5   :  { %v2477_v18 = vadd.f32 %v2475_v12, %v5023_v0 }
0x2fc7   :  { %4584 = vtanh.f32 %v2477_v18 }
0x2fd1   :  { %v4585_v60 = vpop.eup %4584 }
0x2fd2   :  { %2486 = vrot.lane.b32.xlu0 %v4585_v60, %s4675_s11  ;;  %v2479_v13 = vmul.f32 0.5, %v4585_v60 }
0x2fd4   :  { %v2480_v14 = vadd.f32 0.5, %v2479_v13 }
0x2fd6   :  { %v2484_v20 = vmul.f32 %v2482_v16, %v2480_v14 }
0x3044   :  { %v2487_v21 = vpop.permute.xlu0 %2486 }
0x3045   :  { %v2489_v15 = vmul.f32 %v2487_v21, %v2480_v14 }
0x3047   :  { %2491 = vrot.lane.b32.xlu1 %v2489_v15, %s4676_s12 }
0x30b9   :  { %v2492_v47 = vpop.permute.xlu1 %2491 }
0x30ba   :  { %v2494_v22 = vadd.f32 %v2492_v47, %v2484_v20 }
0x30bc   :  { %4586 = vtanh.f32 %v2494_v22  ;;  %v2587_v39 = vrot.slane %v2494_v22, 4 }
0x30c6   :  { %v4587_v24 = vpop.eup %4586 }
0x30c7   :  { %2497 = vrot.lane.b32.xlu0 %v4587_v24, %s4675_s11 }
0x3139   :  { %v2498_v27 = vpop.permute.xlu0 %2497 }
0x313a   :  { %v2500_v0 = vmul.f32 %v2498_v27, %v2480_v14 }
0x313c   :  { %v2502_v28 = vrot.slane %v2500_v0, 4 }
0x313e   :  { %v5224_v48 = vmax.f32 %v2396_v49, %v2502_v28  ;;  %2506 = vrot.lane.b32.xlu1 %v2502_v28, %s4676_s12 }
0x31b0   :  { %v2507_v29 = vpop.permute.xlu1 %2506 }
0x31b1   :  { %4167 = vmatmul.mubr.msk.f32.vlgmr.msra.gmra.mrb[22].mxu1 %vm619_vm2, %v2507_v29 }
0x31b2   :  { %4416 = vmatpush1.bf16.msra.mxu1 %v4717_v9  ;;  %2784 = vmatprep.mubr.f32.mxu1 %v4674_v7 }
0x31b3   :  { %4418 = vmatprep.subr.bf16.mxu1 %v4738_v17 }
0x31b6   :  { %4420 = vmatpush1.bf16.msra.mxu1 %v4746_v19 }
0x31b7   :  { %4430 = vmatprep.subr.bf16.mxu1 %v4715_v8 }
0x3284   :  { %v2576_v32 = vpop.f32.mrb[22].mxu1 }
0x3285   :  { %v2578_v33 = vpop.f32.mrb[23].mxu1 }
0x3286   :  { %v2581_v34 = vsel %vm617_vm1, %v2576_v32, %v2578_v33 }
0x3287   :  { %v2582_v25 = vadd.f32 %v5021_v63, %v2581_v34 }
0x3289   :  { %4588 = vtanh.f32 %v2582_v25 }
0x3293   :  { %v4589_v35 = vpop.eup %4588 }
0x3294   :  { %2591 = vrot.lane.b32.xlu0 %v4589_v35, %s4675_s11  ;;  %v2584_v36 = vmul.f32 0.5, %v4589_v35 }
0x3296   :  { %v2585_v37 = vadd.f32 0.5, %v2584_v36 }
0x3298   :  { %v2589_v40 = vmul.f32 %v2587_v39, %v2585_v37 }
0x3306   :  { %v2592_v61 = vpop.permute.xlu0 %2591 }
0x3307   :  { %v2594_v38 = vmul.f32 %v2592_v61, %v2585_v37 }
0x3309   :  { %2596 = vrot.lane.b32.xlu1 %v2594_v38, %s4676_s12 }
0x337b   :  { %v2597_v26 = vpop.permute.xlu1 %2596 }
0x337c   :  { %v2599_v30 = vadd.f32 %v2597_v26, %v2589_v40 }
0x337e   :  { %4590 = vtanh.f32 %v2599_v30  ;;  %v2692_v5 = vrot.slane %v2599_v30, 4 }
0x3388   :  { %v4591_v31 = vpop.eup %4590 }
0x3389   :  { %2602 = vrot.lane.b32.xlu0 %v4591_v31, %s4675_s11 }
0x33fb   :  { %v2603_v41 = vpop.permute.xlu0 %2602 }
0x33fc   :  { %v2605_v42 = vmul.f32 %v2603_v41, %v2585_v37 }
0x33fe   :  { %v2606_v43 = vmax.f32 %v5224_v48, %v2605_v42  ;;  %2608 = vrot.lane.b32.xlu1 %v2605_v42, %s4676_s12 }
0x3470   :  { %v2609_v62 = vpop.permute.xlu1 %2608 }
0x3471   :  { %4168 = vmatmul.mubr.msk.f32.vlgmr.msra.gmra.mrb[30].mxu0 %vm619_vm2, %v2609_v62 }
0x3472   :  { %4424 = vmatpush1.bf16.msra.mxu0 %v4717_v9  ;;  %2886 = vmatprep.mubr.f32.mxu0 %v4674_v7 }
0x3473   :  { %4426 = vmatprep.subr.bf16.mxu0 %v4738_v17 }
0x3476   :  { %4428 = vmatpush1.bf16.msra.mxu0 %v4746_v19 }
0x3477   :  { %4438 = vmatprep.subr.bf16.mxu0 %v4715_v8 }
0x3544   :  { %v2678_v44 = vpop.f32.mrb[30].mxu0 }
0x3545   :  { %v2680_v46 = vpop.f32.mrb[31].mxu0 }
0x3546   :  { %v2683_v50 = vsel %vm617_vm1, %v2678_v44, %v2680_v46 }
0x3547   :  { %v2685_v51 = vrot.slane %v2683_v50, 4 }
0x3549   :  { %v2687_v52 = vadd.f32 %v5021_v63, %v2685_v51 }
0x354b   :  { %4592 = vtanh.f32 %v2687_v52 }
0x3555   :  { %v4593_v54 = vpop.eup %4592 }
0x3556   :  { %2696 = vrot.lane.b32.xlu0 %v4593_v54, %s4675_s11  ;;  %v2689_v58 = vmul.f32 0.5, %v4593_v54 }
0x3558   :  { %v2690_v59 = vadd.f32 0.5, %v2689_v58 }
0x355a   :  { %v2694_v6 = vmul.f32 %v2692_v5, %v2690_v59 }
0x35c8   :  { %v2697_v53 = vpop.permute.xlu0 %2696 }
0x35c9   :  { %v2699_v49 = vmul.f32 %v2697_v53, %v2690_v59 }
0x35cb   :  { %2701 = vrot.lane.b32.xlu1 %v2699_v49, %s4676_s12 }
0x363d   :  { %v2702_v10 = vpop.permute.xlu1 %2701 }
0x363e   :  { %v2704_v11 = vadd.f32 %v2702_v10, %v2694_v6 }
0x3640   :  { %4594 = vtanh.f32 %v2704_v11  ;;  %v2797_v28 = vrot.slane %v2704_v11, 4 }
0x364a   :  { %v4595_v12 = vpop.eup %4594 }
0x364b   :  { %2707 = vrot.lane.b32.xlu0 %v4595_v12, %s4675_s11 }
0x36bd   :  { %v2708_v18 = vpop.permute.xlu0 %2707 }
0x36be   :  { %v2710_v63 = vmul.f32 %v2708_v18, %v2690_v59 }
0x36c0   :  { %v2712_v60 = vrot.slane %v2710_v63, 4 }
0x36c2   :  { %v5253_v13 = vmax.f32 %v2606_v43, %v2712_v60  ;;  %2716 = vrot.lane.b32.xlu1 %v2712_v60, %s4676_s12 }
0x3734   :  { %v2717_v14 = vpop.permute.xlu1 %2716 }
0x3735   :  { %4169 = vmatmul.mubr.msk.f32.vlgmr.msra.gmra.mrb[24].mxu1 %vm619_vm2, %v2717_v14 }
0x3736   :  { %4432 = vmatpush1.bf16.msra.mxu1 %v4717_v9  ;;  %2994 = vmatprep.mubr.f32.mxu1 %v4674_v7 }
0x3737   :  { %4434 = vmatprep.subr.bf16.mxu1 %v4738_v17 }
0x373a   :  { %4436 = vmatpush1.bf16.msra.mxu1 %v4746_v19 }
0x373b   :  { %4446 = vmatprep.subr.bf16.mxu1 %v4715_v8 }
0x3808   :  { %v2786_v21 = vpop.f32.mrb[24].mxu1 }
0x3809   :  { %v2788_v15 = vpop.f32.mrb[25].mxu1 }
0x380a   :  { %v2791_v16 = vsel %vm617_vm1, %v2786_v21, %v2788_v15 }
0x380b   :  { %v2792_v20 = vadd.f32 %v2791_v16, %v5027_v2 }
0x380d   :  { %4596 = vtanh.f32 %v2792_v20 }
0x3817   :  { %v4597_v47 = vpop.eup %4596 }
0x3818   :  { %2801 = vrot.lane.b32.xlu0 %v4597_v47, %s4675_s11  ;;  %v2794_v22 = vmul.f32 0.5, %v4597_v47 }
0x381a   :  { %v2795_v24 = vadd.f32 0.5, %v2794_v22 }
0x381c   :  { %v2799_v48 = vmul.f32 %v2797_v28, %v2795_v24 }
0x388a   :  { %v2802_v27 = vpop.permute.xlu0 %2801 }
0x388b   :  { %v2804_v0 = vmul.f32 %v2802_v27, %v2795_v24 }
0x388d   :  { %2806 = vrot.lane.b32.xlu1 %v2804_v0, %s4676_s12 }
0x38ff   :  { %v2807_v29 = vpop.permute.xlu1 %2806 }
0x3900   :  { %v2809_v32 = vadd.f32 %v2807_v29, %v2799_v48 }
0x3902   :  { %4598 = vtanh.f32 %v2809_v32  ;;  %v2902_v43 = vrot.slane %v2809_v32, 4 }
0x390c   :  { %v4599_v33 = vpop.eup %4598 }
0x390d   :  { %2812 = vrot.lane.b32.xlu0 %v4599_v33, %s4675_s11 }
0x397f   :  { %v2813_v34 = vpop.permute.xlu0 %2812 }
0x3980   :  { %v2815_v25 = vmul.f32 %v2813_v34, %v2795_v24 }
0x3982   :  { %v2816_v35 = vmax.f32 %v5253_v13, %v2815_v25  ;;  %2818 = vrot.lane.b32.xlu1 %v2815_v25, %s4676_s12 }
0x39f4   :  { %v2819_v36 = vpop.permute.xlu1 %2818 }
0x39f5   :  { %4170 = vmatmul.mubr.msk.f32.vlgmr.msra.gmra.mrb[32].mxu0 %vm619_vm2, %v2819_v36 }
0x39f6   :  { %4440 = vmatpush1.bf16.msra.mxu0 %v4717_v9  ;;  %3096 = vmatprep.mubr.f32.mxu0 %v4674_v7 }
0x39f7   :  { %4442 = vmatprep.subr.bf16.mxu0 %v4738_v17 }
0x39fa   :  { %4444 = vmatpush1.bf16.msra.mxu0 %v4746_v19 }
0x39fb   :  { %4454 = vmatprep.subr.bf16.mxu0 %v4715_v8 }
0x3ac8   :  { %v2888_v37 = vpop.f32.mrb[32].mxu0 }
0x3ac9   :  { %v2890_v61 = vpop.f32.mrb[33].mxu0 }
0x3aca   :  { %v2893_v38 = vsel %vm617_vm1, %v2888_v37, %v2890_v61 }
0x3acb   :  { %v2895_v39 = vrot.slane %v2893_v38, 4 }
0x3acd   :  { %v2897_v40 = vadd.f32 %v2895_v39, %v5027_v2 }
0x3acf   :  { %4600 = vtanh.f32 %v2897_v40 }
0x3ad9   :  { %v4601_v26 = vpop.eup %4600 }
0x3ada   :  { %2906 = vrot.lane.b32.xlu0 %v4601_v26, %s4675_s11  ;;  %v2899_v30 = vmul.f32 0.5, %v4601_v26 }
0x3adc   :  { %v2900_v31 = vadd.f32 0.5, %v2899_v30 }
0x3ade   :  { %v2904_v62 = vmul.f32 %v2902_v43, %v2900_v31 }
0x3b4c   :  { %v2907_v41 = vpop.permute.xlu0 %2906 }
0x3b4d   :  { %v2909_v42 = vmul.f32 %v2907_v41, %v2900_v31 }
0x3b4f   :  { %2911 = vrot.lane.b32.xlu1 %v2909_v42, %s4676_s12 }
0x3bc1   :  { %v2912_v44 = vpop.permute.xlu1 %2911 }
0x3bc2   :  { %v2914_v46 = vadd.f32 %v2912_v44, %v2904_v62 }
0x3bc4   :  { %4602 = vtanh.f32 %v2914_v46  ;;  %v3007_v63 = vrot.slane %v2914_v46, 4 }
0x3bce   :  { %v4603_v50 = vpop.eup %4602 }
0x3bcf   :  { %2917 = vrot.lane.b32.xlu0 %v4603_v50, %s4675_s11 }
0x3c41   :  { %v2918_v51 = vpop.permute.xlu0 %2917 }
0x3c42   :  { %v2920_v2 = vmul.f32 %v2918_v51, %v2900_v31 }
0x3c44   :  { %v2922_v52 = vrot.slane %v2920_v2, 4 }
0x3c46   :  { %v5282_v54 = vmax.f32 %v2816_v35, %v2922_v52  ;;  %2926 = vrot.lane.b32.xlu1 %v2922_v52, %s4676_s12 }
0x3cb8   :  { %v2927_v58 = vpop.permute.xlu1 %2926 }
0x3cb9   :  { %4171 = vmatmul.mubr.msk.f32.vlgmr.msra.gmra.mrb[26].mxu1 %vm619_vm2, %v2927_v58 }
0x3cba   :  { %4448 = vmatpush1.bf16.msra.mxu1 %v4717_v9  ;;  %3204 = vmatprep.mubr.f32.mxu1 %v4674_v7 }
0x3cbb   :  { %4450 = vmatprep.subr.bf16.mxu1 %v4738_v17 }
0x3cbe   :  { %4452 = vmatpush1.bf16.msra.mxu1 %v4746_v19 }
0x3cbf   :  { %4462 = vmatprep.subr.bf16.mxu1 %v4715_v8 }
0x3d8c   :  { %v2996_v59 = vpop.f32.mrb[26].mxu1 }
0x3d8d   :  { %v2998_v53 = vpop.f32.mrb[27].mxu1 }
0x3d8e   :  { %v3001_v49 = vsel %vm617_vm1, %v2996_v59, %v2998_v53 }
0x3d8f   :  { %v3002_v5 = vadd.f32 %v5025_v1, %v3001_v49 }
0x3d91   :  { %4604 = vtanh.f32 %v3002_v5 }
0x3d9b   :  { %v4605_v6 = vpop.eup %4604 }
0x3d9c   :  { %3011 = vrot.lane.b32.xlu0 %v4605_v6, %s4675_s11  ;;  %v3004_v10 = vmul.f32 0.5, %v4605_v6 }
0x3d9e   :  { %v3005_v11 = vadd.f32 0.5, %v3004_v10 }
0x3da0   :  { %v3009_v60 = vmul.f32 %v3007_v63, %v3005_v11 }
0x3e0e   :  { %v3012_v12 = vpop.permute.xlu0 %3011 }
0x3e0f   :  { %v3014_v18 = vmul.f32 %v3012_v12, %v3005_v11 }
0x3e11   :  { %3016 = vrot.lane.b32.xlu1 %v3014_v18, %s4676_s12 }
0x3e83   :  { %v3017_v13 = vpop.permute.xlu1 %3016 }
0x3e84   :  { %v3019_v14 = vadd.f32 %v3017_v13, %v3009_v60 }
0x3e86   :  { %4606 = vtanh.f32 %v3019_v14  ;;  %v3112_v25 = vrot.slane %v3019_v14, 4 }
0x3e90   :  { %v4607_v21 = vpop.eup %4606 }
0x3e91   :  { %3022 = vrot.lane.b32.xlu0 %v4607_v21, %s4675_s11 }
0x3f03   :  { %v3023_v15 = vpop.permute.xlu0 %3022 }
0x3f04   :  { %v3025_v16 = vmul.f32 %v3023_v15, %v3005_v11 }
0x3f06   :  { %v3026_v20 = vmax.f32 %v5282_v54, %v3025_v16  ;;  %3028 = vrot.lane.b32.xlu1 %v3025_v16, %s4676_s12 }
0x3f78   :  { %v3029_v47 = vpop.permute.xlu1 %3028 }
0x3f79   :  { %4172 = vmatmul.mubr.msk.f32.vlgmr.msra.gmra.mrb[34].mxu0 %vm619_vm2, %v3029_v47 }
0x3f7a   :  { %4456 = vmatpush1.bf16.msra.mxu0 %v4717_v9  ;;  %3306 = vmatprep.mubr.f32.mxu0 %v4674_v7 }
0x3f7b   :  { %4458 = vmatprep.subr.bf16.mxu0 %v4738_v17 }
0x3f7e   :  { %4460 = vmatpush1.bf16.msra.mxu0 %v4746_v19 }
0x3f7f   :  { %4470 = vmatprep.subr.bf16.mxu0 %v4715_v8 }
0x404c   :  { %v3098_v22 = vpop.f32.mrb[34].mxu0 }
0x404d   :  { %v3100_v24 = vpop.f32.mrb[35].mxu0 }
0x404e   :  { %v3103_v27 = vsel %vm617_vm1, %v3098_v22, %v3100_v24 }
0x404f   :  { %v3105_v0 = vrot.slane %v3103_v27, 4 }
0x4051   :  { %v3107_v28 = vadd.f32 %v5025_v1, %v3105_v0 }
0x4053   :  { %4608 = vtanh.f32 %v3107_v28 }
0x405d   :  { %v4609_v48 = vpop.eup %4608 }
0x405e   :  { %3116 = vrot.lane.b32.xlu0 %v4609_v48, %s4675_s11  ;;  %v3109_v29 = vmul.f32 0.5, %v4609_v48 }
0x4060   :  { %v3110_v32 = vadd.f32 0.5, %v3109_v29 }
0x4062   :  { %v3114_v35 = vmul.f32 %v3112_v25, %v3110_v32 }
0x40d0   :  { %v3117_v33 = vpop.permute.xlu0 %3116 }
0x40d1   :  { %v3119_v34 = vmul.f32 %v3117_v33, %v3110_v32 }
0x40d3   :  { %3121 = vrot.lane.b32.xlu1 %v3119_v34, %s4676_s12 }
0x4145   :  { %v3122_v36 = vpop.permute.xlu1 %3121 }
0x4146   :  { %v3124_v37 = vadd.f32 %v3122_v36, %v3114_v35 }
0x4148   :  { %4610 = vtanh.f32 %v3124_v37  ;;  %v3217_v51 = vrot.slane %v3124_v37, 4 }
0x4152   :  { %v4611_v61 = vpop.eup %4610 }
0x4153   :  { %3127 = vrot.lane.b32.xlu0 %v4611_v61, %s4675_s11 }
0x41c5   :  { %v3128_v38 = vpop.permute.xlu0 %3127 }
0x41c6   :  { %v3130_v1 = vmul.f32 %v3128_v38, %v3110_v32 }
0x41c8   :  { %v3132_v39 = vrot.slane %v3130_v1, 4 }
0x41ca   :  { %v5311_v40 = vmax.f32 %v3026_v20, %v3132_v39  ;;  %3136 = vrot.lane.b32.xlu1 %v3132_v39, %s4676_s12 }
0x423c   :  { %v3137_v26 = vpop.permute.xlu1 %3136 }
0x423d   :  { %4173 = vmatmul.mubr.msk.f32.vlgmr.msra.gmra.mrb[28].mxu1 %vm619_vm2, %v3137_v26 }
0x423e   :  { %4464 = vmatpush1.bf16.msra.mxu1 %v4717_v9  ;;  %3414 = vmatprep.mubr.f32.mxu1 %v4674_v7 }
0x423f   :  { %4466 = vmatprep.subr.bf16.mxu1 %v4738_v17 }
0x4242   :  { %4468 = vmatpush1.bf16.msra.mxu1 %v4746_v19 }
0x4243   :  { %4478 = vmatprep.subr.bf16.mxu1 %v4715_v8 }
0x4310   :  { %v3206_v30 = vpop.f32.mrb[28].mxu1 }
0x4311   :  { %v3208_v31 = vpop.f32.mrb[29].mxu1 }
0x4312   :  { %v3211_v41 = vsel %vm617_vm1, %v3206_v30, %v3208_v31 }
0x4313   :  { %v3212_v42 = vadd.f32 %v3211_v41, %v5031_v45 }
0x4315   :  { %4612 = vtanh.f32 %v3212_v42 }
0x431f   :  { %v4613_v43 = vpop.eup %4612 }
0x4320   :  { %3221 = vrot.lane.b32.xlu0 %v4613_v43, %s4675_s11  ;;  %v3214_v62 = vmul.f32 0.5, %v4613_v43 }
0x4322   :  { %v3215_v44 = vadd.f32 0.5, %v3214_v62 }
0x4324   :  { %v3219_v2 = vmul.f32 %v3217_v51, %v3215_v44 }
0x4392   :  { %v3222_v46 = vpop.permute.xlu0 %3221 }
0x4393   :  { %v3224_v50 = vmul.f32 %v3222_v46, %v3215_v44 }
0x4395   :  { %3226 = vrot.lane.b32.xlu1 %v3224_v50, %s4676_s12 }
0x4407   :  { %v3227_v52 = vpop.permute.xlu1 %3226 }
0x4408   :  { %v3229_v54 = vadd.f32 %v3227_v52, %v3219_v2 }
0x440a   :  { %4614 = vtanh.f32 %v3229_v54  ;;  %v3322_v15 = vrot.slane %v3229_v54, 4 }
0x4414   :  { %v4615_v58 = vpop.eup %4614 }
0x4415   :  { %3232 = vrot.lane.b32.xlu0 %v4615_v58, %s4675_s11 }
0x4487   :  { %v3233_v59 = vpop.permute.xlu0 %3232 }
0x4488   :  { %v3235_v53 = vmul.f32 %v3233_v59, %v3215_v44 }
0x448a   :  { %v3236_v49 = vmax.f32 %v5311_v40, %v3235_v53  ;;  %3238 = vrot.lane.b32.xlu1 %v3235_v53, %s4676_s12 }
0x44fc   :  { %v3239_v5 = vpop.permute.xlu1 %3238 }
0x44fd   :  { %4174 = vmatmul.mubr.msk.f32.vlgmr.msra.gmra.mrb[36].mxu0 %vm619_vm2, %v3239_v5 }
0x44fe   :  { %4472 = vmatpush1.bf16.msra.mxu0 %v4717_v9  ;;  %3516 = vmatprep.mubr.f32.mxu0 %v4674_v7 }
0x44ff   :  { %4474 = vmatprep.subr.bf16.mxu0 %v4738_v17 }
0x4502   :  { %4476 = vmatpush1.bf16.msra.mxu0 %v4746_v19 }
0x4503   :  { %4486 = vmatprep.subr.bf16.mxu0 %v4715_v8 }
0x45d0   :  { %v3308_v6 = vpop.f32.mrb[36].mxu0 }
0x45d1   :  { %v3310_v10 = vpop.f32.mrb[37].mxu0 }
0x45d2   :  { %v3313_v11 = vsel %vm617_vm1, %v3308_v6, %v3310_v10 }
0x45d3   :  { %v3315_v12 = vrot.slane %v3313_v11, 4 }
0x45d5   :  { %v3317_v18 = vadd.f32 %v3315_v12, %v5031_v45 }
0x45d7   :  { %4616 = vtanh.f32 %v3317_v18 }
0x45e1   :  { %v4617_v63 = vpop.eup %4616 }
0x45e2   :  { %3326 = vrot.lane.b32.xlu0 %v4617_v63, %s4675_s11  ;;  %v3319_v60 = vmul.f32 0.5, %v4617_v63 }
0x45e4   :  { %v3320_v13 = vadd.f32 0.5, %v3319_v60 }
0x45e6   :  { %v3324_v16 = vmul.f32 %v3322_v15, %v3320_v13 }
0x4654   :  { %v3327_v14 = vpop.permute.xlu0 %3326 }
0x4655   :  { %v3329_v21 = vmul.f32 %v3327_v14, %v3320_v13 }
0x4657   :  { %3331 = vrot.lane.b32.xlu1 %v3329_v21, %s4676_s12 }
0x46c9   :  { %v3332_v20 = vpop.permute.xlu1 %3331 }
0x46ca   :  { %v3334_v47 = vadd.f32 %v3332_v20, %v3324_v16 }
0x46cc   :  { %4618 = vtanh.f32 %v3334_v47  ;;  %v3427_v61 = vrot.slane %v3334_v47, 4 }
0x46d6   :  { %v4619_v22 = vpop.eup %4618 }
0x46d7   :  { %3337 = vrot.lane.b32.xlu0 %v4619_v22, %s4675_s11 }
0x4749   :  { %v3338_v24 = vpop.permute.xlu0 %3337 }
0x474a   :  { %v3340_v45 = vmul.f32 %v3338_v24, %v3320_v13 }
0x474c   :  { %v3342_v27 = vrot.slane %v3340_v45, 4 }
0x474e   :  { %v5340_v0 = vmax.f32 %v3236_v49, %v3342_v27  ;;  %3346 = vrot.lane.b32.xlu1 %v3342_v27, %s4676_s12 }
0x47c0   :  { %v3347_v28 = vpop.permute.xlu1 %3346 }
0x47c1   :  { %4175 = vmatmul.mubr.msk.f32.vlgmr.msra.gmra.mrb[30].mxu1 %vm619_vm2, %v3347_v28 }
0x47c2   :  { %4480 = vmatpush1.bf16.msra.mxu1 %v4717_v9  ;;  %3624 = vmatprep.mubr.f32.mxu1 %v4674_v7 }
0x47c3   :  { %4482 = vmatprep.subr.bf16.mxu1 %v4738_v17 }
0x47c6   :  { %4484 = vmatpush1.bf16.msra.mxu1 %v4746_v19 }
0x47c7   :  { %4494 = vmatprep.subr.bf16.mxu1 %v4715_v8 }
0x4894   :  { %v3416_v48 = vpop.f32.mrb[30].mxu1 }
0x4895   :  { %v3418_v29 = vpop.f32.mrb[31].mxu1 }
0x4896   :  { %v3421_v32 = vsel %vm617_vm1, %v3416_v48, %v3418_v29 }
0x4897   :  { %v3422_v33 = vadd.f32 %v5029_v55, %v3421_v32 }
0x4899   :  { %4620 = vtanh.f32 %v3422_v33 }
0x48a3   :  { %v4621_v34 = vpop.eup %4620 }
0x48a4   :  { %3431 = vrot.lane.b32.xlu0 %v4621_v34, %s4675_s11  ;;  %v3424_v25 = vmul.f32 0.5, %v4621_v34 }
0x48a6   :  { %v3425_v35 = vadd.f32 0.5, %v3424_v25 }
0x48a8   :  { %v3429_v38 = vmul.f32 %v3427_v61, %v3425_v35 }
0x4916   :  { %v3432_v36 = vpop.permute.xlu0 %3431 }
0x4917   :  { %v3434_v37 = vmul.f32 %v3432_v36, %v3425_v35 }
0x4919   :  { %3436 = vrot.lane.b32.xlu1 %v3434_v37, %s4676_s12 }
0x498b   :  { %v3437_v1 = vpop.permute.xlu1 %3436 }
0x498c   :  { %v3439_v39 = vadd.f32 %v3437_v1, %v3429_v38 }
0x498e   :  { %4622 = vtanh.f32 %v3439_v39  ;;  %v3532_v58 = vrot.slane %v3439_v39, 4 }
0x4998   :  { %v4623_v40 = vpop.eup %4622 }
0x4999   :  { %3442 = vrot.lane.b32.xlu0 %v4623_v40, %s4675_s11 }
0x4a0b   :  { %v3443_v26 = vpop.permute.xlu0 %3442 }
0x4a0c   :  { %v3445_v30 = vmul.f32 %v3443_v26, %v3425_v35 }
0x4a0e   :  { %v3446_v31 = vmax.f32 %v5340_v0, %v3445_v30  ;;  %3448 = vrot.lane.b32.xlu1 %v3445_v30, %s4676_s12 }
0x4a80   :  { %v3449_v41 = vpop.permute.xlu1 %3448 }
0x4a81   :  { %4176 = vmatmul.mubr.msk.f32.vlgmr.msra.gmra.mrb[38].mxu0 %vm619_vm2, %v3449_v41 }
0x4a82   :  { %4488 = vmatpush1.bf16.msra.mxu0 %v4717_v9  ;;  %3726 = vmatprep.mubr.f32.mxu0 %v4674_v7 }
0x4a83   :  { %4490 = vmatprep.subr.bf16.mxu0 %v4738_v17 }
0x4a86   :  { %4492 = vmatpush1.bf16.msra.mxu0 %v4746_v19 }
0x4a87   :  { %4502 = vmatprep.subr.bf16.mxu0 %v4715_v8 }
0x4b54   :  { %v3518_v42 = vpop.f32.mrb[38].mxu0 }
0x4b55   :  { %v3520_v43 = vpop.f32.mrb[39].mxu0 }
0x4b56   :  { %v3523_v62 = vsel %vm617_vm1, %v3518_v42, %v3520_v43 }
0x4b57   :  { %v3525_v44 = vrot.slane %v3523_v62, 4 }
0x4b59   :  { %v3527_v46 = vadd.f32 %v5029_v55, %v3525_v44 }
0x4b5b   :  { %4624 = vtanh.f32 %v3527_v46 }
0x4b65   :  { %v4625_v50 = vpop.eup %4624 }
0x4b66   :  { %3536 = vrot.lane.b32.xlu0 %v4625_v50, %s4675_s11  ;;  %v3529_v51 = vmul.f32 0.5, %v4625_v50 }
0x4b68   :  { %v3530_v2 = vadd.f32 0.5, %v3529_v51 }
0x4b6a   :  { %v3534_v8 = vmul.f32 %v3532_v58, %v3530_v2 }
0x4bd8   :  { %v3537_v52 = vpop.permute.xlu0 %3536 }
0x4bd9   :  { %v3539_v54 = vmul.f32 %v3537_v52, %v3530_v2 }
0x4bdb   :  { %3541 = vrot.lane.b32.xlu1 %v3539_v54, %s4676_s12 }
0x4c4d   :  { %v3542_v59 = vpop.permute.xlu1 %3541 }
0x4c4e   :  { %v3544_v53 = vadd.f32 %v3542_v59, %v3534_v8 }
0x4c50   :  { %4626 = vtanh.f32 %v3544_v53  ;;  %v3637_v20 = vrot.slane %v3544_v53, 4 }
0x4c5a   :  { %v4627_v49 = vpop.eup %4626 }
0x4c5b   :  { %3547 = vrot.lane.b32.xlu0 %v4627_v49, %s4675_s11 }
0x4ccd   :  { %v3548_v5 = vpop.permute.xlu0 %3547 }
0x4cce   :  { %v3550_v55 = vmul.f32 %v3548_v5, %v3530_v2 }
0x4cd0   :  { %v3552_v6 = vrot.slane %v3550_v55, 4 }
0x4cd2   :  { %v3554_v10 = vmax.f32 %v3446_v31, %v3552_v6  ;;  %3556 = vrot.lane.b32.xlu1 %v3552_v6, %s4676_s12 }
0x4d44   :  { %v3557_v11 = vpop.permute.xlu1 %3556 }
0x4d45   :  { %4177 = vmatmul.mubr.msk.f32.vlgmr.msra.gmra.mrb[32].mxu1 %vm619_vm2, %v3557_v11 }
0x4d46   :  { %4496 = vmatpush1.bf16.msra.mxu1 %v4717_v9  ;;  %3834 = vmatprep.mubr.f32.mxu1 %v4674_v7 }
0x4d47   :  { %4498 = vmatprep.subr.bf16.mxu1 %v4738_v17 }
0x4d4a   :  { %4500 = vmatpush1.bf16.msra.mxu1 %v4746_v19 }
0x4d4b   :  { %4240 = vmatprep.subr.mxu1 %v4674_v7 }
0x4e18   :  { %v3626_v12 = vpop.f32.mrb[32].mxu1 }
0x4e19   :  { %v3628_v18 = vpop.f32.mrb[33].mxu1 }
0x4e1a   :  { %v3631_v63 = vsel %vm617_vm1, %v3626_v12, %v3628_v18 }
0x4e1b   :  { %v3632_v60 = vadd.f32 %v3631_v63, %v5035_v4 }
0x4e1d   :  { %4628 = vtanh.f32 %v3632_v60 }
0x4e27   :  { %v4629_v13 = vpop.eup %4628 }
0x4e28   :  { %3641 = vrot.lane.b32.xlu0 %v4629_v13, %s4675_s11  ;;  %v3634_v14 = vmul.f32 0.5, %v4629_v13 }
0x4e2a   :  { %v3635_v21 = vadd.f32 0.5, %v3634_v14 }
0x4e2c   :  { %v3639_v47 = vmul.f32 %v3637_v20, %v3635_v21 }
0x4e9a   :  { %v3642_v15 = vpop.permute.xlu0 %3641 }
0x4e9b   :  { %v3644_v16 = vmul.f32 %v3642_v15, %v3635_v21 }
0x4e9d   :  { %3646 = vrot.lane.b32.xlu1 %v3644_v16, %s4676_s12 }
0x4f0f   :  { %v3647_v22 = vpop.permute.xlu1 %3646 }
0x4f10   :  { %v3649_v24 = vadd.f32 %v3647_v22, %v3639_v47  ;;  %v532_v22 = vrot.slane %v5006_v56, 4 }
0x4f12   :  { %4630 = vtanh.f32 %v3649_v24 }
0x4f1c   :  { %v4631_v45 = vpop.eup %4630 }
0x4f1d   :  { %3652 = vrot.lane.b32.xlu0 %v4631_v45, %s4675_s11 }
0x4f8f   :  { %v3653_v27 = vpop.permute.xlu0 %3652 }
0x4f90   :  { %v3655_v0 = vmul.f32 %v3653_v27, %v3635_v21 }
0x4f92   :  { %v3656_v28 = vmax.f32 %v3554_v10, %v3655_v0  ;;  %3658 = vrot.lane.b32.xlu1 %v3655_v0, %s4676_s12 }
0x5004   :  { %v3659_v48 = vpop.permute.xlu1 %3658 }
0x5005   :  { %4178 = vmatmul.mubr.msk.f32.vlgmr.msra.gmra.mrb[40].mxu0 %vm619_vm2, %v3659_v48 }
0x5006   :  { %4504 = vmatpush1.bf16.msra.mxu0 %v4717_v9  ;;  %3936 = vmatprep.mubr.f32.mxu0 %v4674_v7 }
0x5007   :  { %4506 = vmatprep.subr.bf16.mxu0 %v4738_v17  ;;  %v3742_v17 = vrot.slane %v3649_v24, 4  ;;  %v601_v24 = vrot.slane %v5008_v57, 4 }
0x5009   :  { %v602_v45 = vmax.f32 %v5008_v57, %v601_v24  ;;  %v3991_v57 = vsub.s32 0, %v4774_v23  ;;  %v4028_v23 = vld [vmem:[%s5445_s1 + $0xa0] sm:$0xff] }
0x500a   :  { %4508 = vmatpush1.bf16.msra.mxu0 %v4746_v19 }
0x50d8   :  { %v3728_v29 = vpop.f32.mrb[40].mxu0 }
0x50d9   :  { %v3730_v32 = vpop.f32.mrb[41].mxu0 }
0x50da   :  { %v3733_v33 = vsel %vm617_vm1, %v3728_v29, %v3730_v32 }
0x50db   :  { %v3735_v34 = vrot.slane %v3733_v33, 4 }
0x50dd   :  { %v3737_v25 = vadd.f32 %v3735_v34, %v5035_v4 }
0x50df   :  { %4632 = vtanh.f32 %v3737_v25 }
0x50e9   :  { %v4633_v35 = vpop.eup %4632 }
0x50ea   :  { %3746 = vrot.lane.b32.xlu0 %v4633_v35, %s4675_s11  ;;  %v3739_v36 = vmul.f32 0.5, %v4633_v35 }
0x50ec   :  { %v3740_v9 = vadd.f32 0.5, %v3739_v36 }
0x50ee   :  { %v3744_v19 = vmul.f32 %v3742_v17, %v3740_v9  ;;  %v3975_v17 = vld [vmem:[%s5445_s1 + $0x90] sm:$0xff] }
0x515c   :  { %v3747_v37 = vpop.permute.xlu0 %3746 }
0x515d   :  { %v3749_v61 = vmul.f32 %v3747_v37, %v3740_v9 }
0x515f   :  { %3751 = vrot.lane.b32.xlu1 %v3749_v61, %s4676_s12 }
0x51d1   :  { %v3752_v38 = vpop.permute.xlu1 %3751 }
0x51d2   :  { %v3754_v1 = vadd.f32 %v3752_v38, %v3744_v19 }
0x51d4   :  { %4634 = vtanh.f32 %v3754_v1  ;;  %v3847_v52 = vrot.slane %v3754_v1, 4  ;;  %v3992_v1 = vrot.slane %v3975_v17, %v3991_v57 }
0x51de   :  { %v4635_v39 = vpop.eup %4634 }
0x51df   :  { %3757 = vrot.lane.b32.xlu0 %v4635_v39, %s4675_s11 }
0x5251   :  { %v3758_v40 = vpop.permute.xlu0 %3757 }
0x5252   :  { %v3760_v4 = vmul.f32 %v3758_v40, %v3740_v9 }
0x5254   :  { %v3762_v26 = vrot.slane %v3760_v4, 4 }
0x5256   :  { %v5394_v30 = vmax.f32 %v3656_v28, %v3762_v26  ;;  %3766 = vrot.lane.b32.xlu1 %v3762_v26, %s4676_s12  ;;  %v603_v28 = vrot.slane %v602_v45, 2 }
0x5258   :  { %v604_v29 = vmax.f32 %v602_v45, %v603_v28 }
0x525a   :  { %v605_v33 = vrot.slane %v604_v29, 1 }
0x525c   :  { %v606_v25 = vmax.f32 %v604_v29, %v605_v33 }
0x52c8   :  { %v3767_v31 = vpop.permute.xlu1 %3766 }
0x52c9   :  { %4179 = vmatmul.mubr.msk.f32.vlgmr.msra.gmra.mrb[34].mxu1 %vm619_vm2, %v3767_v31  ;;  %v3998_v31 = vld [vmem:[%s5444_s0 + $0x80] sm:$0xff]  ;;  %s4680_s0 = smov [#allocation3]  }
0x52ca   :  { %4241 = vmatpush3.msk.msra.mxu1 %vm4033_vm13, %v4028_v23  ;;  %4242 = vmatprep.mubr.msk.f32.mxu1 %vm4679_vm14, %v4674_v7  ;;  %s4126_s1 = sshll.u32 %s4680_s0, 4  ;;  %s4127_s1 = int_to_ptr.vmem [resolvable:$true] %s4126_s1 }
0x52cb   :  { %s4650_s21 = scalar_lea.vmem %s4127_s1, 32  ;;  %p4655_p1 = scmp.lt.s32.totalorder %s4127_s1, %s4127_s1 }
0x52cc   :  { %p4651_p0 = scmp.ne.s32.totalorder %s4127_s1, %s4650_s21  ;;  %p4656_p2 = scmp.lt.s32.totalorder %s4650_s21, %s4650_s21 }
0x52ce   :  { %p4657_p3 = por %p4656_p2, %p4655_p1 }
0x52d0   :  { %p4658_p4 = pnand %p4657_p3, %p4651_p0 }
0x539c   :  { %v3836_v41 = vpop.f32.mrb[34].mxu1 }
0x539d   :  { %v3838_v42 = vpop.f32.mrb[35].mxu1 }
0x539e   :  { %v3841_v43 = vsel %vm617_vm1, %v3836_v41, %v3838_v42 }
0x539f   :  { %v3842_v62 = vadd.f32 %v5033_v3, %v3841_v43 }
0x53a1   :  { %4636 = vtanh.f32 %v3842_v62 }
0x53ab   :  { %v4637_v44 = vpop.eup %4636 }
0x53ac   :  { %3851 = vrot.lane.b32.xlu0 %v4637_v44, %s4675_s11  ;;  %v3844_v46 = vmul.f32 0.5, %v4637_v44 }
0x53ae   :  { %v3845_v50 = vadd.f32 0.5, %v3844_v46 }
0x53b0   :  { %v3849_v54 = vmul.f32 %v3847_v52, %v3845_v50 }
0x541e   :  { %v3852_v51 = vpop.permute.xlu0 %3851 }
0x541f   :  { %v3854_v2 = vmul.f32 %v3852_v51, %v3845_v50 }
0x5421   :  { %3856 = vrot.lane.b32.xlu1 %v3854_v2, %s4676_s12 }
0x5493   :  { %v3857_v58 = vpop.permute.xlu1 %3856 }
0x5494   :  { %v3859_v8 = vadd.f32 %v3857_v58, %v3849_v54 }
0x5496   :  { %4638 = vtanh.f32 %v3859_v8  ;;  %v3952_v15 = vrot.slane %v3859_v8, 4 }
0x54a0   :  { %v4639_v59 = vpop.eup %4638 }
0x54a1   :  { %3862 = vrot.lane.b32.xlu0 %v4639_v59, %s4675_s11 }
0x5513   :  { %v3863_v53 = vpop.permute.xlu0 %3862 }
0x5514   :  { %v3865_v49 = vmul.f32 %v3863_v53, %v3845_v50 }
0x5516   :  { %v3866_v5 = vmax.f32 %v5394_v30, %v3865_v49  ;;  %3868 = vrot.lane.b32.xlu1 %v3865_v49, %s4676_s12 }
0x5588   :  { %v3869_v55 = vpop.permute.xlu1 %3868 }
0x5589   :  { %4180 = vmatmul.mubr.msk.f32.vlgmr.msra.gmra.mrb[42].mxu0 %vm619_vm2, %v3869_v55  ;;  %vm3985_vm2 = vcmask 392192  }
0x565c   :  { %v3938_v6 = vpop.f32.mrb[42].mxu0 }
0x565d   :  { %v3940_v10 = vpop.f32.mrb[43].mxu0 }
0x565e   :  { %v3943_v11 = vsel %vm617_vm1, %v3938_v6, %v3940_v10  ;;  %vm607_vm1 = vcmask 1040384  }
0x565f   :  { %v3945_v12 = vrot.slane %v3943_v11, 4 }
0x5661   :  { %v3947_v18 = vadd.f32 %v5033_v3, %v3945_v12  ;;  %v533_v3 = vmax.f32 %v5006_v56, %v532_v22 }
0x5663   :  { %4640 = vtanh.f32 %v3947_v18  ;;  %v534_v0 = vrot.slane %v533_v3, 2 }
0x5665   :  { %v535_v48 = vmax.f32 %v533_v3, %v534_v0 }
0x5667   :  { %v536_v32 = vrot.slane %v535_v48, 1 }
0x5669   :  { %v537_v34 = vmax.f32 %v535_v48, %v536_v32 }
0x566b   :  { %v608_v35 = vsel %vm607_vm1, %v537_v34, %v606_v25 }
0x566d   :  { %v4641_v63 = vpop.eup %4640 }
0x566e   :  { %3956 = vrot.lane.b32.xlu0 %v4641_v63, %s4675_s11  ;;  %v3949_v60 = vmul.f32 0.5, %v4641_v63 }
0x5670   :  { %v3950_v13 = vadd.f32 0.5, %v3949_v60 }
0x5672   :  { %v3954_v16 = vmul.f32 %v3952_v15, %v3950_v13 }
0x56e0   :  { %v3957_v14 = vpop.permute.xlu0 %3956 }
0x56e1   :  { %v3959_v21 = vmul.f32 %v3957_v14, %v3950_v13 }
0x56e3   :  { %3961 = vrot.lane.b32.xlu1 %v3959_v21, %s4676_s12  ;;  %s4677_s12 = smov 48  }
0x5755   :  { %v3962_v20 = vpop.permute.xlu1 %3961 }
0x5756   :  { %v3964_v47 = vadd.f32 %v3962_v20, %v3954_v16 }
0x5758   :  { %4642 = vtanh.f32 %v3964_v47 }
0x5762   :  { %v4643_v27 = vpop.eup %4642 }
0x5763   :  { %3967 = vrot.lane.b32.xlu0 %v4643_v27, %s4675_s11 }
0x57d5   :  { %v3968_v36 = vpop.permute.xlu0 %3967 }
0x57d6   :  { %v3970_v9 = vmul.f32 %v3968_v36, %v3950_v13 }
0x57d8   :  { %v3972_v37 = vrot.slane %v3970_v9, 4 }
0x57da   :  { %v3974_v61 = vmax.f32 %v3866_v5, %v3972_v37 }
0x57dc   :  { %v3980_v56 = vrot.slane %v3974_v61, 2  ;;  %3977 = vrot.lane.b32.xlu1 %v3974_v61, %s4677_s12 }
0x57de   :  { %3981 = vrot.lane.b32.xlu0 %v3980_v56, %s4678_s15 }
0x584e   :  { %v3978_v19 = vpop.permute.xlu1 %3977 }
0x584f   :  { %v3984_v38 = vsel %vm500_vm10, %v608_v35, %v3978_v19  ;;  %vm3999_vm10 = vcmask 33792  }
0x5850   :  { %v3982_v39 = vpop.permute.xlu0 %3981  ;;  %v4000_v41 = vsel %vm3999_vm10, %v3998_v31, 0.0 }
0x5851   :  { %v3986_v40 = vsel %vm3985_vm2, %v3984_v38, %v3982_v39  ;;  %v4001_v42 = vrot.slane %v4000_v41, 4 }
0x5852   :  { %v3988_v4 = vsel %vm3987_vm11, %v3986_v40, 1.0 }
0x5853   :  { %v3993_v26 = vmul.f32 %v3992_v1, %v3988_v4  ;;  %v4002_v43 = vadd.f32 %v4001_v42, %v4000_v41 }
0x5855   :  { %v3995_v30 = vsel %vm3994_vm12, %v3993_v26, 0.0  ;;  %v4003_v62 = vrot.slane %v4002_v43, 2 }
0x5856   :  { %3996 = vadd.xlane.f32.xlu1 %v3995_v30 }
0x5857   :  { %v4004_v44 = vadd.f32 %v4003_v62, %v4002_v43 }
0x5859   :  { %v4005_v46 = vrot.slane %v4004_v44, 1 }
0x585b   :  { %v4006_v50 = vadd.f32 %v4005_v46, %v4004_v44 }
0x585d   :  { %v4008_v51 = vmul.f32 0.5, %v4006_v50 }
0x585f   :  { %v4009_v2 = vsub.f32 %v3998_v31, %v4008_v51 }
0x5861   :  { %v4010_v52 = vmul.f32 %v4009_v2, %v4009_v2 }
0x5863   :  { %v4011_v54 = vsel %vm3999_vm10, %v4010_v52, 0.0 }
0x5864   :  { %v4012_v58 = vrot.slane %v4011_v54, 4 }
0x5866   :  { %v4013_v8 = vadd.f32 %v4012_v58, %v4011_v54 }
0x5868   :  { %v4014_v59 = vrot.slane %v4013_v8, 2 }
0x586a   :  { %v4015_v7 = vadd.f32 %v4014_v59, %v4013_v8 }
0x586c   :  { %v4016_v53 = vrot.slane %v4015_v7, 1 }
0x586e   :  { %v4017_v49 = vadd.f32 %v4016_v53, %v4015_v7 }
0x5870   :  { %v4018_v5 = vmul.f32 0.5, %v4017_v49 }
0x5872   :  { %v4019_v55 = vadd.f32 1e-05, %v4018_v5 }
0x5874   :  { %4644 = vrsqrt.f32 %v4019_v55 }
0x587e   :  { %v4645_v6 = vpop.eup %4644 }
0x587f   :  { %v4021_v10 = vmul.f32 %v4645_v6, %v4009_v2 }
0x5881   :  { %v4022_v11 = vmax.f32 %v4021_v10, 0.0 }
0x58e3   :  { %v3997_v12 = vpop.xlane.xlu1 %3996 }
0x58e4   :  { %v4023_v18 = vmax.f32 %v3997_v12, 0.0 }
0x58e6   :  { %v4025_v63 = vsel %vm4024_vm15, %v4022_v11, %v4023_v18 }
0x58e7   :  { %v4027_v60 = vsel %vm4026_vm3, %v4025_v63, 1.0 }
0x58e8   :  { %4243 = vmatmul.mubr.msk.f32.vlgmr.msra.gmra.mrb[36].mxu1 %vm4029_vm4, %v4027_v60 }
0x59bb   :  { %v4103_v13 = vpop.f32.mrb[36].mxu1 }
0x59bc   :  { %v4244_v14 = vpop.f32.mrb[37].mxu1  ;;  %v4108_v21 = vsel %vm4107_vm0, %v4103_v13, -inf }
0x59bd   :  { %4109 = vmax.xlane.f32.xlu0 %v4108_v21 }
0x5a4a   :  { %v4110_v15 = vpop.xlane.xlu0 %4109 }
0x5a4b   :  { %v4111_v16 = vsub.f32 %v4103_v13, %v4110_v15 }
0x5a4d   :  { %v4112_v20 = vmul.f32 1.442695, %v4111_v16 }
0x5a4f   :  { %4646 = vpow2.f32 %v4112_v20 }
0x5a59   :  { %v4647_v47 = vpop.eup %4646 }
0x5a5a   :  { %v4114_v22 = vsel %vm4107_vm0, %v4647_v47, 0.0 }
0x5a5b   :  { %4115 = vadd.xlane.f32.xlu0 %v4114_v22 }
0x5ae8   :  { %v4116_v24 = vpop.xlane.xlu0 %4115 }
0x5ae9   :  { %4648 = vrcp.f32 %v4116_v24 }
0x5af3   :  { %v4649_v3 = vpop.eup %4648 }
0x5af4   :  { %v4118_v45 = vmul.f32 %v4649_v3, %v4647_v47 }
0x5af6   :  { %4119 = vst.msk [vmem:[#allocation3] sm:$0x3] %vm4107_vm0, %v4118_v45 }
0x5af7   :  { %4661 = shalt.err (!%p4658_p4)
}
0x5af8   :  { %s4662_s24 = scalar_lea.hbm %s5446_s2, 32 }
0x5af9   :  { %p4663_p5 = scmp.ne.s32.totalorder %s5446_s2, %s4662_s24  ;;  %p4666_p6 = scmp.lt.u32.totalorder %s4662_s24, %s5446_s2 }
0x5afb   :  { %p4668_p7 = pnand %p4666_p6, %p4663_p5 }
0x5afd   :  { %4671 = shalt.err (!%p4668_p7)
}
0x5afe   :  { %4129 = dma.vmem_to_hbm [thread:$0]  %s4127_s1, 32, %s5446_s2, [#allocation4]  }
0x5aff   :  { %4672 = dma.done.wait [#allocation4], 32  }
0x5b00   :  { %4673 = vsyncadd [#allocation4], 4294967264 }
0x5b01   :  { %4133 = vsyncpa [#allocation4], 1 }

</bundles_post_ra>
